<compile_context>
chip_gen: v6e
topology: v6e:2x2x1
jax: 0.10.0
libtpu: 0.0.40
codegen_flags: <defaults>
</compile_context>

<pallas_src>
import functools
import math

import jax
import jax.numpy as jnp
from jax import lax
from jax.experimental import pallas as pl
from jax.experimental.pallas import tpu as pltpu


# ----------------------------------------------------------------------------
# One attention scale on an aligned (Lp, D) token window.
# ----------------------------------------------------------------------------
def _scale_contrib(xs, w_in, b_in, w_fold, b_fold, *, num_heads, pad):
    """Contribution of one scale (zeros on the `pad` alignment rows).

    xs     : (Lp, D)  f32  tokens (first `pad` rows are alignment padding)
    w_in   : (D, 3D)  bf16 packed q/k/v projection
    b_in   : (1, 3D)  f32  packed q/k/v bias
    w_fold : (D, D)   bf16 output projection folded with its fusion slice
    b_fold : (1, D)   f32  folded output/fusion bias
    """
    Lp, D = xs.shape
    H = num_heads
    hd = D // H
    cdt = w_in.dtype                       # MXU compute dtype (bf16)
    inv_sqrt_hd = 1.0 / math.sqrt(hd)

    # Single lane-dense QKV projection (MXU: K=D, N=3D).
    qkv = jnp.dot(xs.astype(cdt), w_in,
                  preferred_element_type=jnp.float32) + b_in        # (Lp, 3D) f32
    qkv = qkv.astype(cdt)

    # Head split: static lane slices + leading-axis stack (relayout only).
    def split_heads(base):
        return jnp.stack(
            [qkv[:, base + h * hd: base + (h + 1) * hd] for h in range(H)],
            axis=0)                                                  # (H, Lp, hd)

    q, k, v = split_heads(0), split_heads(D), split_heads(2 * D)

    s = jnp.einsum("hqd,hkd->hqk", q, k,
                   preferred_element_type=jnp.float32) * inv_sqrt_hd  # (H,Lp,Lp)
    if pad:  # mask alignment-padding keys
        key_idx = lax.broadcasted_iota(jnp.int32, (Lp, Lp), 1)
        s = jnp.where(key_idx >= pad, s, -1e30)

    s = s - jnp.max(s, axis=-1, keepdims=True)
    p = jnp.exp(s)
    p = p * pl.reciprocal(jnp.sum(p, axis=-1, keepdims=True), approx=True)

    attn = jnp.einsum("hqk,hkd->hqd", p.astype(cdt), v,
                      preferred_element_type=jnp.float32)             # (H, Lp, hd)

    # Head merge (lane concat) + folded output projection (MXU: K=D, N=D).
    attn2d = jnp.concatenate([attn[h].astype(cdt) for h in range(H)], axis=-1)
    out = jnp.dot(attn2d, w_fold,
                  preferred_element_type=jnp.float32) + b_fold        # (Lp, D)
    if pad:  # zero alignment-padding query rows (incl. folded bias)
        q_idx = lax.broadcasted_iota(jnp.int32, (Lp, 1), 0)
        out = jnp.where(q_idx >= pad, out, 0.0)
    return out


# ----------------------------------------------------------------------------
# Kernel: one batch element per grid step.
# ----------------------------------------------------------------------------
def multiscale_attention_kernel(
    x_ref, w_in_ref, b_in_ref, w_fold_ref, b_fold_ref, ln_g_ref, ln_b_ref,
    o_ref, y_scr, *, num_heads, eps,
):
    _, S, D = x_ref.shape
    x = x_ref[0]                                   # (S, D) f32

    # Packed scale order: 0=short, 1=medium, 2=long.
    # Long scale covers the full sequence; the fusion bias is folded into it.
    y_scr[...] = x + _scale_contrib(
        x, w_in_ref[2], b_in_ref[2], w_fold_ref[2], b_fold_ref[2],
        num_heads=num_heads, pad=0)

    # Medium / short: trailing windows; start rounded down to a multiple of 8
    # so the scratch read-modify-write stays sublane-aligned.
    for idx, L in ((1, S // 2), (0, S // 4)):
        start = S - L
        a = (start // 8) * 8                       # aligned window start
        y_scr[pl.ds(a, S - a), :] += _scale_contrib(
            x[a:, :], w_in_ref[idx], b_in_ref[idx],
            w_fold_ref[idx], b_fold_ref[idx],
            num_heads=num_heads, pad=start - a)

    # Residual already in y_scr; LayerNorm in f32.
    y = y_scr[...]
    mean = jnp.mean(y, axis=-1, keepdims=True)
    var = jnp.mean((y - mean) ** 2, axis=-1, keepdims=True)
    norm = (y - mean) * lax.rsqrt(var + eps)
    o_ref[0] = (norm * ln_g_ref[...] + ln_b_ref[...]).astype(o_ref.dtype)


# ----------------------------------------------------------------------------
# Host-side weight packing (lane-dense, bf16 matmul weights, f32 biases).
# ----------------------------------------------------------------------------
def _pack_params(params, compute_dtype=jnp.bfloat16):
    D = params["s_in_w"].shape[0]
    f_w, f_b = params["f_w"], params["f_b"]

    def fold(prefix, f_slice):
        w = params[f"{prefix}_out_w"] @ f_slice          # (D, D)
        b = params[f"{prefix}_out_b"] @ f_slice          # (1, D)
        return w, b

    w_s, b_s = fold("s", f_w[:D])
    w_m, b_m = fold("m", f_w[D:2 * D])
    w_l, b_l = fold("l", f_w[2 * D:])
    b_l = b_l + f_b                                      # fusion bias -> long path

    w_in = jnp.stack([params["s_in_w"], params["m_in_w"],
                      params["l_in_w"]]).astype(compute_dtype)      # (3, D, 3D)
    b_in = jnp.stack([params["s_in_b"], params["m_in_b"],
                      params["l_in_b"]])                            # (3, 1, 3D) f32
    w_fold = jnp.stack([w_s, w_m, w_l]).astype(compute_dtype)       # (3, D, D)
    b_fold = jnp.stack([b_s, b_m, b_l])                             # (3, 1, D) f32
    return w_in, b_in, w_fold, b_fold, params["ln_g"], params["ln_b"]


# ----------------------------------------------------------------------------
# Wrapper
# ----------------------------------------------------------------------------
def multiscale_attention(x, params, num_heads=8, eps=1e-5):
    B, S, D = x.shape
    assert S >= 4, "need at least one token in the short window"
    assert D % num_heads == 0
    weights = _pack_params(params)

    kernel = functools.partial(
        multiscale_attention_kernel, num_heads=num_heads, eps=eps)

    def const_spec(a):
        nd = a.ndim
        return pl.BlockSpec(a.shape, lambda b, _nd=nd: (0,) * _nd)

    return pl.pallas_call(
        kernel,
        out_shape=jax.ShapeDtypeStruct((B, S, D), jnp.float32),
        grid=(B,),
        in_specs=[pl.BlockSpec((1, S, D), lambda b: (b, 0, 0))]
                 + [const_spec(w) for w in weights],
        out_specs=pl.BlockSpec((1, S, D), lambda b: (b, 0, 0)),
        scratch_shapes=[pltpu.VMEM((S, D), jnp.float32)],
        compiler_params=pltpu.CompilerParams(dimension_semantics=("parallel",)),
    )(x, *weights)


# ----------------------------------------------------------------------------
# Pure-JAX reference (mirrors PyTorch semantics) for validation.
# ----------------------------------------------------------------------------
def _ref_mha(x, in_w, in_b, out_w, out_b, H):
    B, L, D = x.shape
    hd = D // H
    qkv = x @ in_w + in_b
    q, k, v = jnp.split(qkv, 3, axis=-1)
    q = q.reshape(B, L, H, hd).transpose(0, 2, 1, 3)
    k = k.reshape(B, L, H, hd).transpose(0, 2, 1, 3)
    v = v.reshape(B, L, H, hd).transpose(0, 2, 1, 3)
    s = jnp.einsum("bhqd,bhkd->bhqk", q, k) / math.sqrt(hd)
    p = jax.nn.softmax(s, axis=-1)
    o = jnp.einsum("bhqk,bhkd->bhqd", p, v).transpose(0, 2, 1, 3).reshape(B, L, D)
    return o @ out_w + out_b


def _ref_forward(x, p, num_heads=8, eps=1e-5):
    B, S, D = x.shape
    Ls, Lm = S // 4, S // 2
    short = _ref_mha(x[:, S - Ls:, :], p["s_in_w"], p["s_in_b"],
                     p["s_out_w"], p["s_out_b"], num_heads)
    medium = _ref_mha(x[:, S - Lm:, :], p["m_in_w"], p["m_in_b"],
                      p["m_out_w"], p["m_out_b"], num_heads)
    long_out = _ref_mha(x, p["l_in_w"], p["l_in_b"],
                        p["l_out_w"], p["l_out_b"], num_heads)
    short = jnp.concatenate(
        [jnp.zeros((B, S - Ls, D), jnp.float32), short], axis=1)
    medium = jnp.concatenate(
        [jnp.zeros((B, S - Lm, D), jnp.float32), medium], axis=1)
    fused = jnp.concatenate([short, medium, long_out], axis=-1)
    out = fused @ p["f_w"] + p["f_b"]
    y = out + x
    mean = jnp.mean(y, axis=-1, keepdims=True)
    var = jnp.mean((y - mean) ** 2, axis=-1, keepdims=True)
    return (y - mean) * lax.rsqrt(var + eps) * p["ln_g"] + p["ln_b"]


# ----------------------------------------------------------------------------
# Deterministic parameter construction (x @ W + b convention).
# ----------------------------------------------------------------------------
def make_params(key, d_model):
    keys = jax.random.split(key, 16)
    scale = 0.05
    p = {}
    for i, name in enumerate(("s", "m", "l")):
        p[f"{name}_in_w"] = scale * jax.random.normal(
            keys[4 * i + 0], (d_model, 3 * d_model), jnp.float32)
        p[f"{name}_in_b"] = scale * jax.random.normal(
            keys[4 * i + 1], (1, 3 * d_model), jnp.float32)
        p[f"{name}_out_w"] = scale * jax.random.normal(
            keys[4 * i + 2], (d_model, d_model), jnp.float32)
        p[f"{name}_out_b"] = scale * jax.random.normal(
            keys[4 * i + 3], (1, d_model), jnp.float32)
    p["f_w"] = scale * jax.random.normal(keys[12], (3 * d_model, d_model), jnp.float32)
    p["f_b"] = scale * jax.random.normal(keys[13], (1, d_model), jnp.float32)
    p["ln_g"] = 1.0 + 0.1 * jax.random.normal(keys[14], (1, d_model), jnp.float32)
    p["ln_b"] = 0.05 * jax.random.normal(keys[15], (1, d_model), jnp.float32)
    return p


if __name__ == "__main__":
    B, S, D, H = 2, 16, 64, 8      # d_model=64, num_heads=8, seq=16, batch=2

    key = jax.random.PRNGKey(0)
    kx, kp = jax.random.split(key)
    x = jax.random.normal(kx, (B, S, D), jnp.float32)
    params = make_params(kp, D)

    out = jax.block_until_ready(multiscale_attention(x, params, num_heads=H))
    ref = _ref_forward(x, params, num_heads=H)

    assert out.shape == (B, S, D)
    max_err = jnp.max(jnp.abs(out - ref))
    # bf16 MXU operands -> loosened tolerance (review-approved).
    assert jnp.allclose(out, ref, rtol=1e-2, atol=1e-2), f"max abs err {max_err}"

    print("KERNEL_OK")
</pallas_src>

<mosaic_0001>
module attributes {stable_mosaic.version = 11 : i64} {
  func.func @multiscale_attention_kernel(%arg0: i32, %arg1: memref<1x16x64xf32, #tpu.memory_space<vmem>>, %arg2: memref<3x64x192xbf16, #tpu.memory_space<vmem>>, %arg3: memref<3x1x192xf32, #tpu.memory_space<vmem>>, %arg4: memref<3x64x64xbf16, #tpu.memory_space<vmem>>, %arg5: memref<3x1x64xf32, #tpu.memory_space<vmem>>, %arg6: memref<1x64xf32, #tpu.memory_space<vmem>>, %arg7: memref<1x64xf32, #tpu.memory_space<vmem>>, %arg8: memref<1x16x64xf32, #tpu.memory_space<vmem>>, %arg9: memref<16x64xf32, #tpu.memory_space<vmem>>) attributes {dimension_semantics = [#tpu.dimension_semantics<parallel>], iteration_bounds = array<i64: 2>, scalar_prefetch = 0 : i64, scratch_operands = 1 : i64, tpu.core_type = #tpu.core_type<tc>, window_params = [{transform_indices = @transform_0, window_bounds = array<i64: 1, 16, 64>}, {pipeline_mode = #tpu.pipeline_mode<synchronous>, transform_indices = @transform_1, window_bounds = array<i64: 3, 64, 192>}, {pipeline_mode = #tpu.pipeline_mode<synchronous>, transform_indices = @transform_2, window_bounds = array<i64: 3, 1, 192>}, {pipeline_mode = #tpu.pipeline_mode<synchronous>, transform_indices = @transform_3, window_bounds = array<i64: 3, 64, 64>}, {pipeline_mode = #tpu.pipeline_mode<synchronous>, transform_indices = @transform_4, window_bounds = array<i64: 3, 1, 64>}, {pipeline_mode = #tpu.pipeline_mode<synchronous>, transform_indices = @transform_5, window_bounds = array<i64: 1, 64>}, {pipeline_mode = #tpu.pipeline_mode<synchronous>, transform_indices = @transform_6, window_bounds = array<i64: 1, 64>}, {transform_indices = @transform_7, window_bounds = array<i64: 1, 16, 64>}]} {
    %c0 = arith.constant 0 : index
    %c0_0 = arith.constant 0 : index
    %c0_1 = arith.constant 0 : index
    %0 = vector.load %arg1[%c0, %c0_0, %c0_1] : memref<1x16x64xf32, #tpu.memory_space<vmem>>, vector<1x16x64xf32>
    %1 = vector.shape_cast %0 : vector<1x16x64xf32> to vector<16x64xf32>
    %c2 = arith.constant 2 : index
    %c0_2 = arith.constant 0 : index
    %c0_3 = arith.constant 0 : index
    %2 = vector.load %arg2[%c2, %c0_2, %c0_3] : memref<3x64x192xbf16, #tpu.memory_space<vmem>>, vector<1x64x192xbf16>
    %3 = vector.shape_cast %2 : vector<1x64x192xbf16> to vector<64x192xbf16>
    %c2_4 = arith.constant 2 : index
    %c0_5 = arith.constant 0 : index
    %c0_6 = arith.constant 0 : index
    %4 = vector.load %arg3[%c2_4, %c0_5, %c0_6] : memref<3x1x192xf32, #tpu.memory_space<vmem>>, vector<1x1x192xf32>
    %5 = vector.shape_cast %4 : vector<1x1x192xf32> to vector<1x192xf32>
    %c2_7 = arith.constant 2 : index
    %c0_8 = arith.constant 0 : index
    %c0_9 = arith.constant 0 : index
    %6 = vector.load %arg4[%c2_7, %c0_8, %c0_9] : memref<3x64x64xbf16, #tpu.memory_space<vmem>>, vector<1x64x64xbf16>
    %7 = vector.shape_cast %6 : vector<1x64x64xbf16> to vector<64x64xbf16>
    %c2_10 = arith.constant 2 : index
    %c0_11 = arith.constant 0 : index
    %c0_12 = arith.constant 0 : index
    %8 = vector.load %arg5[%c2_10, %c0_11, %c0_12] : memref<3x1x64xf32, #tpu.memory_space<vmem>>, vector<1x1x64xf32>
    %9 = vector.shape_cast %8 : vector<1x1x64xf32> to vector<1x64xf32>
    %10 = arith.truncf %1 : vector<16x64xf32> to vector<16x64xbf16>
    %cst = arith.constant dense<0.000000e+00> : vector<16x192xf32>
    %11 = tpu.matmul %10, %3, %cst {dimension_numbers = #tpu.dot_dimension_numbers<[1], [0], [0], [1], [0, 0, 1, 1], [], []>} : vector<16x64xbf16>, vector<64x192xbf16>, vector<16x192xf32> -> vector<16x192xf32>
    %12 = vector.broadcast %5 : vector<1x192xf32> to vector<16x192xf32>
    %13 = arith.addf %11, %12 : vector<16x192xf32>
    %14 = arith.truncf %13 : vector<16x192xf32> to vector<16x192xbf16>
    %15 = vector.extract_strided_slice %14 {offsets = [0, 0], sizes = [16, 8], strides = [1, 1]} : vector<16x192xbf16> to vector<16x8xbf16>
    %16 = vector.extract_strided_slice %14 {offsets = [0, 8], sizes = [16, 8], strides = [1, 1]} : vector<16x192xbf16> to vector<16x8xbf16>
    %17 = vector.extract_strided_slice %14 {offsets = [0, 16], sizes = [16, 8], strides = [1, 1]} : vector<16x192xbf16> to vector<16x8xbf16>
    %18 = vector.extract_strided_slice %14 {offsets = [0, 24], sizes = [16, 8], strides = [1, 1]} : vector<16x192xbf16> to vector<16x8xbf16>
    %19 = vector.extract_strided_slice %14 {offsets = [0, 32], sizes = [16, 8], strides = [1, 1]} : vector<16x192xbf16> to vector<16x8xbf16>
    %20 = vector.extract_strided_slice %14 {offsets = [0, 40], sizes = [16, 8], strides = [1, 1]} : vector<16x192xbf16> to vector<16x8xbf16>
    %21 = vector.extract_strided_slice %14 {offsets = [0, 48], sizes = [16, 8], strides = [1, 1]} : vector<16x192xbf16> to vector<16x8xbf16>
    %22 = vector.extract_strided_slice %14 {offsets = [0, 56], sizes = [16, 8], strides = [1, 1]} : vector<16x192xbf16> to vector<16x8xbf16>
    %23 = vector.shape_cast %15 : vector<16x8xbf16> to vector<1x16x8xbf16>
    %24 = vector.shape_cast %16 : vector<16x8xbf16> to vector<1x16x8xbf16>
    %25 = vector.shape_cast %17 : vector<16x8xbf16> to vector<1x16x8xbf16>
    %26 = vector.shape_cast %18 : vector<16x8xbf16> to vector<1x16x8xbf16>
    %27 = vector.shape_cast %19 : vector<16x8xbf16> to vector<1x16x8xbf16>
    %28 = vector.shape_cast %20 : vector<16x8xbf16> to vector<1x16x8xbf16>
    %29 = vector.shape_cast %21 : vector<16x8xbf16> to vector<1x16x8xbf16>
    %30 = vector.shape_cast %22 : vector<16x8xbf16> to vector<1x16x8xbf16>
    %31 = tpu.concatenate %23, %24, %25, %26, %27, %28, %29, %30 in 0 : vector<1x16x8xbf16>, vector<1x16x8xbf16>, vector<1x16x8xbf16>, vector<1x16x8xbf16>, vector<1x16x8xbf16>, vector<1x16x8xbf16>, vector<1x16x8xbf16>, vector<1x16x8xbf16> -> vector<8x16x8xbf16>
    %32 = vector.extract_strided_slice %14 {offsets = [0, 64], sizes = [16, 8], strides = [1, 1]} : vector<16x192xbf16> to vector<16x8xbf16>
    %33 = vector.extract_strided_slice %14 {offsets = [0, 72], sizes = [16, 8], strides = [1, 1]} : vector<16x192xbf16> to vector<16x8xbf16>
    %34 = vector.extract_strided_slice %14 {offsets = [0, 80], sizes = [16, 8], strides = [1, 1]} : vector<16x192xbf16> to vector<16x8xbf16>
    %35 = vector.extract_strided_slice %14 {offsets = [0, 88], sizes = [16, 8], strides = [1, 1]} : vector<16x192xbf16> to vector<16x8xbf16>
    %36 = vector.extract_strided_slice %14 {offsets = [0, 96], sizes = [16, 8], strides = [1, 1]} : vector<16x192xbf16> to vector<16x8xbf16>
    %37 = vector.extract_strided_slice %14 {offsets = [0, 104], sizes = [16, 8], strides = [1, 1]} : vector<16x192xbf16> to vector<16x8xbf16>
    %38 = vector.extract_strided_slice %14 {offsets = [0, 112], sizes = [16, 8], strides = [1, 1]} : vector<16x192xbf16> to vector<16x8xbf16>
    %39 = vector.extract_strided_slice %14 {offsets = [0, 120], sizes = [16, 8], strides = [1, 1]} : vector<16x192xbf16> to vector<16x8xbf16>
    %40 = vector.shape_cast %32 : vector<16x8xbf16> to vector<1x16x8xbf16>
    %41 = vector.shape_cast %33 : vector<16x8xbf16> to vector<1x16x8xbf16>
    %42 = vector.shape_cast %34 : vector<16x8xbf16> to vector<1x16x8xbf16>
    %43 = vector.shape_cast %35 : vector<16x8xbf16> to vector<1x16x8xbf16>
    %44 = vector.shape_cast %36 : vector<16x8xbf16> to vector<1x16x8xbf16>
    %45 = vector.shape_cast %37 : vector<16x8xbf16> to vector<1x16x8xbf16>
    %46 = vector.shape_cast %38 : vector<16x8xbf16> to vector<1x16x8xbf16>
    %47 = vector.shape_cast %39 : vector<16x8xbf16> to vector<1x16x8xbf16>
    %48 = tpu.concatenate %40, %41, %42, %43, %44, %45, %46, %47 in 0 : vector<1x16x8xbf16>, vector<1x16x8xbf16>, vector<1x16x8xbf16>, vector<1x16x8xbf16>, vector<1x16x8xbf16>, vector<1x16x8xbf16>, vector<1x16x8xbf16>, vector<1x16x8xbf16> -> vector<8x16x8xbf16>
    %49 = vector.extract_strided_slice %14 {offsets = [0, 128], sizes = [16, 8], strides = [1, 1]} : vector<16x192xbf16> to vector<16x8xbf16>
    %50 = vector.extract_strided_slice %14 {offsets = [0, 136], sizes = [16, 8], strides = [1, 1]} : vector<16x192xbf16> to vector<16x8xbf16>
    %51 = vector.extract_strided_slice %14 {offsets = [0, 144], sizes = [16, 8], strides = [1, 1]} : vector<16x192xbf16> to vector<16x8xbf16>
    %52 = vector.extract_strided_slice %14 {offsets = [0, 152], sizes = [16, 8], strides = [1, 1]} : vector<16x192xbf16> to vector<16x8xbf16>
    %53 = vector.extract_strided_slice %14 {offsets = [0, 160], sizes = [16, 8], strides = [1, 1]} : vector<16x192xbf16> to vector<16x8xbf16>
    %54 = vector.extract_strided_slice %14 {offsets = [0, 168], sizes = [16, 8], strides = [1, 1]} : vector<16x192xbf16> to vector<16x8xbf16>
    %55 = vector.extract_strided_slice %14 {offsets = [0, 176], sizes = [16, 8], strides = [1, 1]} : vector<16x192xbf16> to vector<16x8xbf16>
    %56 = vector.extract_strided_slice %14 {offsets = [0, 184], sizes = [16, 8], strides = [1, 1]} : vector<16x192xbf16> to vector<16x8xbf16>
    %57 = vector.shape_cast %49 : vector<16x8xbf16> to vector<1x16x8xbf16>
    %58 = vector.shape_cast %50 : vector<16x8xbf16> to vector<1x16x8xbf16>
    %59 = vector.shape_cast %51 : vector<16x8xbf16> to vector<1x16x8xbf16>
    %60 = vector.shape_cast %52 : vector<16x8xbf16> to vector<1x16x8xbf16>
    %61 = vector.shape_cast %53 : vector<16x8xbf16> to vector<1x16x8xbf16>
    %62 = vector.shape_cast %54 : vector<16x8xbf16> to vector<1x16x8xbf16>
    %63 = vector.shape_cast %55 : vector<16x8xbf16> to vector<1x16x8xbf16>
    %64 = vector.shape_cast %56 : vector<16x8xbf16> to vector<1x16x8xbf16>
    %65 = tpu.concatenate %57, %58, %59, %60, %61, %62, %63, %64 in 0 : vector<1x16x8xbf16>, vector<1x16x8xbf16>, vector<1x16x8xbf16>, vector<1x16x8xbf16>, vector<1x16x8xbf16>, vector<1x16x8xbf16>, vector<1x16x8xbf16>, vector<1x16x8xbf16> -> vector<8x16x8xbf16>
    "tpu.trace_start"() <{level = 10 : i32, message = "hqd,hkd->hqk"}> : () -> ()
    %cst_13 = arith.constant dense<0.000000e+00> : vector<8x16x16xf32>
    %66 = tpu.matmul %31, %48, %cst_13 {dimension_numbers = #tpu.dot_dimension_numbers<[2], [2], [1], [1], [0, 0, 0, 1, 1, 1], [0], [0]>} : vector<8x16x8xbf16>, vector<8x16x8xbf16>, vector<8x16x16xf32> -> vector<8x16x16xf32>
    "tpu.trace_stop"() : () -> ()
    %cst_14 = arith.constant 0.353553385 : f32
    %67 = vector.broadcast %cst_14 : f32 to vector<8x16x16xf32>
    %68 = arith.mulf %66, %67 : vector<8x16x16xf32>
    %cst_15 = arith.constant dense<0xFF800000> : vector<8x16xf32>
    %69 = vector.multi_reduction <maximumf>, %68, %cst_15 [2] : vector<8x16x16xf32> to vector<8x16xf32>
    %70 = vector.shape_cast %69 : vector<8x16xf32> to vector<8x16x1xf32>
    %71 = vector.broadcast %70 : vector<8x16x1xf32> to vector<8x16x16xf32>
    %72 = arith.subf %68, %71 : vector<8x16x16xf32>
    %73 = math.exp %72 : vector<8x16x16xf32>
    %cst_16 = arith.constant dense<0.000000e+00> : vector<8x16xf32>
    %74 = vector.multi_reduction <add>, %73, %cst_16 [2] : vector<8x16x16xf32> to vector<8x16xf32>
    %75 = vector.shape_cast %74 : vector<8x16xf32> to vector<8x16x1xf32>
    %76 = tpu.reciprocal %75 {approx = true} : vector<8x16x1xf32> -> vector<8x16x1xf32>
    %77 = vector.broadcast %76 : vector<8x16x1xf32> to vector<8x16x16xf32>
    %78 = arith.mulf %73, %77 : vector<8x16x16xf32>
    %79 = arith.truncf %78 : vector<8x16x16xf32> to vector<8x16x16xbf16>
    "tpu.trace_start"() <{level = 10 : i32, message = "hqk,hkd->hqd"}> : () -> ()
    %cst_17 = arith.constant dense<0.000000e+00> : vector<8x16x8xf32>
    %80 = tpu.matmul %79, %65, %cst_17 {dimension_numbers = #tpu.dot_dimension_numbers<[2], [1], [1], [2], [0, 0, 0, 1, 1, 2], [0], [0]>} : vector<8x16x16xbf16>, vector<8x16x8xbf16>, vector<8x16x8xf32> -> vector<8x16x8xf32>
    "tpu.trace_stop"() : () -> ()
    %81 = vector.extract_strided_slice %80 {offsets = [0, 0, 0], sizes = [1, 16, 8], strides = [1, 1, 1]} : vector<8x16x8xf32> to vector<1x16x8xf32>
    %82 = vector.shape_cast %81 : vector<1x16x8xf32> to vector<16x8xf32>
    %83 = arith.truncf %82 : vector<16x8xf32> to vector<16x8xbf16>
    %84 = vector.extract_strided_slice %80 {offsets = [1, 0, 0], sizes = [1, 16, 8], strides = [1, 1, 1]} : vector<8x16x8xf32> to vector<1x16x8xf32>
    %85 = vector.shape_cast %84 : vector<1x16x8xf32> to vector<16x8xf32>
    %86 = arith.truncf %85 : vector<16x8xf32> to vector<16x8xbf16>
    %87 = vector.extract_strided_slice %80 {offsets = [2, 0, 0], sizes = [1, 16, 8], strides = [1, 1, 1]} : vector<8x16x8xf32> to vector<1x16x8xf32>
    %88 = vector.shape_cast %87 : vector<1x16x8xf32> to vector<16x8xf32>
    %89 = arith.truncf %88 : vector<16x8xf32> to vector<16x8xbf16>
    %90 = vector.extract_strided_slice %80 {offsets = [3, 0, 0], sizes = [1, 16, 8], strides = [1, 1, 1]} : vector<8x16x8xf32> to vector<1x16x8xf32>
    %91 = vector.shape_cast %90 : vector<1x16x8xf32> to vector<16x8xf32>
    %92 = arith.truncf %91 : vector<16x8xf32> to vector<16x8xbf16>
    %93 = vector.extract_strided_slice %80 {offsets = [4, 0, 0], sizes = [1, 16, 8], strides = [1, 1, 1]} : vector<8x16x8xf32> to vector<1x16x8xf32>
    %94 = vector.shape_cast %93 : vector<1x16x8xf32> to vector<16x8xf32>
    %95 = arith.truncf %94 : vector<16x8xf32> to vector<16x8xbf16>
    %96 = vector.extract_strided_slice %80 {offsets = [5, 0, 0], sizes = [1, 16, 8], strides = [1, 1, 1]} : vector<8x16x8xf32> to vector<1x16x8xf32>
    %97 = vector.shape_cast %96 : vector<1x16x8xf32> to vector<16x8xf32>
    %98 = arith.truncf %97 : vector<16x8xf32> to vector<16x8xbf16>
    %99 = vector.extract_strided_slice %80 {offsets = [6, 0, 0], sizes = [1, 16, 8], strides = [1, 1, 1]} : vector<8x16x8xf32> to vector<1x16x8xf32>
    %100 = vector.shape_cast %99 : vector<1x16x8xf32> to vector<16x8xf32>
    %101 = arith.truncf %100 : vector<16x8xf32> to vector<16x8xbf16>
    %102 = vector.extract_strided_slice %80 {offsets = [7, 0, 0], sizes = [1, 16, 8], strides = [1, 1, 1]} : vector<8x16x8xf32> to vector<1x16x8xf32>
    %103 = vector.shape_cast %102 : vector<1x16x8xf32> to vector<16x8xf32>
    %104 = arith.truncf %103 : vector<16x8xf32> to vector<16x8xbf16>
    %105 = tpu.concatenate %83, %86, %89, %92, %95, %98, %101, %104 in 1 : vector<16x8xbf16>, vector<16x8xbf16>, vector<16x8xbf16>, vector<16x8xbf16>, vector<16x8xbf16>, vector<16x8xbf16>, vector<16x8xbf16>, vector<16x8xbf16> -> vector<16x64xbf16>
    %cst_18 = arith.constant dense<0.000000e+00> : vector<16x64xf32>
    %106 = tpu.matmul %105, %7, %cst_18 {dimension_numbers = #tpu.dot_dimension_numbers<[1], [0], [0], [1], [0, 0, 1, 1], [], []>} : vector<16x64xbf16>, vector<64x64xbf16>, vector<16x64xf32> -> vector<16x64xf32>
    %107 = vector.broadcast %9 : vector<1x64xf32> to vector<16x64xf32>
    %108 = arith.addf %106, %107 : vector<16x64xf32>
    %109 = arith.addf %1, %108 : vector<16x64xf32>
    %c0_19 = arith.constant 0 : index
    %c0_20 = arith.constant 0 : index
    %110 = vector.load %arg9[%c0_19, %c0_20] : memref<16x64xf32, #tpu.memory_space<vmem>>, vector<16x64xf32>
    tpu.vector_store %arg9[%c0_19, %c0_20], %109 {strides = array<i32>} : memref<16x64xf32, #tpu.memory_space<vmem>>, vector<16x64xf32>,
    %c8 = arith.constant 8 : index
    %c0_21 = arith.constant 0 : index
    %111 = vector.load %arg9[%c8, %c0_21] : memref<16x64xf32, #tpu.memory_space<vmem>>, vector<8x64xf32>
    %112 = vector.extract_strided_slice %1 {offsets = [8, 0], sizes = [8, 64], strides = [1, 1]} : vector<16x64xf32> to vector<8x64xf32>
    %c1 = arith.constant 1 : index
    %c0_22 = arith.constant 0 : index
    %c0_23 = arith.constant 0 : index
    %113 = vector.load %arg2[%c1, %c0_22, %c0_23] : memref<3x64x192xbf16, #tpu.memory_space<vmem>>, vector<1x64x192xbf16>
    %114 = vector.shape_cast %113 : vector<1x64x192xbf16> to vector<64x192xbf16>
    %c1_24 = arith.constant 1 : index
    %c0_25 = arith.constant 0 : index
    %c0_26 = arith.constant 0 : index
    %115 = vector.load %arg3[%c1_24, %c0_25, %c0_26] : memref<3x1x192xf32, #tpu.memory_space<vmem>>, vector<1x1x192xf32>
    %116 = vector.shape_cast %115 : vector<1x1x192xf32> to vector<1x192xf32>
    %c1_27 = arith.constant 1 : index
    %c0_28 = arith.constant 0 : index
    %c0_29 = arith.constant 0 : index
    %117 = vector.load %arg4[%c1_27, %c0_28, %c0_29] : memref<3x64x64xbf16, #tpu.memory_space<vmem>>, vector<1x64x64xbf16>
    %118 = vector.shape_cast %117 : vector<1x64x64xbf16> to vector<64x64xbf16>
    %c1_30 = arith.constant 1 : index
    %c0_31 = arith.constant 0 : index
    %c0_32 = arith.constant 0 : index
    %119 = vector.load %arg5[%c1_30, %c0_31, %c0_32] : memref<3x1x64xf32, #tpu.memory_space<vmem>>, vector<1x1x64xf32>
    %120 = vector.shape_cast %119 : vector<1x1x64xf32> to vector<1x64xf32>
    %121 = arith.truncf %112 : vector<8x64xf32> to vector<8x64xbf16>
    %cst_33 = arith.constant dense<0.000000e+00> : vector<8x192xf32>
    %122 = tpu.matmul %121, %114, %cst_33 {dimension_numbers = #tpu.dot_dimension_numbers<[1], [0], [0], [1], [0, 0, 1, 1], [], []>} : vector<8x64xbf16>, vector<64x192xbf16>, vector<8x192xf32> -> vector<8x192xf32>
    %123 = vector.broadcast %116 : vector<1x192xf32> to vector<8x192xf32>
    %124 = arith.addf %122, %123 : vector<8x192xf32>
    %125 = arith.truncf %124 : vector<8x192xf32> to vector<8x192xbf16>
    %126 = vector.extract_strided_slice %125 {offsets = [0, 0], sizes = [8, 8], strides = [1, 1]} : vector<8x192xbf16> to vector<8x8xbf16>
    %127 = vector.extract_strided_slice %125 {offsets = [0, 8], sizes = [8, 8], strides = [1, 1]} : vector<8x192xbf16> to vector<8x8xbf16>
    %128 = vector.extract_strided_slice %125 {offsets = [0, 16], sizes = [8, 8], strides = [1, 1]} : vector<8x192xbf16> to vector<8x8xbf16>
    %129 = vector.extract_strided_slice %125 {offsets = [0, 24], sizes = [8, 8], strides = [1, 1]} : vector<8x192xbf16> to vector<8x8xbf16>
    %130 = vector.extract_strided_slice %125 {offsets = [0, 32], sizes = [8, 8], strides = [1, 1]} : vector<8x192xbf16> to vector<8x8xbf16>
    %131 = vector.extract_strided_slice %125 {offsets = [0, 40], sizes = [8, 8], strides = [1, 1]} : vector<8x192xbf16> to vector<8x8xbf16>
    %132 = vector.extract_strided_slice %125 {offsets = [0, 48], sizes = [8, 8], strides = [1, 1]} : vector<8x192xbf16> to vector<8x8xbf16>
    %133 = vector.extract_strided_slice %125 {offsets = [0, 56], sizes = [8, 8], strides = [1, 1]} : vector<8x192xbf16> to vector<8x8xbf16>
    %134 = vector.shape_cast %126 : vector<8x8xbf16> to vector<1x8x8xbf16>
    %135 = vector.shape_cast %127 : vector<8x8xbf16> to vector<1x8x8xbf16>
    %136 = vector.shape_cast %128 : vector<8x8xbf16> to vector<1x8x8xbf16>
    %137 = vector.shape_cast %129 : vector<8x8xbf16> to vector<1x8x8xbf16>
    %138 = vector.shape_cast %130 : vector<8x8xbf16> to vector<1x8x8xbf16>
    %139 = vector.shape_cast %131 : vector<8x8xbf16> to vector<1x8x8xbf16>
    %140 = vector.shape_cast %132 : vector<8x8xbf16> to vector<1x8x8xbf16>
    %141 = vector.shape_cast %133 : vector<8x8xbf16> to vector<1x8x8xbf16>
    %142 = tpu.concatenate %134, %135, %136, %137, %138, %139, %140, %141 in 0 : vector<1x8x8xbf16>, vector<1x8x8xbf16>, vector<1x8x8xbf16>, vector<1x8x8xbf16>, vector<1x8x8xbf16>, vector<1x8x8xbf16>, vector<1x8x8xbf16>, vector<1x8x8xbf16> -> vector<8x8x8xbf16>
    %143 = vector.extract_strided_slice %125 {offsets = [0, 64], sizes = [8, 8], strides = [1, 1]} : vector<8x192xbf16> to vector<8x8xbf16>
    %144 = vector.extract_strided_slice %125 {offsets = [0, 72], sizes = [8, 8], strides = [1, 1]} : vector<8x192xbf16> to vector<8x8xbf16>
    %145 = vector.extract_strided_slice %125 {offsets = [0, 80], sizes = [8, 8], strides = [1, 1]} : vector<8x192xbf16> to vector<8x8xbf16>
    %146 = vector.extract_strided_slice %125 {offsets = [0, 88], sizes = [8, 8], strides = [1, 1]} : vector<8x192xbf16> to vector<8x8xbf16>
    %147 = vector.extract_strided_slice %125 {offsets = [0, 96], sizes = [8, 8], strides = [1, 1]} : vector<8x192xbf16> to vector<8x8xbf16>
    %148 = vector.extract_strided_slice %125 {offsets = [0, 104], sizes = [8, 8], strides = [1, 1]} : vector<8x192xbf16> to vector<8x8xbf16>
    %149 = vector.extract_strided_slice %125 {offsets = [0, 112], sizes = [8, 8], strides = [1, 1]} : vector<8x192xbf16> to vector<8x8xbf16>
    %150 = vector.extract_strided_slice %125 {offsets = [0, 120], sizes = [8, 8], strides = [1, 1]} : vector<8x192xbf16> to vector<8x8xbf16>
    %151 = vector.shape_cast %143 : vector<8x8xbf16> to vector<1x8x8xbf16>
    %152 = vector.shape_cast %144 : vector<8x8xbf16> to vector<1x8x8xbf16>
    %153 = vector.shape_cast %145 : vector<8x8xbf16> to vector<1x8x8xbf16>
    %154 = vector.shape_cast %146 : vector<8x8xbf16> to vector<1x8x8xbf16>
    %155 = vector.shape_cast %147 : vector<8x8xbf16> to vector<1x8x8xbf16>
    %156 = vector.shape_cast %148 : vector<8x8xbf16> to vector<1x8x8xbf16>
    %157 = vector.shape_cast %149 : vector<8x8xbf16> to vector<1x8x8xbf16>
    %158 = vector.shape_cast %150 : vector<8x8xbf16> to vector<1x8x8xbf16>
    %159 = tpu.concatenate %151, %152, %153, %154, %155, %156, %157, %158 in 0 : vector<1x8x8xbf16>, vector<1x8x8xbf16>, vector<1x8x8xbf16>, vector<1x8x8xbf16>, vector<1x8x8xbf16>, vector<1x8x8xbf16>, vector<1x8x8xbf16>, vector<1x8x8xbf16> -> vector<8x8x8xbf16>
    %160 = vector.extract_strided_slice %125 {offsets = [0, 128], sizes = [8, 8], strides = [1, 1]} : vector<8x192xbf16> to vector<8x8xbf16>
    %161 = vector.extract_strided_slice %125 {offsets = [0, 136], sizes = [8, 8], strides = [1, 1]} : vector<8x192xbf16> to vector<8x8xbf16>
    %162 = vector.extract_strided_slice %125 {offsets = [0, 144], sizes = [8, 8], strides = [1, 1]} : vector<8x192xbf16> to vector<8x8xbf16>
    %163 = vector.extract_strided_slice %125 {offsets = [0, 152], sizes = [8, 8], strides = [1, 1]} : vector<8x192xbf16> to vector<8x8xbf16>
    %164 = vector.extract_strided_slice %125 {offsets = [0, 160], sizes = [8, 8], strides = [1, 1]} : vector<8x192xbf16> to vector<8x8xbf16>
    %165 = vector.extract_strided_slice %125 {offsets = [0, 168], sizes = [8, 8], strides = [1, 1]} : vector<8x192xbf16> to vector<8x8xbf16>
    %166 = vector.extract_strided_slice %125 {offsets = [0, 176], sizes = [8, 8], strides = [1, 1]} : vector<8x192xbf16> to vector<8x8xbf16>
    %167 = vector.extract_strided_slice %125 {offsets = [0, 184], sizes = [8, 8], strides = [1, 1]} : vector<8x192xbf16> to vector<8x8xbf16>
    %168 = vector.shape_cast %160 : vector<8x8xbf16> to vector<1x8x8xbf16>
    %169 = vector.shape_cast %161 : vector<8x8xbf16> to vector<1x8x8xbf16>
    %170 = vector.shape_cast %162 : vector<8x8xbf16> to vector<1x8x8xbf16>
    %171 = vector.shape_cast %163 : vector<8x8xbf16> to vector<1x8x8xbf16>
    %172 = vector.shape_cast %164 : vector<8x8xbf16> to vector<1x8x8xbf16>
    %173 = vector.shape_cast %165 : vector<8x8xbf16> to vector<1x8x8xbf16>
    %174 = vector.shape_cast %166 : vector<8x8xbf16> to vector<1x8x8xbf16>
    %175 = vector.shape_cast %167 : vector<8x8xbf16> to vector<1x8x8xbf16>
    %176 = tpu.concatenate %168, %169, %170, %171, %172, %173, %174, %175 in 0 : vector<1x8x8xbf16>, vector<1x8x8xbf16>, vector<1x8x8xbf16>, vector<1x8x8xbf16>, vector<1x8x8xbf16>, vector<1x8x8xbf16>, vector<1x8x8xbf16>, vector<1x8x8xbf16> -> vector<8x8x8xbf16>
    "tpu.trace_start"() <{level = 10 : i32, message = "hqd,hkd->hqk"}> : () -> ()
    %cst_34 = arith.constant dense<0.000000e+00> : vector<8x8x8xf32>
    %177 = tpu.matmul %142, %159, %cst_34 {dimension_numbers = #tpu.dot_dimension_numbers<[2], [2], [1], [1], [0, 0, 0, 1, 1, 1], [0], [0]>} : vector<8x8x8xbf16>, vector<8x8x8xbf16>, vector<8x8x8xf32> -> vector<8x8x8xf32>
    "tpu.trace_stop"() : () -> ()
    %cst_35 = arith.constant 0.353553385 : f32
    %178 = vector.broadcast %cst_35 : f32 to vector<8x8x8xf32>
    %179 = arith.mulf %177, %178 : vector<8x8x8xf32>
    %cst_36 = arith.constant dense<0xFF800000> : vector<8x8xf32>
    %180 = vector.multi_reduction <maximumf>, %179, %cst_36 [2] : vector<8x8x8xf32> to vector<8x8xf32>
    %181 = vector.shape_cast %180 : vector<8x8xf32> to vector<8x8x1xf32>
    %182 = vector.broadcast %181 : vector<8x8x1xf32> to vector<8x8x8xf32>
    %183 = arith.subf %179, %182 : vector<8x8x8xf32>
    %184 = math.exp %183 : vector<8x8x8xf32>
    %cst_37 = arith.constant dense<0.000000e+00> : vector<8x8xf32>
    %185 = vector.multi_reduction <add>, %184, %cst_37 [2] : vector<8x8x8xf32> to vector<8x8xf32>
    %186 = vector.shape_cast %185 : vector<8x8xf32> to vector<8x8x1xf32>
    %187 = tpu.reciprocal %186 {approx = true} : vector<8x8x1xf32> -> vector<8x8x1xf32>
    %188 = vector.broadcast %187 : vector<8x8x1xf32> to vector<8x8x8xf32>
    %189 = arith.mulf %184, %188 : vector<8x8x8xf32>
    %190 = arith.truncf %189 : vector<8x8x8xf32> to vector<8x8x8xbf16>
    "tpu.trace_start"() <{level = 10 : i32, message = "hqk,hkd->hqd"}> : () -> ()
    %cst_38 = arith.constant dense<0.000000e+00> : vector<8x8x8xf32>
    %191 = tpu.matmul %190, %176, %cst_38 {dimension_numbers = #tpu.dot_dimension_numbers<[2], [1], [1], [2], [0, 0, 0, 1, 1, 2], [0], [0]>} : vector<8x8x8xbf16>, vector<8x8x8xbf16>, vector<8x8x8xf32> -> vector<8x8x8xf32>
    "tpu.trace_stop"() : () -> ()
    %192 = vector.extract_strided_slice %191 {offsets = [0, 0, 0], sizes = [1, 8, 8], strides = [1, 1, 1]} : vector<8x8x8xf32> to vector<1x8x8xf32>
    %193 = vector.shape_cast %192 : vector<1x8x8xf32> to vector<8x8xf32>
    %194 = arith.truncf %193 : vector<8x8xf32> to vector<8x8xbf16>
    %195 = vector.extract_strided_slice %191 {offsets = [1, 0, 0], sizes = [1, 8, 8], strides = [1, 1, 1]} : vector<8x8x8xf32> to vector<1x8x8xf32>
    %196 = vector.shape_cast %195 : vector<1x8x8xf32> to vector<8x8xf32>
    %197 = arith.truncf %196 : vector<8x8xf32> to vector<8x8xbf16>
    %198 = vector.extract_strided_slice %191 {offsets = [2, 0, 0], sizes = [1, 8, 8], strides = [1, 1, 1]} : vector<8x8x8xf32> to vector<1x8x8xf32>
    %199 = vector.shape_cast %198 : vector<1x8x8xf32> to vector<8x8xf32>
    %200 = arith.truncf %199 : vector<8x8xf32> to vector<8x8xbf16>
    %201 = vector.extract_strided_slice %191 {offsets = [3, 0, 0], sizes = [1, 8, 8], strides = [1, 1, 1]} : vector<8x8x8xf32> to vector<1x8x8xf32>
    %202 = vector.shape_cast %201 : vector<1x8x8xf32> to vector<8x8xf32>
    %203 = arith.truncf %202 : vector<8x8xf32> to vector<8x8xbf16>
    %204 = vector.extract_strided_slice %191 {offsets = [4, 0, 0], sizes = [1, 8, 8], strides = [1, 1, 1]} : vector<8x8x8xf32> to vector<1x8x8xf32>
    %205 = vector.shape_cast %204 : vector<1x8x8xf32> to vector<8x8xf32>
    %206 = arith.truncf %205 : vector<8x8xf32> to vector<8x8xbf16>
    %207 = vector.extract_strided_slice %191 {offsets = [5, 0, 0], sizes = [1, 8, 8], strides = [1, 1, 1]} : vector<8x8x8xf32> to vector<1x8x8xf32>
    %208 = vector.shape_cast %207 : vector<1x8x8xf32> to vector<8x8xf32>
    %209 = arith.truncf %208 : vector<8x8xf32> to vector<8x8xbf16>
    %210 = vector.extract_strided_slice %191 {offsets = [6, 0, 0], sizes = [1, 8, 8], strides = [1, 1, 1]} : vector<8x8x8xf32> to vector<1x8x8xf32>
    %211 = vector.shape_cast %210 : vector<1x8x8xf32> to vector<8x8xf32>
    %212 = arith.truncf %211 : vector<8x8xf32> to vector<8x8xbf16>
    %213 = vector.extract_strided_slice %191 {offsets = [7, 0, 0], sizes = [1, 8, 8], strides = [1, 1, 1]} : vector<8x8x8xf32> to vector<1x8x8xf32>
    %214 = vector.shape_cast %213 : vector<1x8x8xf32> to vector<8x8xf32>
    %215 = arith.truncf %214 : vector<8x8xf32> to vector<8x8xbf16>
    %216 = tpu.concatenate %194, %197, %200, %203, %206, %209, %212, %215 in 1 : vector<8x8xbf16>, vector<8x8xbf16>, vector<8x8xbf16>, vector<8x8xbf16>, vector<8x8xbf16>, vector<8x8xbf16>, vector<8x8xbf16>, vector<8x8xbf16> -> vector<8x64xbf16>
    %cst_39 = arith.constant dense<0.000000e+00> : vector<8x64xf32>
    %217 = tpu.matmul %216, %118, %cst_39 {dimension_numbers = #tpu.dot_dimension_numbers<[1], [0], [0], [1], [0, 0, 1, 1], [], []>} : vector<8x64xbf16>, vector<64x64xbf16>, vector<8x64xf32> -> vector<8x64xf32>
    %218 = vector.broadcast %120 : vector<1x64xf32> to vector<8x64xf32>
    %219 = arith.addf %217, %218 : vector<8x64xf32>
    %220 = arith.addf %111, %219 : vector<8x64xf32>
    %c8_40 = arith.constant 8 : index
    %c0_41 = arith.constant 0 : index
    %221 = vector.load %arg9[%c8_40, %c0_41] : memref<16x64xf32, #tpu.memory_space<vmem>>, vector<8x64xf32>
    tpu.vector_store %arg9[%c8_40, %c0_41], %220 {strides = array<i32>} : memref<16x64xf32, #tpu.memory_space<vmem>>, vector<8x64xf32>,
    %c8_42 = arith.constant 8 : index
    %c0_43 = arith.constant 0 : index
    %222 = vector.load %arg9[%c8_42, %c0_43] : memref<16x64xf32, #tpu.memory_space<vmem>>, vector<8x64xf32>
    %223 = vector.extract_strided_slice %1 {offsets = [8, 0], sizes = [8, 64], strides = [1, 1]} : vector<16x64xf32> to vector<8x64xf32>
    %c0_44 = arith.constant 0 : index
    %c0_45 = arith.constant 0 : index
    %c0_46 = arith.constant 0 : index
    %224 = vector.load %arg2[%c0_44, %c0_45, %c0_46] : memref<3x64x192xbf16, #tpu.memory_space<vmem>>, vector<1x64x192xbf16>
    %225 = vector.shape_cast %224 : vector<1x64x192xbf16> to vector<64x192xbf16>
    %c0_47 = arith.constant 0 : index
    %c0_48 = arith.constant 0 : index
    %c0_49 = arith.constant 0 : index
    %226 = vector.load %arg3[%c0_47, %c0_48, %c0_49] : memref<3x1x192xf32, #tpu.memory_space<vmem>>, vector<1x1x192xf32>
    %227 = vector.shape_cast %226 : vector<1x1x192xf32> to vector<1x192xf32>
    %c0_50 = arith.constant 0 : index
    %c0_51 = arith.constant 0 : index
    %c0_52 = arith.constant 0 : index
    %228 = vector.load %arg4[%c0_50, %c0_51, %c0_52] : memref<3x64x64xbf16, #tpu.memory_space<vmem>>, vector<1x64x64xbf16>
    %229 = vector.shape_cast %228 : vector<1x64x64xbf16> to vector<64x64xbf16>
    %c0_53 = arith.constant 0 : index
    %c0_54 = arith.constant 0 : index
    %c0_55 = arith.constant 0 : index
    %230 = vector.load %arg5[%c0_53, %c0_54, %c0_55] : memref<3x1x64xf32, #tpu.memory_space<vmem>>, vector<1x1x64xf32>
    %231 = vector.shape_cast %230 : vector<1x1x64xf32> to vector<1x64xf32>
    %232 = arith.truncf %223 : vector<8x64xf32> to vector<8x64xbf16>
    %cst_56 = arith.constant dense<0.000000e+00> : vector<8x192xf32>
    %233 = tpu.matmul %232, %225, %cst_56 {dimension_numbers = #tpu.dot_dimension_numbers<[1], [0], [0], [1], [0, 0, 1, 1], [], []>} : vector<8x64xbf16>, vector<64x192xbf16>, vector<8x192xf32> -> vector<8x192xf32>
    %234 = vector.broadcast %227 : vector<1x192xf32> to vector<8x192xf32>
    %235 = arith.addf %233, %234 : vector<8x192xf32>
    %236 = arith.truncf %235 : vector<8x192xf32> to vector<8x192xbf16>
    %237 = vector.extract_strided_slice %236 {offsets = [0, 0], sizes = [8, 8], strides = [1, 1]} : vector<8x192xbf16> to vector<8x8xbf16>
    %238 = vector.extract_strided_slice %236 {offsets = [0, 8], sizes = [8, 8], strides = [1, 1]} : vector<8x192xbf16> to vector<8x8xbf16>
    %239 = vector.extract_strided_slice %236 {offsets = [0, 16], sizes = [8, 8], strides = [1, 1]} : vector<8x192xbf16> to vector<8x8xbf16>
    %240 = vector.extract_strided_slice %236 {offsets = [0, 24], sizes = [8, 8], strides = [1, 1]} : vector<8x192xbf16> to vector<8x8xbf16>
    %241 = vector.extract_strided_slice %236 {offsets = [0, 32], sizes = [8, 8], strides = [1, 1]} : vector<8x192xbf16> to vector<8x8xbf16>
    %242 = vector.extract_strided_slice %236 {offsets = [0, 40], sizes = [8, 8], strides = [1, 1]} : vector<8x192xbf16> to vector<8x8xbf16>
    %243 = vector.extract_strided_slice %236 {offsets = [0, 48], sizes = [8, 8], strides = [1, 1]} : vector<8x192xbf16> to vector<8x8xbf16>
    %244 = vector.extract_strided_slice %236 {offsets = [0, 56], sizes = [8, 8], strides = [1, 1]} : vector<8x192xbf16> to vector<8x8xbf16>
    %245 = vector.shape_cast %237 : vector<8x8xbf16> to vector<1x8x8xbf16>
    %246 = vector.shape_cast %238 : vector<8x8xbf16> to vector<1x8x8xbf16>
    %247 = vector.shape_cast %239 : vector<8x8xbf16> to vector<1x8x8xbf16>
    %248 = vector.shape_cast %240 : vector<8x8xbf16> to vector<1x8x8xbf16>
    %249 = vector.shape_cast %241 : vector<8x8xbf16> to vector<1x8x8xbf16>
    %250 = vector.shape_cast %242 : vector<8x8xbf16> to vector<1x8x8xbf16>
    %251 = vector.shape_cast %243 : vector<8x8xbf16> to vector<1x8x8xbf16>
    %252 = vector.shape_cast %244 : vector<8x8xbf16> to vector<1x8x8xbf16>
    %253 = tpu.concatenate %245, %246, %247, %248, %249, %250, %251, %252 in 0 : vector<1x8x8xbf16>, vector<1x8x8xbf16>, vector<1x8x8xbf16>, vector<1x8x8xbf16>, vector<1x8x8xbf16>, vector<1x8x8xbf16>, vector<1x8x8xbf16>, vector<1x8x8xbf16> -> vector<8x8x8xbf16>
    %254 = vector.extract_strided_slice %236 {offsets = [0, 64], sizes = [8, 8], strides = [1, 1]} : vector<8x192xbf16> to vector<8x8xbf16>
    %255 = vector.extract_strided_slice %236 {offsets = [0, 72], sizes = [8, 8], strides = [1, 1]} : vector<8x192xbf16> to vector<8x8xbf16>
    %256 = vector.extract_strided_slice %236 {offsets = [0, 80], sizes = [8, 8], strides = [1, 1]} : vector<8x192xbf16> to vector<8x8xbf16>
    %257 = vector.extract_strided_slice %236 {offsets = [0, 88], sizes = [8, 8], strides = [1, 1]} : vector<8x192xbf16> to vector<8x8xbf16>
    %258 = vector.extract_strided_slice %236 {offsets = [0, 96], sizes = [8, 8], strides = [1, 1]} : vector<8x192xbf16> to vector<8x8xbf16>
    %259 = vector.extract_strided_slice %236 {offsets = [0, 104], sizes = [8, 8], strides = [1, 1]} : vector<8x192xbf16> to vector<8x8xbf16>
    %260 = vector.extract_strided_slice %236 {offsets = [0, 112], sizes = [8, 8], strides = [1, 1]} : vector<8x192xbf16> to vector<8x8xbf16>
    %261 = vector.extract_strided_slice %236 {offsets = [0, 120], sizes = [8, 8], strides = [1, 1]} : vector<8x192xbf16> to vector<8x8xbf16>
    %262 = vector.shape_cast %254 : vector<8x8xbf16> to vector<1x8x8xbf16>
    %263 = vector.shape_cast %255 : vector<8x8xbf16> to vector<1x8x8xbf16>
    %264 = vector.shape_cast %256 : vector<8x8xbf16> to vector<1x8x8xbf16>
    %265 = vector.shape_cast %257 : vector<8x8xbf16> to vector<1x8x8xbf16>
    %266 = vector.shape_cast %258 : vector<8x8xbf16> to vector<1x8x8xbf16>
    %267 = vector.shape_cast %259 : vector<8x8xbf16> to vector<1x8x8xbf16>
    %268 = vector.shape_cast %260 : vector<8x8xbf16> to vector<1x8x8xbf16>
    %269 = vector.shape_cast %261 : vector<8x8xbf16> to vector<1x8x8xbf16>
    %270 = tpu.concatenate %262, %263, %264, %265, %266, %267, %268, %269 in 0 : vector<1x8x8xbf16>, vector<1x8x8xbf16>, vector<1x8x8xbf16>, vector<1x8x8xbf16>, vector<1x8x8xbf16>, vector<1x8x8xbf16>, vector<1x8x8xbf16>, vector<1x8x8xbf16> -> vector<8x8x8xbf16>
    %271 = vector.extract_strided_slice %236 {offsets = [0, 128], sizes = [8, 8], strides = [1, 1]} : vector<8x192xbf16> to vector<8x8xbf16>
    %272 = vector.extract_strided_slice %236 {offsets = [0, 136], sizes = [8, 8], strides = [1, 1]} : vector<8x192xbf16> to vector<8x8xbf16>
    %273 = vector.extract_strided_slice %236 {offsets = [0, 144], sizes = [8, 8], strides = [1, 1]} : vector<8x192xbf16> to vector<8x8xbf16>
    %274 = vector.extract_strided_slice %236 {offsets = [0, 152], sizes = [8, 8], strides = [1, 1]} : vector<8x192xbf16> to vector<8x8xbf16>
    %275 = vector.extract_strided_slice %236 {offsets = [0, 160], sizes = [8, 8], strides = [1, 1]} : vector<8x192xbf16> to vector<8x8xbf16>
    %276 = vector.extract_strided_slice %236 {offsets = [0, 168], sizes = [8, 8], strides = [1, 1]} : vector<8x192xbf16> to vector<8x8xbf16>
    %277 = vector.extract_strided_slice %236 {offsets = [0, 176], sizes = [8, 8], strides = [1, 1]} : vector<8x192xbf16> to vector<8x8xbf16>
    %278 = vector.extract_strided_slice %236 {offsets = [0, 184], sizes = [8, 8], strides = [1, 1]} : vector<8x192xbf16> to vector<8x8xbf16>
    %279 = vector.shape_cast %271 : vector<8x8xbf16> to vector<1x8x8xbf16>
    %280 = vector.shape_cast %272 : vector<8x8xbf16> to vector<1x8x8xbf16>
    %281 = vector.shape_cast %273 : vector<8x8xbf16> to vector<1x8x8xbf16>
    %282 = vector.shape_cast %274 : vector<8x8xbf16> to vector<1x8x8xbf16>
    %283 = vector.shape_cast %275 : vector<8x8xbf16> to vector<1x8x8xbf16>
    %284 = vector.shape_cast %276 : vector<8x8xbf16> to vector<1x8x8xbf16>
    %285 = vector.shape_cast %277 : vector<8x8xbf16> to vector<1x8x8xbf16>
    %286 = vector.shape_cast %278 : vector<8x8xbf16> to vector<1x8x8xbf16>
    %287 = tpu.concatenate %279, %280, %281, %282, %283, %284, %285, %286 in 0 : vector<1x8x8xbf16>, vector<1x8x8xbf16>, vector<1x8x8xbf16>, vector<1x8x8xbf16>, vector<1x8x8xbf16>, vector<1x8x8xbf16>, vector<1x8x8xbf16>, vector<1x8x8xbf16> -> vector<8x8x8xbf16>
    "tpu.trace_start"() <{level = 10 : i32, message = "hqd,hkd->hqk"}> : () -> ()
    %cst_57 = arith.constant dense<0.000000e+00> : vector<8x8x8xf32>
    %288 = tpu.matmul %253, %270, %cst_57 {dimension_numbers = #tpu.dot_dimension_numbers<[2], [2], [1], [1], [0, 0, 0, 1, 1, 1], [0], [0]>} : vector<8x8x8xbf16>, vector<8x8x8xbf16>, vector<8x8x8xf32> -> vector<8x8x8xf32>
    "tpu.trace_stop"() : () -> ()
    %cst_58 = arith.constant 0.353553385 : f32
    %289 = vector.broadcast %cst_58 : f32 to vector<8x8x8xf32>
    %290 = arith.mulf %288, %289 : vector<8x8x8xf32>
    %291 = tpu.iota {dimensions = array<i32: 1>} : vector<8x8xi32>
    %c4_i32 = arith.constant 4 : i32
    %292 = vector.broadcast %c4_i32 : i32 to vector<8x8xi32>
    %293 = arith.cmpi sge, %291, %292 : vector<8x8xi32>
    %cst_59 = arith.constant -1.000000e+30 : f32
    %294 = vector.shape_cast %293 : vector<8x8xi1> to vector<1x8x8xi1>
    %295 = vector.broadcast %294 : vector<1x8x8xi1> to vector<8x8x8xi1>
    %296 = vector.broadcast %cst_59 : f32 to vector<8x8x8xf32>
    %297 = arith.select %295, %290, %296 : vector<8x8x8xi1>, vector<8x8x8xf32>
    %cst_60 = arith.constant dense<0xFF800000> : vector<8x8xf32>
    %298 = vector.multi_reduction <maximumf>, %297, %cst_60 [2] : vector<8x8x8xf32> to vector<8x8xf32>
    %299 = vector.shape_cast %298 : vector<8x8xf32> to vector<8x8x1xf32>
    %300 = vector.broadcast %299 : vector<8x8x1xf32> to vector<8x8x8xf32>
    %301 = arith.subf %297, %300 : vector<8x8x8xf32>
    %302 = math.exp %301 : vector<8x8x8xf32>
    %cst_61 = arith.constant dense<0.000000e+00> : vector<8x8xf32>
    %303 = vector.multi_reduction <add>, %302, %cst_61 [2] : vector<8x8x8xf32> to vector<8x8xf32>
    %304 = vector.shape_cast %303 : vector<8x8xf32> to vector<8x8x1xf32>
    %305 = tpu.reciprocal %304 {approx = true} : vector<8x8x1xf32> -> vector<8x8x1xf32>
    %306 = vector.broadcast %305 : vector<8x8x1xf32> to vector<8x8x8xf32>
    %307 = arith.mulf %302, %306 : vector<8x8x8xf32>
    %308 = arith.truncf %307 : vector<8x8x8xf32> to vector<8x8x8xbf16>
    "tpu.trace_start"() <{level = 10 : i32, message = "hqk,hkd->hqd"}> : () -> ()
    %cst_62 = arith.constant dense<0.000000e+00> : vector<8x8x8xf32>
    %309 = tpu.matmul %308, %287, %cst_62 {dimension_numbers = #tpu.dot_dimension_numbers<[2], [1], [1], [2], [0, 0, 0, 1, 1, 2], [0], [0]>} : vector<8x8x8xbf16>, vector<8x8x8xbf16>, vector<8x8x8xf32> -> vector<8x8x8xf32>
    "tpu.trace_stop"() : () -> ()
    %310 = vector.extract_strided_slice %309 {offsets = [0, 0, 0], sizes = [1, 8, 8], strides = [1, 1, 1]} : vector<8x8x8xf32> to vector<1x8x8xf32>
    %311 = vector.shape_cast %310 : vector<1x8x8xf32> to vector<8x8xf32>
    %312 = arith.truncf %311 : vector<8x8xf32> to vector<8x8xbf16>
    %313 = vector.extract_strided_slice %309 {offsets = [1, 0, 0], sizes = [1, 8, 8], strides = [1, 1, 1]} : vector<8x8x8xf32> to vector<1x8x8xf32>
    %314 = vector.shape_cast %313 : vector<1x8x8xf32> to vector<8x8xf32>
    %315 = arith.truncf %314 : vector<8x8xf32> to vector<8x8xbf16>
    %316 = vector.extract_strided_slice %309 {offsets = [2, 0, 0], sizes = [1, 8, 8], strides = [1, 1, 1]} : vector<8x8x8xf32> to vector<1x8x8xf32>
    %317 = vector.shape_cast %316 : vector<1x8x8xf32> to vector<8x8xf32>
    %318 = arith.truncf %317 : vector<8x8xf32> to vector<8x8xbf16>
    %319 = vector.extract_strided_slice %309 {offsets = [3, 0, 0], sizes = [1, 8, 8], strides = [1, 1, 1]} : vector<8x8x8xf32> to vector<1x8x8xf32>
    %320 = vector.shape_cast %319 : vector<1x8x8xf32> to vector<8x8xf32>
    %321 = arith.truncf %320 : vector<8x8xf32> to vector<8x8xbf16>
    %322 = vector.extract_strided_slice %309 {offsets = [4, 0, 0], sizes = [1, 8, 8], strides = [1, 1, 1]} : vector<8x8x8xf32> to vector<1x8x8xf32>
    %323 = vector.shape_cast %322 : vector<1x8x8xf32> to vector<8x8xf32>
    %324 = arith.truncf %323 : vector<8x8xf32> to vector<8x8xbf16>
    %325 = vector.extract_strided_slice %309 {offsets = [5, 0, 0], sizes = [1, 8, 8], strides = [1, 1, 1]} : vector<8x8x8xf32> to vector<1x8x8xf32>
    %326 = vector.shape_cast %325 : vector<1x8x8xf32> to vector<8x8xf32>
    %327 = arith.truncf %326 : vector<8x8xf32> to vector<8x8xbf16>
    %328 = vector.extract_strided_slice %309 {offsets = [6, 0, 0], sizes = [1, 8, 8], strides = [1, 1, 1]} : vector<8x8x8xf32> to vector<1x8x8xf32>
    %329 = vector.shape_cast %328 : vector<1x8x8xf32> to vector<8x8xf32>
    %330 = arith.truncf %329 : vector<8x8xf32> to vector<8x8xbf16>
    %331 = vector.extract_strided_slice %309 {offsets = [7, 0, 0], sizes = [1, 8, 8], strides = [1, 1, 1]} : vector<8x8x8xf32> to vector<1x8x8xf32>
    %332 = vector.shape_cast %331 : vector<1x8x8xf32> to vector<8x8xf32>
    %333 = arith.truncf %332 : vector<8x8xf32> to vector<8x8xbf16>
    %334 = tpu.concatenate %312, %315, %318, %321, %324, %327, %330, %333 in 1 : vector<8x8xbf16>, vector<8x8xbf16>, vector<8x8xbf16>, vector<8x8xbf16>, vector<8x8xbf16>, vector<8x8xbf16>, vector<8x8xbf16>, vector<8x8xbf16> -> vector<8x64xbf16>
    %cst_63 = arith.constant dense<0.000000e+00> : vector<8x64xf32>
    %335 = tpu.matmul %334, %229, %cst_63 {dimension_numbers = #tpu.dot_dimension_numbers<[1], [0], [0], [1], [0, 0, 1, 1], [], []>} : vector<8x64xbf16>, vector<64x64xbf16>, vector<8x64xf32> -> vector<8x64xf32>
    %336 = vector.broadcast %231 : vector<1x64xf32> to vector<8x64xf32>
    %337 = arith.addf %335, %336 : vector<8x64xf32>
    %338 = tpu.iota {dimensions = array<i32: 0>} : vector<8x1xi32>
    %c4_i32_64 = arith.constant 4 : i32
    %339 = vector.broadcast %c4_i32_64 : i32 to vector<8x1xi32>
    %340 = arith.cmpi sge, %338, %339 : vector<8x1xi32>
    %cst_65 = arith.constant 0.000000e+00 : f32
    %341 = vector.shape_cast %340 : vector<8x1xi1> to vector<8x1xi1>
    %342 = vector.broadcast %341 : vector<8x1xi1> to vector<8x64xi1>
    %343 = vector.broadcast %cst_65 : f32 to vector<8x64xf32>
    %344 = arith.select %342, %337, %343 : vector<8x64xi1>, vector<8x64xf32>
    %345 = arith.addf %222, %344 : vector<8x64xf32>
    %c8_66 = arith.constant 8 : index
    %c0_67 = arith.constant 0 : index
    %346 = vector.load %arg9[%c8_66, %c0_67] : memref<16x64xf32, #tpu.memory_space<vmem>>, vector<8x64xf32>
    tpu.vector_store %arg9[%c8_66, %c0_67], %345 {strides = array<i32>} : memref<16x64xf32, #tpu.memory_space<vmem>>, vector<8x64xf32>,
    %c0_68 = arith.constant 0 : index
    %c0_69 = arith.constant 0 : index
    %347 = vector.load %arg9[%c0_68, %c0_69] : memref<16x64xf32, #tpu.memory_space<vmem>>, vector<16x64xf32>
    %cst_70 = arith.constant dense<0.000000e+00> : vector<16xf32>
    %348 = vector.multi_reduction <add>, %347, %cst_70 [1] : vector<16x64xf32> to vector<16xf32>
    %349 = vector.shape_cast %348 : vector<16xf32> to vector<16x1xf32>
    %cst_71 = arith.constant 6.400000e+01 : f32
    %350 = vector.broadcast %cst_71 : f32 to vector<16x1xf32>
    %351 = arith.divf %349, %350 : vector<16x1xf32>
    %352 = vector.broadcast %351 : vector<16x1xf32> to vector<16x64xf32>
    %353 = arith.subf %347, %352 : vector<16x64xf32>
    %354 = arith.mulf %353, %353 : vector<16x64xf32>
    %cst_72 = arith.constant dense<0.000000e+00> : vector<16xf32>
    %355 = vector.multi_reduction <add>, %354, %cst_72 [1] : vector<16x64xf32> to vector<16xf32>
    %356 = vector.shape_cast %355 : vector<16xf32> to vector<16x1xf32>
    %cst_73 = arith.constant 6.400000e+01 : f32
    %357 = vector.broadcast %cst_73 : f32 to vector<16x1xf32>
    %358 = arith.divf %356, %357 : vector<16x1xf32>
    %359 = vector.broadcast %351 : vector<16x1xf32> to vector<16x64xf32>
    %360 = arith.subf %347, %359 : vector<16x64xf32>
    %cst_74 = arith.constant 9.99999974E-6 : f32
    %361 = vector.broadcast %cst_74 : f32 to vector<16x1xf32>
    %362 = arith.addf %358, %361 : vector<16x1xf32>
    %363 = math.rsqrt %362 : vector<16x1xf32>
    %364 = vector.broadcast %363 : vector<16x1xf32> to vector<16x64xf32>
    %365 = arith.mulf %360, %364 : vector<16x64xf32>
    %c0_75 = arith.constant 0 : index
    %c0_76 = arith.constant 0 : index
    %366 = vector.load %arg6[%c0_75, %c0_76] : memref<1x64xf32, #tpu.memory_space<vmem>>, vector<1x64xf32>
    %367 = vector.broadcast %366 : vector<1x64xf32> to vector<16x64xf32>
    %368 = arith.mulf %365, %367 : vector<16x64xf32>
    %c0_77 = arith.constant 0 : index
    %c0_78 = arith.constant 0 : index
    %369 = vector.load %arg7[%c0_77, %c0_78] : memref<1x64xf32, #tpu.memory_space<vmem>>, vector<1x64xf32>
    %370 = vector.broadcast %369 : vector<1x64xf32> to vector<16x64xf32>
    %371 = arith.addf %368, %370 : vector<16x64xf32>
    %c0_79 = arith.constant 0 : index
    %c0_80 = arith.constant 0 : index
    %c0_81 = arith.constant 0 : index
    %372 = vector.load %arg8[%c0_79, %c0_80, %c0_81] : memref<1x16x64xf32, #tpu.memory_space<vmem>>, vector<1x16x64xf32>
    %373 = vector.shape_cast %372 : vector<1x16x64xf32> to vector<16x64xf32>
    %374 = vector.shape_cast %371 : vector<16x64xf32> to vector<1x16x64xf32>
    tpu.vector_store %arg8[%c0_79, %c0_80, %c0_81], %374 {strides = array<i32>} : memref<1x16x64xf32, #tpu.memory_space<vmem>>, vector<1x16x64xf32>,
    return
  }
  func.func @transform_0(%arg0: i32) -> (i32, i32, i32) {
    %c0_i32 = arith.constant 0 : i32
    %c0_i32_0 = arith.constant 0 : i32
    %c0_i32_1 = arith.constant 0 : i32
    return %arg0, %c0_i32, %c0_i32_0 : i32, i32, i32
  }
  func.func @transform_1(%arg0: i32) -> (i32, i32, i32) {
    %c0_i32 = arith.constant 0 : i32
    %c0_i32_0 = arith.constant 0 : i32
    %c0_i32_1 = arith.constant 0 : i32
    %c0_i32_2 = arith.constant 0 : i32
    return %c0_i32, %c0_i32_0, %c0_i32_1 : i32, i32, i32
  }
  func.func @transform_2(%arg0: i32) -> (i32, i32, i32) {
    %c0_i32 = arith.constant 0 : i32
    %c0_i32_0 = arith.constant 0 : i32
    %c0_i32_1 = arith.constant 0 : i32
    %c0_i32_2 = arith.constant 0 : i32
    return %c0_i32, %c0_i32_0, %c0_i32_1 : i32, i32, i32
  }
  func.func @transform_3(%arg0: i32) -> (i32, i32, i32) {
    %c0_i32 = arith.constant 0 : i32
    %c0_i32_0 = arith.constant 0 : i32
    %c0_i32_1 = arith.constant 0 : i32
    %c0_i32_2 = arith.constant 0 : i32
    return %c0_i32, %c0_i32_0, %c0_i32_1 : i32, i32, i32
  }
  func.func @transform_4(%arg0: i32) -> (i32, i32, i32) {
    %c0_i32 = arith.constant 0 : i32
    %c0_i32_0 = arith.constant 0 : i32
    %c0_i32_1 = arith.constant 0 : i32
    %c0_i32_2 = arith.constant 0 : i32
    return %c0_i32, %c0_i32_0, %c0_i32_1 : i32, i32, i32
  }
  func.func @transform_5(%arg0: i32) -> (i32, i32) {
    %c0_i32 = arith.constant 0 : i32
    %c0_i32_0 = arith.constant 0 : i32
    %c0_i32_1 = arith.constant 0 : i32
    return %c0_i32, %c0_i32_0 : i32, i32
  }
  func.func @transform_6(%arg0: i32) -> (i32, i32) {
    %c0_i32 = arith.constant 0 : i32
    %c0_i32_0 = arith.constant 0 : i32
    %c0_i32_1 = arith.constant 0 : i32
    return %c0_i32, %c0_i32_0 : i32, i32
  }
  func.func @transform_7(%arg0: i32) -> (i32, i32, i32) {
    %c0_i32 = arith.constant 0 : i32
    %c0_i32_0 = arith.constant 0 : i32
    %c0_i32_1 = arith.constant 0 : i32
    return %arg0, %c0_i32, %c0_i32_0 : i32, i32, i32
  }
}

</mosaic_0001>

<bundles_post_ra>
// kernel: tpu_custom_call.1
= control target key start
LH: loop header
LB: loop body
LE: loop exit
PB: predicated region body
PF: predicated region fallthrough
CT: control target
= control target key end

     0   :  { %s6157_s0 = inlined_call_operand.hbm [shape: f32[2,16,64], index: 0, kind: input, shape index: {}]   ;;  %s6158_s1 = inlined_call_operand.hbm [shape: bf16[3,64,192], index: 1, kind: input, shape index: {}]   ;;  %s6159_s2 = inlined_call_operand.hbm [shape: f32[3,1,192], index: 2, kind: input, shape index: {}]   ;;  %s6160_s3 = inlined_call_operand.hbm [shape: bf16[3,64,64], index: 3, kind: input, shape index: {}]   ;;  %s6161_s4 = inlined_call_operand.vmem [shape: f32[3,1,64], index: 4, kind: input, shape index: {}]   ;;  %s6162_s5 = inlined_call_operand.vmem [shape: f32[1,64], index: 5, kind: input, shape index: {}]   ;;  %s6163_s6 = inlined_call_operand.vmem [shape: f32[1,64], index: 6, kind: input, shape index: {}]   ;;  %s6164_s7 = inlined_call_operand.hbm [shape: f32[2,16,64], index: 7, kind: output, shape index: {}]  }
   0x1   :  { %6182 = sst [smem:[#allocation16_spill]] %s6158_s1 }
   0x2   :  { %12 = vsyncpa [#allocation4], 0 }
   0x3   :  { %14 = vsyncpa [#allocation4 + $0x1], 0 }
   0x4   :  { %15 = vsyncpa [#allocation7], 0 }
   0x5   :  { %16 = vsyncpa [#allocation10], 0 }
   0x6   :  { %17 = vsyncpa [#allocation5], 0 }
   0x7   :  { %19 = vsyncpa [#allocation5 + $0x1], 0  ;;  %s5091_s24 = smov 0   ;;  %s5093_s25 = smov 0  }
   0x8   :  { %s5095_s26 = smov 0   ;;  %s5097_s27 = smov 0  }
   0x9 LB: > { %s5112_s28 = sadd.s32 4294967295, %s5019_s27   ;;  %s4003_s29 = sadd.s32 4294967294, %s5019_s27   ;;  %s5019_s27 = sphi %s5097_s27, %s6211_s27   ;;  %s5015_s26 = sphi %s5095_s26, %s6210_s26   ;;  %s5011_s25 = sphi %s5093_s25, %s6209_s25   ;;  %s5007_s24 = sphi %s5091_s24, %s6208_s24  }
   0xa   : > { %p45_p0 = scmp.ne.s32.totalorder %s5011_s25, %s5007_s24  ;;  %p6166_p1 = scmp.eq.s32.totalorder %s5112_s28, 0 }
   0xb   : > { %p195_p2 = scmp.eq.s32.totalorder %s5112_s28, 1  ;;  %p201_p3 = scmp.eq.s32.totalorder %s4003_s29, 1 }
   0xc   : > { %p5121_p4 = por %p6166_p1, %p45_p0  ;;  %p4004_p5 = scmp.ge.s32.totalorder %s5019_s27, 1 }
   0xd   : > { %p5126_p6 = por %p201_p3, %p45_p0  ;;  %p208_p7 = scmp.lt.s32.totalorder %s5019_s27, 3 }
   0xe   : > { %s6183_s30 = scalar_select %p5121_p4, 1, 0 }
   0xf   : > { %s6184_s8 = scalar_select %p5126_p6, 1, 0 }
  0x10   : > { %p5131_p8 = pnand %p4004_p5, %p208_p7  ;;  %s5021_s10 = smov [#allocation6]  }
  0x11   : > { %s220_s11 = sshll.u32 %s5021_s10, 4  ;;  %s5022_s13 = smov [#allocation8]   ;;  %s221_s11 = int_to_ptr.vmem [resolvable:$true] %s220_s11 }
  0x12   : > { %s6185_s9 = scalar_select %p5131_p8, 1, 0 }
  0x13   : > { %p4573_p9 = pneg %p5131_p8  ;;  %s233_s14 = sshll.u32 %s5022_s13, 4  ;;  %s234_s14 = int_to_ptr.vmem [resolvable:$true] %s233_s14 }
  0x14   : > { %s4852_s15 = scalar_lea.vmem %s221_s11, 3072  ;;  %p4860_p5 = scmp.lt.s32.totalorder %s221_s11, %s221_s11 }
  0x15   : > { %p5140_p11 = pnand %p4573_p9, %p6166_p1  ;;  %p4853_p13 = scmp.ne.s32.totalorder %s221_s11, %s4852_s15 }
  0x16   : > { %p4861_p7 = scmp.lt.s32.totalorder %s4852_s15, %s4852_s15 }
  0x17   : > { %p4843_p12 = pneg %p5140_p11 }
  0x18   : > { %p4862_p10 = por %p4861_p7, %p4860_p5 }
  0x19   : > { %p4855_p0 = pnand %p4853_p13, %p4843_p12 }
  0x1b   : > { %p4856_p3 = pneg %p4855_p0 }
  0x1d   : > { %p4863_p9 = pnand %p4862_p10, %p4856_p3 }
  0x1f   : > { %4866 = shalt.err (!%p4863_p9)
}
  0x20   : > { %s6165_s16 = smov 128   ;;  %s6167_s17 = smov 8  }
  0x21   : > { %s6187_s1 = sld [smem:[#allocation16_spill]]  ;;  %s4878_s20 = scalar_lea.vmem %s234_s14, 96 }
  0x22   : > { %p4879_p13 = scmp.ne.s32.totalorder %s234_s14, %s4878_s20  ;;  %p4886_p10 = scmp.lt.s32.totalorder %s234_s14, %s234_s14 }
  0x23   : > { %p4887_p3 = scmp.lt.s32.totalorder %s4878_s20, %s4878_s20 }
  0x24   : > { %p4881_p0 = pnand %p4879_p13, %p4843_p12 }
  0x25   : > { %p4888_p7 = por %p4887_p3, %p4886_p10 }
  0x26   : > { %p4882_p5 = pneg %p4881_p0 }
  0x27   : > { %4576 = dma.hbm_to_vmem [thread:$0]  (!%p5140_p11), %s6187_s1, 3072, %s221_s11, [#allocation7], %s6165_s16, %s6165_s16, %s6167_s17  }
  0x28   : > { %p4889_p9 = pnand %p4888_p7, %p4882_p5 }
  0x2a   : > { %4892 = shalt.err (!%p4889_p9)
}
  0x2b   : > { %s5025_s21 = smov 32   ;;  %s5026_s22 = smov 2  }
  0x2c   : > { %4579 = dma.hbm_to_vmem [thread:$0]  (!%p5140_p11), %s6159_s2, 96, %s234_s14, [#allocation7], %s5025_s21, %s5025_s21, %s5026_s22  }
  0x2d   : > { %s5027_s10 = smov [#allocation9]  }
  0x2e   : > { %s246_s11 = sshll.u32 %s5027_s10, 4  ;;  %s247_s11 = int_to_ptr.vmem [resolvable:$true] %s246_s11 }
  0x2f   : > { %s4904_s13 = scalar_lea.vmem %s247_s11, 1536  ;;  %p4912_p5 = scmp.lt.s32.totalorder %s247_s11, %s247_s11 }
  0x30   : > { %p4905_p13 = scmp.ne.s32.totalorder %s247_s11, %s4904_s13  ;;  %p4913_p3 = scmp.lt.s32.totalorder %s4904_s13, %s4904_s13 }
  0x32   : > { %p4907_p0 = pnand %p4905_p13, %p4843_p12  ;;  %p4914_p7 = por %p4913_p3, %p4912_p5 }
  0x34   : > { %p4908_p10 = pneg %p4907_p0 }
  0x36   : > { %p4915_p9 = pnand %p4914_p7, %p4908_p10 }
  0x38   : > { %4918 = shalt.err (!%p4915_p9)
}
  0x39   : > { %s5028_s15 = smov 64   ;;  %s5029_s14 = smov 4  }
  0x3a   : > { %4582 = dma.hbm_to_vmem [thread:$0]  (!%p5140_p11), %s6160_s3, 1536, %s247_s11, [#allocation10], %s5028_s15, %s5028_s15, %s5029_s14  }
  0x3b   : > { %s5174_s20 = sadd.s32 1, %s5019_s27   ;;  %s32_s22 = sadd.s32 1, %s5015_s26 }
  0x3c   : > { %s29_s21 = ssub.s32 %s5019_s27, %s5174_s20  ;;  %p39_p13 = scmp.ne.s32.totalorder %s5015_s26, %s5011_s25 }
  0x3d   : > { %p30_p12 = scmp.eq.s32.totalorder %s29_s21, 0  ;;  %p40_p0 = scmp.eq.s32.totalorder %s5019_s27, 0 }
  0x3e   : > { %p4594_p10 = scmp.lt.s32.totalorder %s5019_s27, 2  ;;  %p5188_p3 = por %p195_p2, %p39_p13 }
  0x3f   : > { %s5184_s23 = scalar_select %p30_p12, %s5015_s26, %s32_s22  }
  0x40   : > { %p41_p5 = por %p40_p0, %p39_p13  ;;  %s269_s12 = sand.u32 1, %s5015_s26  }
  0x41   : > { %s6188_s29 = scalar_select %p5188_p3, 1, 0 }
  0x42   : > { %s4120_s10 = sshll.u32 %s5019_s27, 8  ;;  %s4009_s11 = sshll.u32 %s269_s12, 4 }
  0x43   : > { %s5197_s14 = scalar_lea.hbm %s6157_s0, %s4120_s10  ;;  %s273_s18 = scalar_lea.vmem [#allocation3], %s4009_s11 }
  0x44   : > { %s280_s19 = sshll.u32 %s273_s18, 4  ;;  %p5199_p11 = pnand %p4594_p10, %p41_p5  ;;  %s5203_s19 = int_to_ptr.vmem [resolvable:$true] %s280_s19 }
  0x45   : > { %s5205_s22 = scalar_lea.sflag [#allocation4], %s269_s12  ;;  %s4919_s16 = scalar_lea.hbm %s5197_s14, 256 }
  0x46   : > { %p4920_p2 = scmp.ne.s32.totalorder %s5197_s14, %s4919_s16  ;;  %p4921_p7 = pneg %p5199_p11 }
  0x47   : > { %s4924_s11 = scalar_lea.hbm %s6157_s0, 512  ;;  %p4925_p13 = scmp.lt.s32.totalorder %s5197_s14, %s6157_s0 }
  0x48   : > { %p4922_p9 = pnand %p4921_p7, %p4920_p2  ;;  %p4926_p0 = scmp.lt.s32.totalorder %s4924_s11, %s4919_s16 }
  0x4a   : > { %p4923_p12 = pneg %p4922_p9  ;;  %p4927_p10 = por %p4926_p0, %p4925_p13 }
  0x4c   : > { %p4928_p5 = pnand %p4927_p10, %p4923_p12 }
  0x4e   : > { %4931 = shalt.err (!%p4928_p5)
}
  0x4f   : > { %s4932_s12 = scalar_lea.vmem %s5203_s19, 256  ;;  %s5030_s17 = smov [#allocation3]  }
  0x50   : > { %p4933_p1 = scmp.ne.s32.totalorder %s5203_s19, %s4932_s12  ;;  %s4937_s1 = sshll.u32 %s5030_s17, 4  ;;  %s4938_s1 = int_to_ptr.vmem [resolvable:$false] %s4937_s1 }
  0x51   : > { %s4939_s10 = scalar_lea.vmem %s4938_s1, 512  ;;  %p4940_p9 = scmp.lt.s32.totalorder %s5203_s19, %s4938_s1 }
  0x52   : > { %p4935_p6 = pnand %p4933_p1, %p4921_p7  ;;  %p4941_p3 = scmp.lt.s32.totalorder %s4939_s10, %s4932_s12 }
  0x54   : > { %p4936_p2 = pneg %p4935_p6  ;;  %p4942_p4 = por %p4941_p3, %p4940_p9 }
  0x56   : > { %p4943_p8 = pnand %p4942_p4, %p4936_p2 }
  0x58   : > { %4946 = shalt.err (!%p4943_p8)
}
  0x59   : > { %s6190_s16 = smov 8   ;;  %s6191_s13 = smov 128  }
  0x5a   : > { %4586 = dma.hbm_to_vmem [thread:$0]  (!%p5199_p11), %s5197_s14, 256, %s5203_s19, %s5205_s22, %s6191_s13, %s6191_s13, %s6190_s16  }
  0x5b   : > { %p6192_p1 = scmp.ne.s32.totalorder %s6185_s9, 0 }
  0x5c   : > { %s5232_s17 = sand.u32 (!%p6192_p1), 1, %s5011_s25   ;;  %p6193_p4 = scmp.ne.s32.totalorder (!%p6192_p1), %s6183_s30, 0 }
  0x5d   : > { %292 = sbr.rel (%p6192_p1) target bundleno = 3974 (0xf86), region = 48  ;;  %s6171_s1 = sshll.u32 (!%p6192_p1), %s5232_s17, 4 }
  0x5e   : > { %s295_s11 = scalar_lea.sflag (!%p6192_p1), [#allocation4], %s5232_s17  ;;  %s5238_s21 = scalar_lea.vmem (!%p6192_p1), [#allocation3], %s6171_s1 }
  0x62   : > { %4990 = dma.done.wait (%p6193_p4), %s295_s11, 256  }
  0x63   : > { %4992 = vsyncadd (%p6193_p4), %s295_s11, 4294967040  ;;  %p6194_p6 = scmp.eq.s32.totalorder %s5112_s28, 0 }
  0x65   : > { %4994 = dma.done.wait (%p6194_p6), [#allocation7], 3168   ;;  %p6195_p8 = pmov %p6194_p6 }
  0x66   : > { %p6196_p3 = pmov %p6194_p6 }
  0x67   : > { %4996 = vsyncadd (%p6195_p8), [#allocation7], 4294964128 }
  0x68   : > { %4998 = dma.done.wait (%p6196_p3), [#allocation10], 1536   ;;  %p6197_p11 = pmov %p6196_p3 }
  0x69   : > { %v5031_v0 = vmov 0   ;;  %v4659_v1 = vld [vmem:[#allocation6 + $0xb4] ss:$8 sps:$4 sm:$0xff]   ;;  %v4661_v2 = vld [vmem:[#allocation6 + $0xb0] ss:$8 sps:$4 sm:$0xff]   ;;  %vm418_vm0 = vcmask 523264   ;;  %v368_v12 = vlaneseq }
  0x6a   : > { %5000 = vsyncadd (%p6197_p11), [#allocation10], 4294965760  ;;  %454 = vmatprep.mubr.bf16.mxu0 %v5031_v0  ;;  %430 = vmatprep.subr.bf16.mxu0 %v4659_v1  ;;  %v4662_v3 = vld [vmem:[#allocation6 + $0xa4] ss:$8 sps:$4 sm:$0xff]   ;;  %v4664_v4 = vld [vmem:[#allocation6 + $0xa0] ss:$8 sps:$4 sm:$0xff]  }
  0x6b   : > { %431 = vmatpush1.bf16.msra.mxu0 %v4661_v2  ;;  %v4665_v5 = vld [vmem:[#allocation6 + $0x94] ss:$8 sps:$4 sm:$0xff]   ;;  %v4667_v6 = vld [vmem:[#allocation6 + $0x90] ss:$8 sps:$4 sm:$0xff]   ;;  %v4668_v7 = vld [vmem:[#allocation6 + $0x84] ss:$8 sps:$4 sm:$0xff]  }
  0x6c   : > { %432 = vmatprep.subr.bf16.mxu0 %v4662_v3  ;;  %v4670_v8 = vld [vmem:[#allocation6 + $0x80] ss:$8 sps:$4 sm:$0xff]   ;;  %v5260_v13 = vshrl.u32 %v368_v12, 7  ;;  %v5265_v15 = vld [vmem:[#allocation8 + $0x4] sm:$0x3]  ;;  %v5032_v20 = vmov 0.0  }
  0x6d   : > { %v342_v9 = vld [vmem:[%s5238_s21] sm:$0xff]  ;;  %v5255_v10 = vld [vmem:[%s5238_s21 + $0x8] sm:$0xff]  ;;  %4233 = vmatprep.subr.bf16.mxu1 %v5032_v20  ;;  %s5033_s30 = smov 104   ;;  %s5034_s9 = smov 120   ;;  %vm5035_vm1 = vmmov 0   ;;  %vm506_vm2 = vcmask 64512  }
  0x6e   : > { %v366_v11 = vpack.c.bf16 %v5255_v10, %v342_v9  ;;  %v5263_v14 = vsub.s32 0, %v5260_v13  ;;  %4235 = vmatprep.mubr.msk.bf16.mxu1 %vm5035_vm1, %v5032_v20  ;;  %s5036_s14 = smov 88   ;;  %s5037_s19 = smov 112   ;;  %v5329_v49 = vsub.s32 1, %v5260_v13  ;;  %vm913_vm3 = vcmask 130048  }
  0x6f   : > { %433 = vmatpush1.bf16.msra.mxu0 %v4664_v4  ;;  %s6176_s22 = smov 64   ;;  %s5039_s15 = smov 72   ;;  %vm1484_vm4 = vcmask 195584   ;;  %vm1487_vm5 = vcmask 261120   ;;  %vm1490_vm6 = vcmask 326656   ;;  %vm1493_vm7 = vcmask 392192  }
  0x70   : > { %434 = vmatprep.subr.bf16.mxu0 %v4665_v5  ;;  %v371_v17 = vrot.slane %v5265_v15, %v5263_v14  ;;  %s5040_s18 = smov 96   ;;  %s5041_s12 = smov 80   ;;  %v375_v53 = vrot.slane %v5265_v15, %v5329_v49  ;;  %vm1496_vm8 = vcmask 457728   ;;  %vm2218_vm9 = vcmask 1043456  }
  0x71   : > { %s5042_s10 = smov 8   ;;  %s6180_s16 = smov 24   ;;  %vm3832_vm11 = vcmp.ge.s32.totalorder %v5260_v13, 4 }
  0x72   : > { %s6174_s13 = smov 40   ;;  %s6172_s11 = smov 56  }
  0x73   : > { %435 = vmatpush1.bf16.msra.mxu0 %v4667_v6  ;;  %s5046_s1 = smov 16   ;;  %p6205_p12 = scmp.ne.s32.totalorder %s6188_s29, 0 }
  0x74   : > { %436 = vmatprep.subr.bf16.mxu0 %v4668_v7 }
  0x77   : > { %437 = vmatpush1.bf16.msra.mxu0 %v4670_v8 }
  0x78   : > { %4257 = vmatprep.subr.bf16.mxu0 %v5032_v20 }
  0x7a   : > { %4027 = vmatmul.mubr.msk.bf16.vlgmr.msra.gmra.mxu0 %vm418_vm0, %v366_v11 }
  0x7b   : > { %4259 = vmatprep.mubr.msk.bf16.mxu0 %vm5035_vm1, %v5032_v20 }
 0x13a   : > { %v456_v16 = vpop.f32.mrf.mxu0 }
 0x13b   : > { %v457_v21 = vadd.f32 %v456_v16, %v371_v17 }
 0x13c   : > { %v5269_v18 = vpop.f32.mrf.mxu0 }
 0x13d   : > { %v459_v55 = vadd.f32 %v5269_v18, %v375_v53 }
 0x13e   : > { %v460_v19 = vpop.f32.mrf.mxu0 }
 0x13f   : > { %v461_v22 = vadd.f32 %v460_v19, %v371_v17 }
 0x140   : > { %v462_v51 = vpop.f32.mrf.mxu0 }
 0x141   : > { %v465_v23 = vpack.c.bf16 %v461_v22, %v457_v21  ;;  %v463_v54 = vadd.f32 %v462_v51, %v375_v53 }
 0x143   : > { %472 = vrot.lane.b32.xlu1 %v465_v23, %s5033_s30  ;;  %468 = vrot.lane.b32.xlu0 %v465_v23, %s5034_s9  ;;  %v5339_v56 = vpack.c.bf16 %v463_v54, %v459_v55 }
 0x147   : > { %476 = vrot.lane.b32.xlu1 %v465_v23, %s5036_s14  ;;  %470 = vrot.lane.b32.xlu0 %v465_v23, %s5037_s19 }
 0x14b   : > { %504 = vrot.lane.b32.xlu1 %v465_v23, %s6176_s22  ;;  %480 = vrot.lane.b32.xlu0 %v465_v23, %s5039_s15 }
 0x1b5   : > { %v473_v24 = vpop.permute.xlu1 %472  ;;  %v469_v25 = vpop.permute.xlu0 %468 }
 0x1b6   : > { %554 = vrot.lane.b32.xlu0 %v469_v25, %s6176_s22 }
 0x1b9   : > { %v477_v26 = vpop.permute.xlu1 %476  ;;  %v471_v27 = vpop.permute.xlu0 %470 }
 0x1ba   : > { %652 = vrot.lane.b32.xlu0 %v473_v24, %s6176_s22  ;;  %603 = vrot.lane.b32.xlu1 %v471_v27, %s6176_s22 }
 0x1bd   : > { %v505_v28 = vpop.permute.xlu1 %504  ;;  %v481_v29 = vpop.permute.xlu0 %480 }
 0x1be   : > { %750 = vrot.lane.b32.xlu1 %v477_v26, %s6176_s22  ;;  %848 = vrot.lane.b32.xlu0 %v481_v29, %s6176_s22  ;;  %v511_v30 = vsel %vm506_vm2, %v505_v28, 0 }
 0x1bf   : > { %4234 = vmatpush3.bf16.xpose.msra.mxu1 %v511_v30 }
 0x1c0   : > { %4239 = vmatprep.subr.bf16.mxu1 %v5032_v20 }
 0x1c2   : > { %474 = vrot.lane.b32.xlu1 %v465_v23, %s5040_s18  ;;  %478 = vrot.lane.b32.xlu0 %v465_v23, %s5041_s12 }
 0x1c6   : > { %4236 = vmatmul.mubr.msk.bf16.vlgmr.msra.gmra.mxu1 %vm506_vm2, %v465_v23 }
 0x1c7   : > { %4241 = vmatprep.mubr.msk.bf16.mxu1 %vm5035_vm1, %v5032_v20 }
 0x228   : > { %v555_v31 = vpop.permute.xlu0 %554 }
 0x229   : > { %v560_v32 = vsel %vm506_vm2, %v555_v31, 0 }
 0x22a   : > { %4240 = vmatpush3.bf16.xpose.msra.mxu1 %v560_v32 }
 0x22b   : > { %4245 = vmatprep.subr.bf16.mxu1 %v5032_v20 }
 0x22c   : > { %v604_v33 = vpop.permute.xlu1 %603  ;;  %v653_v34 = vpop.permute.xlu0 %652 }
 0x22d   : > { %v609_v37 = vsel %vm506_vm2, %v604_v33, 0  ;;  %v658_v40 = vsel %vm506_vm2, %v653_v34, 0 }
 0x230   : > { %v751_v35 = vpop.permute.xlu1 %750  ;;  %v849_v36 = vpop.permute.xlu0 %848 }
 0x231   : > { %4242 = vmatmul.mubr.msk.bf16.vlgmr.msra.gmra.mxu1 %vm506_vm2, %v469_v25  ;;  %v756_v41 = vsel %vm506_vm2, %v751_v35, 0  ;;  %v854_v42 = vsel %vm506_vm2, %v849_v36, 0 }
 0x232   : > { %4246 = vmatpush3.bf16.xpose.msra.mxu1 %v609_v37  ;;  %4247 = vmatprep.mubr.msk.bf16.mxu1 %vm5035_vm1, %v5032_v20 }
 0x233   : > { %4251 = vmatprep.subr.bf16.mxu1 %v5032_v20 }
 0x234   : > { %v475_v38 = vpop.permute.xlu1 %474  ;;  %v479_v39 = vpop.permute.xlu0 %478 }
 0x235   : > { %701 = vrot.lane.b32.xlu1 %v475_v38, %s6176_s22  ;;  %799 = vrot.lane.b32.xlu0 %v479_v39, %s6176_s22 }
 0x239   : > { %4248 = vmatmul.mubr.msk.bf16.vlgmr.msra.gmra.mxu1 %vm506_vm2, %v471_v27 }
 0x23a   : > { %4252 = vmatpush3.bf16.xpose.msra.mxu1 %v658_v40  ;;  %4253 = vmatprep.mubr.msk.bf16.mxu1 %vm5035_vm1, %v5032_v20 }
 0x23b   : > { %4263 = vmatprep.subr.bf16.mxu1 %v5032_v20 }
 0x241   : > { %4254 = vmatmul.mubr.msk.bf16.vlgmr.msra.gmra.mxu1 %vm506_vm2, %v473_v24 }
 0x242   : > { %4264 = vmatpush3.bf16.xpose.msra.mxu1 %v756_v41  ;;  %4265 = vmatprep.mubr.msk.bf16.mxu1 %vm5035_vm1, %v5032_v20 }
 0x243   : > { %4275 = vmatprep.subr.bf16.mxu1 %v5032_v20 }
 0x249   : > { %4266 = vmatmul.mubr.msk.bf16.vlgmr.msra.gmra.mxu1 %vm506_vm2, %v477_v26 }
 0x24a   : > { %4276 = vmatpush3.bf16.xpose.msra.mxu1 %v854_v42  ;;  %4277 = vmatprep.mubr.msk.bf16.mxu1 %vm5035_vm1, %v5032_v20 }
 0x24b   : > { %4287 = vmatprep.subr.bf16.mxu1 %v5032_v20 }
 0x251   : > { %4278 = vmatmul.mubr.msk.bf16.vlgmr.msra.gmra.mxu1 %vm506_vm2, %v481_v29 }
 0x252   : > { %4289 = vmatprep.mubr.msk.bf16.mxu1 %vm5035_vm1, %v5032_v20 }
 0x286   : > { %v5322_v43 = vpop.f32.mrf.mxu1 }
 0x288   : > { %v4237_v44 = vpop.f32.mrf.mxu1 }
 0x28a   : > { %v5324_v45 = vpop.f32.mrf.mxu1 }
 0x28c   : > { %v4238_v46 = vpop.f32.mrf.mxu1 }
 0x2a7   : > { %v702_v47 = vpop.permute.xlu1 %701  ;;  %v800_v50 = vpop.permute.xlu0 %799 }
 0x2a8   : > { %v707_v48 = vsel %vm506_vm2, %v702_v47, 0  ;;  %v805_v52 = vsel %vm506_vm2, %v800_v50, 0 }
 0x2a9   : > { %4258 = vmatpush3.bf16.xpose.msra.mxu0 %v707_v48 }
 0x2aa   : > { %4269 = vmatprep.subr.bf16.mxu0 %v5032_v20 }
 0x2b0   : > { %4260 = vmatmul.mubr.msk.bf16.vlgmr.msra.gmra.mxu0 %vm506_vm2, %v475_v38 }
 0x2b1   : > { %4270 = vmatpush3.bf16.xpose.msra.mxu0 %v805_v52  ;;  %4271 = vmatprep.mubr.msk.bf16.mxu0 %vm5035_vm1, %v5032_v20 }
 0x2b2   : > { %4281 = vmatprep.subr.bf16.mxu0 %v5032_v20 }
 0x2b8   : > { %4272 = vmatmul.mubr.msk.bf16.vlgmr.msra.gmra.mxu0 %vm506_vm2, %v479_v39 }
 0x2b9   : > { %4282 = vmatpush3.bf16.msra.mxu0 %v5339_v56  ;;  %4283 = vmatprep.mubr.msk.bf16.mxu0 %vm5035_vm1, %v5032_v20 }
 0x2ba   : > { %4293 = vmatprep.subr.bf16.mxu0 %v5032_v20 }
 0x2f1   : > { %v596_v57 = vpop.f32.mrf.mxu1 }
 0x2f2   : > { %v899_v58 = vmul.f32 0.35355338, %v596_v57 }
 0x2f3   : > { %v4243_v59 = vpop.f32.mrf.mxu1 }
 0x2f4   : > { %v920_v60 = vsel %vm913_vm3, %v899_v58, -inf }
 0x2f5   : > { %921 = vmax.xlane.f32.xlu1 %v920_v60  ;;  %v599_v61 = vpop.f32.mrf.mxu1 }
 0x2f6   : > { %v900_v62 = vmul.f32 0.35355338, %v599_v61 }
 0x2f7   : > { %v4244_v63 = vpop.f32.mrf.mxu1 }
 0x2f8   : > { %v923_v1 = vsel %vm913_vm3, %v900_v62, -inf }
 0x2f9   : > { %v5348_v2 = vpop.f32.mrf.mxu1  ;;  %924 = vmax.xlane.f32.xlu0 %v923_v1 }
 0x2fb   : > { %v4249_v3 = vpop.f32.mrf.mxu1 }
 0x2fd   : > { %v5350_v4 = vpop.f32.mrf.mxu1 }
 0x2ff   : > { %v4250_v5 = vpop.f32.mrf.mxu1 }
 0x301   : > { %v694_v6 = vpop.f32.mrf.mxu1 }
 0x302   : > { %v903_v7 = vmul.f32 0.35355338, %v694_v6 }
 0x303   : > { %v4255_v8 = vpop.f32.mrf.mxu1 }
 0x304   : > { %v932_v9 = vsel %vm913_vm3, %v903_v7, -inf }
 0x305   : > { %v697_v11 = vpop.f32.mrf.mxu1  ;;  %933 = vmax.xlane.f32.xlu0 %v932_v9 }
 0x306   : > { %v904_v15 = vmul.f32 0.35355338, %v697_v11 }
 0x307   : > { %v4256_v16 = vpop.f32.mrf.mxu1 }
 0x308   : > { %v935_v17 = vsel %vm913_vm3, %v904_v15, -inf }
 0x309   : > { %936 = vmax.xlane.f32.xlu1 %v935_v17  ;;  %v792_v18 = vpop.f32.mrf.mxu1 }
 0x30a   : > { %v907_v19 = vmul.f32 0.35355338, %v792_v18 }
 0x30b   : > { %v4267_v21 = vpop.f32.mrf.mxu1 }
 0x30c   : > { %v944_v22 = vsel %vm913_vm3, %v907_v19, -inf }
 0x30d   : > { %v795_v23 = vpop.f32.mrf.mxu1  ;;  %945 = vmax.xlane.f32.xlu0 %v944_v22 }
 0x30e   : > { %v908_v24 = vmul.f32 0.35355338, %v795_v23 }
 0x30f   : > { %v4268_v25 = vpop.f32.mrf.mxu1 }
 0x310   : > { %v947_v26 = vsel %vm913_vm3, %v908_v24, -inf }
 0x311   : > { %948 = vmax.xlane.f32.xlu1 %v947_v26  ;;  %v890_v27 = vpop.f32.mrf.mxu1 }
 0x312   : > { %v911_v28 = vmul.f32 0.35355338, %v890_v27 }
 0x313   : > { %v4279_v29 = vpop.f32.mrf.mxu1 }
 0x314   : > { %v956_v30 = vsel %vm913_vm3, %v911_v28, -inf }
 0x315   : > { %v893_v31 = vpop.f32.mrf.mxu1  ;;  %957 = vmax.xlane.f32.xlu0 %v956_v30 }
 0x316   : > { %v912_v32 = vmul.f32 0.35355338, %v893_v31 }
 0x317   : > { %v4280_v33 = vpop.f32.mrf.mxu1 }
 0x318   : > { %v959_v34 = vsel %vm913_vm3, %v912_v32, -inf  ;;  %v5411_v33 = vmul.f32 0.35355338, %v5322_v43 }
 0x319   : > { %960 = vmax.xlane.f32.xlu1 %v959_v34  ;;  %v5414_v34 = vmul.f32 0.35355338, %v5348_v2 }
 0x31b   : > { %v926_v43 = vsel %vm913_vm3, %v5414_v34, -inf }
 0x32a   : > { %489 = vrot.lane.b32.xlu1 %v5339_v56, %s5033_s30 }
 0x32b   : > { %483 = vrot.lane.b32.xlu0 %v5339_v56, %s5034_s9 }
 0x370   : > { %v5362_v35 = vpop.f32.mrf.mxu0 }
 0x372   : > { %v4261_v36 = vpop.f32.mrf.mxu0 }
 0x374   : > { %v5364_v37 = vpop.f32.mrf.mxu0 }
 0x375   : > { %v5429_v2 = vmul.f32 0.35355338, %v5364_v37 }
 0x376   : > { %v4262_v38 = vpop.f32.mrf.mxu0 }
 0x377   : > { %v5419_v38 = vmul.f32 0.35355338, %v5350_v4 }
 0x378   : > { %v5366_v39 = vpop.f32.mrf.mxu0 }
 0x379   : > { %v929_v4 = vsel %vm913_vm3, %v5419_v38, -inf }
 0x37a   : > { %v4273_v40 = vpop.f32.mrf.mxu0 }
 0x37b   : > { %v5422_v40 = vmul.f32 0.35355338, %v5362_v35 }
 0x37c   : > { %v5368_v41 = vpop.f32.mrf.mxu0 }
 0x37d   : > { %v938_v35 = vsel %vm913_vm3, %v5422_v40, -inf }
 0x37e   : > { %v922_v42 = vpop.xlane.xlu1 %921  ;;  %v4274_v44 = vpop.f32.mrf.mxu0 }
 0x37f   : > { %v964_v46 = vsub.f32 %v899_v58, %v922_v42  ;;  %v5432_v42 = vmul.f32 0.35355338, %v5366_v39  ;;  %v5439_v44 = vmul.f32 0.35355338, %v5368_v41 }
 0x381   : > { %v982_v47 = vmul.f32 1.442695, %v964_v46  ;;  %v941_v46 = vsel %vm913_vm3, %v5429_v2, -inf  ;;  %v950_v37 = vsel %vm913_vm3, %v5432_v42, -inf  ;;  %v953_v39 = vsel %vm913_vm3, %v5439_v44, -inf }
 0x382   : > { %v925_v48 = vpop.xlane.xlu0 %924 }
 0x383   : > { %4707 = vpow2.f32 %v982_v47  ;;  %v965_v50 = vsub.f32 %v900_v62, %v925_v48 }
 0x385   : > { %v984_v51 = vmul.f32 1.442695, %v965_v50 }
 0x387   : > { %4709 = vpow2.f32 %v984_v51 }
 0x38e   : > { %v934_v52 = vpop.xlane.xlu0 %933 }
 0x38f   : > { %v968_v53 = vsub.f32 %v903_v7, %v934_v52 }
 0x390   : > { %v5370_v54 = vpop.eup %4707 }
 0x391   : > { %v990_v55 = vmul.f32 1.442695, %v968_v53  ;;  %v1016_v57 = vsel %vm913_vm3, %v5370_v54, 0.0 }
 0x392   : > { %v937_v59 = vpop.xlane.xlu1 %936  ;;  %1017 = vadd.xlane.f32.xlu0 %v1016_v57 }
 0x393   : > { %4711 = vpow2.f32 %v990_v55  ;;  %v969_v60 = vsub.f32 %v904_v15, %v937_v59 }
 0x394   : > { %v5374_v61 = vpop.eup %4709 }
 0x395   : > { %v992_v58 = vmul.f32 1.442695, %v969_v60  ;;  %v1019_v62 = vsel %vm913_vm3, %v5374_v61, 0.0 }
 0x396   : > { %1020 = vadd.xlane.f32.xlu1 %v1019_v62  ;;  %v946_v63 = vpop.xlane.xlu0 %945 }
 0x397   : > { %4713 = vpow2.f32 %v992_v58  ;;  %v972_v1 = vsub.f32 %v907_v19, %v946_v63 }
 0x399   : > { %v998_v3 = vmul.f32 1.442695, %v972_v1 }
 0x39a   : > { %v949_v5 = vpop.xlane.xlu1 %948 }
 0x39b   : > { %4715 = vpow2.f32 %v998_v3  ;;  %v973_v6 = vsub.f32 %v908_v24, %v949_v5 }
 0x39d   : > { %v1000_v7 = vmul.f32 1.442695, %v973_v6 }
 0x39e   : > { %v958_v8 = vpop.xlane.xlu0 %957 }
 0x39f   : > { %4717 = vpow2.f32 %v1000_v7  ;;  %v976_v9 = vsub.f32 %v911_v28, %v958_v8 }
 0x3a0   : > { %v5378_v11 = vpop.eup %4711 }
 0x3a1   : > { %v1006_v15 = vmul.f32 1.442695, %v976_v9  ;;  %v1028_v16 = vsel %vm913_vm3, %v5378_v11, 0.0 }
 0x3a2   : > { %v961_v17 = vpop.xlane.xlu1 %960  ;;  %1029 = vadd.xlane.f32.xlu0 %v1028_v16  ;;  %v484_v18 = vpop.permute.xlu0 %483  ;;  %v4673_v16 = vld [vmem:[#allocation6 + $0x74] ss:$8 sps:$4 sm:$0xff]  }
 0x3a3   : > { %4719 = vpow2.f32 %v1006_v15  ;;  %v977_v21 = vsub.f32 %v912_v32, %v961_v17  ;;  %4288 = vmatpush3.bf16.msra.mxu1 %v484_v18  ;;  %v5408_v32 = vmul.f32 0.35355338, %v5324_v45  ;;  %v914_v45 = vsel %vm913_vm3, %v5411_v33, -inf }
 0x3a4   : > { %v5382_v19 = vpop.eup %4713  ;;  %4299 = vmatprep.subr.bf16.mxu1 %v5032_v20 }
 0x3a5   : > { %v1008_v22 = vmul.f32 1.442695, %v977_v21  ;;  %v1031_v23 = vsel %vm913_vm3, %v5382_v19, 0.0  ;;  %v917_v36 = vsel %vm913_vm3, %v5408_v32, -inf }
 0x3a6   : > { %1032 = vadd.xlane.f32.xlu1 %v1031_v23  ;;  %v490_v47 = vpop.permute.xlu1 %489  ;;  %v4671_v23 = vld [vmem:[#allocation6 + $0x70] ss:$8 sps:$4 sm:$0xff]  }
 0x3a7   : > { %4721 = vpow2.f32 %v1008_v22 }
 0x3a8   : > { %v5387_v24 = vpop.eup %4715 }
 0x3a9   : > { %v1040_v25 = vsel %vm913_vm3, %v5387_v24, 0.0 }
 0x3aa   : > { %1041 = vadd.xlane.f32.xlu0 %v1040_v25  ;;  %v4676_v25 = vld [vmem:[#allocation6 + $0x64] ss:$8 sps:$4 sm:$0xff]  }
 0x3ac   : > { %v5391_v26 = vpop.eup %4717 }
 0x3ad   : > { %v1043_v27 = vsel %vm913_vm3, %v5391_v26, 0.0 }
 0x3ae   : > { %1044 = vadd.xlane.f32.xlu1 %v1043_v27  ;;  %v4679_v27 = vld [vmem:[#allocation6 + $0x54] ss:$8 sps:$4 sm:$0xff]  }
 0x3b0   : > { %v5395_v28 = vpop.eup %4719 }
 0x3b1   : > { %v1052_v29 = vsel %vm913_vm3, %v5395_v28, 0.0 }
 0x3b2   : > { %1053 = vadd.xlane.f32.xlu0 %v1052_v29  ;;  %v4677_v29 = vld [vmem:[#allocation6 + $0x50] ss:$8 sps:$4 sm:$0xff]  }
 0x3b4   : > { %v5399_v30 = vpop.eup %4721 }
 0x3b5   : > { %v1055_v31 = vsel %vm913_vm3, %v5399_v30, 0.0 }
 0x3b6   : > { %1056 = vadd.xlane.f32.xlu1 %v1055_v31  ;;  %v4682_v31 = vld [vmem:[#allocation6 + $0x44] ss:$8 sps:$4 sm:$0xff]  }
 0x3c7   : > { %495 = vrot.lane.b32.xlu1 %v5339_v56, %s5036_s14 }
 0x3c8   : > { %501 = vrot.lane.b32.xlu0 %v5339_v56, %s5039_s15 }
 0x3e7   : > { %918 = vmax.xlane.f32.xlu0 %v917_v36  ;;  %v4680_v36 = vld [vmem:[#allocation6 + $0x40] ss:$8 sps:$4 sm:$0xff]  }
 0x3eb   : > { %915 = vmax.xlane.f32.xlu1 %v914_v45  ;;  %927 = vmax.xlane.f32.xlu0 %v926_v43 }
 0x3ef   : > { %930 = vmax.xlane.f32.xlu1 %v929_v4  ;;  %939 = vmax.xlane.f32.xlu0 %v938_v35 }
 0x3f3   : > { %942 = vmax.xlane.f32.xlu1 %v941_v46  ;;  %951 = vmax.xlane.f32.xlu0 %v950_v37 }
 0x3f7   : > { %954 = vmax.xlane.f32.xlu1 %v953_v39 }
 0x41b   : > { %v1018_v48 = vpop.xlane.xlu0 %1017 }
 0x41c   : > { %4723 = vrcp.f32 %v1018_v48 }
 0x41f   : > { %v1021_v50 = vpop.xlane.xlu1 %1020 }
 0x420   : > { %4725 = vrcp.f32 %v1021_v50 }
 0x429   : > { %v4724_v51 = vpop.eup %4723 }
 0x42a   : > { %v1076_v53 = vmul.f32 %v4724_v51, %v5370_v54 }
 0x42b   : > { %v1030_v41 = vpop.xlane.xlu0 %1029 }
 0x42c   : > { %4727 = vrcp.f32 %v1030_v41 }
 0x42d   : > { %v4726_v52 = vpop.eup %4725 }
 0x42e   : > { %v1077_v55 = vmul.f32 %v4726_v52, %v5374_v61 }
 0x42f   : > { %v1033_v57 = vpop.xlane.xlu1 %1032 }
 0x430   : > { %4729 = vrcp.f32 %v1033_v57  ;;  %v1091_v59 = vpack.c.bf16 %v1077_v55, %v1076_v53 }
 0x432   : > { %4290 = vmatmul.mubr.msk.bf16.vlgmr.msra.gmra.mxu1 %vm913_vm3, %v1091_v59 }
 0x433   : > { %4300 = vmatpush3.bf16.msra.mxu1 %v490_v47  ;;  %v1042_v60 = vpop.xlane.xlu0 %1041  ;;  %4301 = vmatprep.mubr.msk.bf16.mxu1 %vm5035_vm1, %v5032_v20 }
 0x434   : > { %4311 = vmatprep.subr.bf16.mxu1 %v5032_v20  ;;  %4731 = vrcp.f32 %v1042_v60 }
 0x437   : > { %v1045_v58 = vpop.xlane.xlu1 %1044 }
 0x438   : > { %4733 = vrcp.f32 %v1045_v58 }
 0x439   : > { %v4728_v62 = vpop.eup %4727 }
 0x43a   : > { %v1080_v61 = vmul.f32 %v4728_v62, %v5378_v11 }
 0x43b   : > { %v1054_v63 = vpop.xlane.xlu0 %1053 }
 0x43c   : > { %4735 = vrcp.f32 %v1054_v63 }
 0x43d   : > { %v4730_v54 = vpop.eup %4729 }
 0x43e   : > { %v1081_v1 = vmul.f32 %v4730_v54, %v5382_v19 }
 0x43f   : > { %v1057_v3 = vpop.xlane.xlu1 %1056  ;;  %v502_v17 = vpop.permute.xlu0 %501 }
 0x440   : > { %4737 = vrcp.f32 %v1057_v3  ;;  %v1093_v5 = vpack.c.bf16 %v1081_v1, %v1080_v61 }
 0x441   : > { %v4732_v6 = vpop.eup %4731 }
 0x442   : > { %4302 = vmatmul.mubr.msk.bf16.vlgmr.msra.gmra.mxu1 %vm913_vm3, %v1093_v5  ;;  %v1084_v9 = vmul.f32 %v4732_v6, %v5387_v24 }
 0x443   : > { %v496_v7 = vpop.permute.xlu1 %495  ;;  %4313 = vmatprep.mubr.msk.bf16.mxu1 %vm5035_vm1, %v5032_v20 }
 0x444   : > { %4312 = vmatpush3.bf16.msra.mxu1 %v496_v7 }
 0x445   : > { %v4734_v8 = vpop.eup %4733  ;;  %4323 = vmatprep.subr.bf16.mxu1 %v5032_v20 }
 0x446   : > { %v1085_v11 = vmul.f32 %v4734_v8, %v5391_v26  ;;  %v4674_v26 = vld [vmem:[#allocation6 + $0x60] ss:$8 sps:$4 sm:$0xff]  }
 0x448   : > { %v1095_v15 = vpack.c.bf16 %v1085_v11, %v1084_v9 }
 0x449   : > { %v4736_v18 = vpop.eup %4735 }
 0x44a   : > { %4314 = vmatmul.mubr.msk.bf16.vlgmr.msra.gmra.mxu1 %vm913_vm3, %v1095_v15  ;;  %v1088_v19 = vmul.f32 %v4736_v18, %v5395_v28  ;;  %v5470_v28 = vpack.c.bf16 %v5255_v10, %v5255_v10 }
 0x44b   : > { %4324 = vmatpush3.bf16.msra.mxu1 %v502_v17  ;;  %4325 = vmatprep.mubr.msk.bf16.mxu1 %vm5035_vm1, %v5032_v20 }
 0x44c   : > { %1662 = vmatprep.subr.bf16.mxu1 %v4673_v16 }
 0x44d   : > { %v4738_v21 = vpop.eup %4737 }
 0x44e   : > { %v1089_v22 = vmul.f32 %v4738_v21, %v5399_v30 }
 0x450   : > { %v1097_v24 = vpack.c.bf16 %v1089_v22, %v1088_v19 }
 0x452   : > { %4326 = vmatmul.mubr.msk.bf16.vlgmr.msra.gmra.mxu1 %vm913_vm3, %v1097_v24 }
 0x453   : > { %1663 = vmatpush1.bf16.msra.mxu1 %v4671_v23  ;;  %1686 = vmatprep.mubr.bf16.mxu1 %v5031_v0 }
 0x454   : > { %1664 = vmatprep.subr.bf16.mxu1 %v4676_v25 }
 0x457   : > { %1665 = vmatpush1.bf16.msra.mxu1 %v4674_v26 }
 0x458   : > { %1666 = vmatprep.subr.bf16.mxu1 %v4679_v27 }
 0x45b   : > { %1667 = vmatpush1.bf16.msra.mxu1 %v4677_v29 }
 0x45c   : > { %1668 = vmatprep.subr.bf16.mxu1 %v4682_v31 }
 0x45f   : > { %1669 = vmatpush1.bf16.msra.mxu1 %v4680_v36 }
 0x460   : > { %4347 = vmatprep.subr.bf16.mxu1 %v5032_v20 }
 0x462   : > { %4059 = vmatmul.mubr.msk.bf16.vlgmr.msra.gmra.mxu1 %vm418_vm0, %v5470_v28 }
 0x463   : > { %4349 = vmatprep.mubr.msk.bf16.mxu1 %vm5035_vm1, %v5032_v20 }
 0x470   : > { %v919_v30 = vpop.xlane.xlu0 %918 }
 0x471   : > { %v963_v45 = vsub.f32 %v5408_v32, %v919_v30 }
 0x473   : > { %v980_v43 = vmul.f32 1.442695, %v963_v45 }
 0x474   : > { %v916_v4 = vpop.xlane.xlu1 %915  ;;  %v928_v35 = vpop.xlane.xlu0 %927 }
 0x475   : > { %4739 = vpow2.f32 %v980_v43  ;;  %v962_v46 = vsub.f32 %v5411_v33, %v916_v4  ;;  %v966_v10 = vsub.f32 %v5414_v34, %v928_v35 }
 0x477   : > { %v978_v37 = vmul.f32 1.442695, %v962_v46  ;;  %v986_v39 = vmul.f32 1.442695, %v966_v10 }
 0x478   : > { %v931_v47 = vpop.xlane.xlu1 %930  ;;  %v940_v48 = vpop.xlane.xlu0 %939 }
 0x479   : > { %4741 = vpow2.f32 %v978_v37  ;;  %v967_v50 = vsub.f32 %v5419_v38, %v931_v47  ;;  %v970_v51 = vsub.f32 %v5422_v40, %v940_v48  ;;  %v1587_v47 = vld [vmem:[#allocation8 + $0x2] sm:$0x3] }
 0x47a   : > { %4743 = vpow2.f32 %v986_v39 }
 0x47b   : > { %v988_v41 = vmul.f32 1.442695, %v967_v50  ;;  %v994_v32 = vmul.f32 1.442695, %v970_v51 }
 0x47c   : > { %v943_v52 = vpop.xlane.xlu1 %942  ;;  %v952_v53 = vpop.xlane.xlu0 %951 }
 0x47d   : > { %4745 = vpow2.f32 %v988_v41  ;;  %v971_v55 = vsub.f32 %v5429_v2, %v943_v52  ;;  %v974_v33 = vsub.f32 %v5432_v42, %v952_v53  ;;  %v1604_v41 = vrot.slane %v1587_v47, %v5263_v14 }
 0x47e   : > { %4747 = vpow2.f32 %v994_v32  ;;  %v1608_v53 = vrot.slane %v1587_v47, %v5329_v49 }
 0x47f   : > { %v996_v34 = vmul.f32 1.442695, %v971_v55  ;;  %v1002_v57 = vmul.f32 1.442695, %v974_v33 }
 0x480   : > { %v955_v59 = vpop.xlane.xlu1 %954 }
 0x481   : > { %4749 = vpow2.f32 %v996_v34  ;;  %v975_v60 = vsub.f32 %v5439_v44, %v955_v59 }
 0x482   : > { %v5485_v38 = vpop.eup %4739  ;;  %4751 = vpow2.f32 %v1002_v57 }
 0x483   : > { %v1004_v40 = vmul.f32 1.442695, %v975_v60  ;;  %v1013_v58 = vsel %vm913_vm3, %v5485_v38, 0.0 }
 0x484   : > { %1014 = vadd.xlane.f32.xlu1 %v1013_v58 }
 0x485   : > { %4753 = vpow2.f32 %v1004_v40 }
 0x486   : > { %v4742_v62 = vpop.eup %4741 }
 0x487   : > { %v1010_v2 = vsel %vm913_vm3, %v4742_v62, 0.0  ;;  %v5490_v42 = vpop.eup %4743 }
 0x488   : > { %1011 = vadd.xlane.f32.xlu0 %v1010_v2  ;;  %v1022_v54 = vsel %vm913_vm3, %v5490_v42, 0.0 }
 0x48a   : > { %v5492_v63 = vpop.eup %4745 }
 0x48b   : > { %v1025_v44 = vsel %vm913_vm3, %v5492_v63, 0.0  ;;  %v5498_v61 = vpop.eup %4747 }
 0x48c   : > { %1026 = vadd.xlane.f32.xlu1 %v1025_v44  ;;  %1023 = vadd.xlane.f32.xlu0 %v1022_v54  ;;  %v1034_v5 = vsel %vm913_vm3, %v5498_v61, 0.0 }
 0x48e   : > { %v5500_v1 = vpop.eup %4749 }
 0x48f   : > { %v1037_v3 = vsel %vm913_vm3, %v5500_v1, 0.0  ;;  %v5506_v6 = vpop.eup %4751 }
 0x490   : > { %1038 = vadd.xlane.f32.xlu1 %v1037_v3  ;;  %1035 = vadd.xlane.f32.xlu0 %v1034_v5  ;;  %v1046_v9 = vsel %vm913_vm3, %v5506_v6, 0.0 }
 0x492   : > { %v5508_v7 = vpop.eup %4753 }
 0x493   : > { %v1049_v8 = vsel %vm913_vm3, %v5508_v7, 0.0 }
 0x494   : > { %1050 = vadd.xlane.f32.xlu1 %v1049_v8  ;;  %1047 = vadd.xlane.f32.xlu0 %v1046_v9 }
 0x4a5   : > { %492 = vrot.lane.b32.xlu1 %v5339_v56, %s5040_s18 }
 0x4a9   : > { %498 = vrot.lane.b32.xlu1 %v5339_v56, %s5041_s12 }
 0x4aa   : > { %486 = vrot.lane.b32.xlu0 %v5339_v56, %s5037_s19 }
 0x4f2   : > { %v5520_v11 = vpop.f32.mrf.mxu1 }
 0x4f4   : > { %v4291_v15 = vpop.f32.mrf.mxu1 }
 0x4f6   : > { %v5522_v16 = vpop.f32.mrf.mxu1 }
 0x4f7   : > { %v1451_v17 = vpack.c.bf16 %v5522_v16, %v5520_v11 }
 0x4f8   : > { %v4292_v18 = vpop.f32.mrf.mxu1 }
 0x502   : > { %v5526_v21 = vpop.f32.mrf.mxu1 }
 0x504   : > { %v4303_v19 = vpop.f32.mrf.mxu1 }
 0x506   : > { %v5528_v22 = vpop.f32.mrf.mxu1 }
 0x507   : > { %v1453_v23 = vpack.c.bf16 %v5528_v22, %v5526_v21  ;;  %v4684_v21 = vld [vmem:[#allocation9 + $0x50] sm:$0xff]  }
 0x508   : > { %v4304_v24 = vpop.f32.mrf.mxu1 }
 0x50a   : > { %v5532_v25 = vpop.f32.mrf.mxu1 }
 0x50c   : > { %v4315_v56 = vpop.f32.mrf.mxu1 }
 0x50d   : > { %v1015_v26 = vpop.xlane.xlu1 %1014 }
 0x50e   : > { %v5534_v27 = vpop.f32.mrf.mxu1  ;;  %4755 = vrcp.f32 %v1015_v26 }
 0x50f   : > { %v1455_v29 = vpack.c.bf16 %v5534_v27, %v5532_v25 }
 0x510   : > { %v4316_v31 = vpop.f32.mrf.mxu1 }
 0x511   : > { %v1012_v36 = vpop.xlane.xlu0 %1011 }
 0x512   : > { %4757 = vrcp.f32 %v1012_v36  ;;  %v5538_v30 = vpop.f32.mrf.mxu1 }
 0x514   : > { %v4327_v45 = vpop.f32.mrf.mxu1 }
 0x515   : > { %v1027_v43 = vpop.xlane.xlu1 %1026  ;;  %v1024_v4 = vpop.xlane.xlu0 %1023 }
 0x516   : > { %4759 = vrcp.f32 %v1027_v43  ;;  %v5540_v35 = vpop.f32.mrf.mxu1  ;;  %v4686_v43 = vld [vmem:[#allocation9 + $0x40] sm:$0xff]  }
 0x517   : > { %4761 = vrcp.f32 %v1024_v4  ;;  %v1457_v46 = vpack.c.bf16 %v5540_v35, %v5538_v30 }
 0x518   : > { %v4328_v10 = vpop.f32.mrf.mxu1 }
 0x519   : > { %v1036_v37 = vpop.xlane.xlu0 %1035  ;;  %v1039_v39 = vpop.xlane.xlu1 %1038 }
 0x51a   : > { %4763 = vrcp.f32 %v1039_v39 }
 0x51b   : > { %v4756_v48 = vpop.eup %4755  ;;  %4765 = vrcp.f32 %v1036_v37 }
 0x51c   : > { %v1075_v52 = vmul.f32 %v4756_v48, %v5485_v38 }
 0x51d   : > { %v1048_v50 = vpop.xlane.xlu0 %1047  ;;  %v1051_v55 = vpop.xlane.xlu1 %1050 }
 0x51e   : > { %4767 = vrcp.f32 %v1051_v55 }
 0x51f   : > { %v4758_v51 = vpop.eup %4757  ;;  %4769 = vrcp.f32 %v1048_v50 }
 0x520   : > { %v1074_v32 = vmul.f32 %v4758_v51, %v4742_v62 }
 0x521   : > { %v487_v40 = vpop.permute.xlu0 %486  ;;  %v493_v15 = vpop.permute.xlu1 %492 }
 0x522   : > { %v1688_v33 = vpop.f32.mrf.mxu1  ;;  %v1090_v34 = vpack.c.bf16 %v1075_v52, %v1074_v32 }
 0x523   : > { %v4760_v57 = vpop.eup %4759  ;;  %v1689_v59 = vadd.f32 %v1688_v33, %v1604_v41 }
 0x524   : > { %v4762_v60 = vpop.eup %4761  ;;  %v1690_v58 = vpop.f32.mrf.mxu1  ;;  %4284 = vmatmul.mubr.msk.bf16.vlgmr.msra.gmra.mxu0 %vm913_vm3, %v1090_v34  ;;  %v1079_v54 = vmul.f32 %v4760_v57, %v5492_v63 }
 0x525   : > { %v5548_v2 = vpack.c.bf16 %v1689_v59, %v1689_v59  ;;  %v5550_v44 = vadd.f32 %v1690_v58, %v1608_v53  ;;  %4294 = vmatpush3.bf16.msra.mxu0 %v487_v40  ;;  %4295 = vmatprep.mubr.msk.bf16.mxu0 %vm5035_vm1, %v5032_v20  ;;  %v1078_v62 = vmul.f32 %v4762_v60, %v5490_v42  ;;  %v499_v56 = vpop.permute.xlu1 %498 }
 0x526   : > { %v1692_v38 = vpop.f32.mrf.mxu1  ;;  %4305 = vmatprep.subr.bf16.mxu0 %v5032_v20 }
 0x527   : > { %1702 = vrot.lane.b32.xlu1 %v5548_v2, %s5033_s30  ;;  %1698 = vrot.lane.b32.xlu0 %v5548_v2, %s5034_s9  ;;  %v4764_v5 = vpop.eup %4763  ;;  %v1092_v8 = vpack.c.bf16 %v1079_v54, %v1078_v62 }
 0x528   : > { %v1693_v3 = vpop.f32.mrf.mxu1  ;;  %v4766_v9 = vpop.eup %4765  ;;  %v1083_v63 = vmul.f32 %v4764_v5, %v5500_v1 }
 0x529   : > { %v1082_v42 = vmul.f32 %v4766_v9, %v5498_v61 }
 0x52b   : > { %1710 = vrot.lane.b32.xlu1 %v5548_v2, %s5039_s15  ;;  %1706 = vrot.lane.b32.xlu0 %v5548_v2, %s5036_s14  ;;  %v4768_v18 = vpop.eup %4767  ;;  %v1094_v19 = vpack.c.bf16 %v1083_v63, %v1082_v42 }
 0x52c   : > { %4296 = vmatmul.mubr.msk.bf16.vlgmr.msra.gmra.mxu0 %vm913_vm3, %v1092_v8  ;;  %v4770_v24 = vpop.eup %4769  ;;  %v1087_v31 = vmul.f32 %v4768_v18, %v5508_v7 }
 0x52d   : > { %4306 = vmatpush3.bf16.msra.mxu0 %v493_v15  ;;  %4307 = vmatprep.mubr.msk.bf16.mxu0 %vm5035_vm1, %v5032_v20  ;;  %v1086_v26 = vmul.f32 %v4770_v24, %v5506_v6 }
 0x52e   : > { %4317 = vmatprep.subr.bf16.mxu0 %v5032_v20 }
 0x52f   : > { %v1096_v36 = vpack.c.bf16 %v1087_v31, %v1086_v26 }
 0x534   : > { %4308 = vmatmul.mubr.msk.bf16.vlgmr.msra.gmra.mxu0 %vm913_vm3, %v1094_v19 }
 0x535   : > { %4318 = vmatpush3.bf16.msra.mxu0 %v499_v56  ;;  %4319 = vmatprep.mubr.msk.bf16.mxu0 %vm5035_vm1, %v5032_v20 }
 0x536   : > { %4329 = vmatprep.subr.bf16.mxu0 %v5032_v20 }
 0x53c   : > { %4320 = vmatmul.mubr.msk.bf16.vlgmr.msra.gmra.mxu0 %vm913_vm3, %v1096_v36 }
 0x53d   : > { %4337 = vmatprep.mubr.msk.bf16.mxu0 %vm5035_vm1, %v5032_v20 }
 0x599   : > { %v5580_v61 = vpop.permute.xlu1 %1702  ;;  %v5582_v1 = vpop.permute.xlu0 %1698 }
 0x59a   : > { %1871 = vrot.lane.b32.xlu1 %v5580_v61, %s6176_s22  ;;  %1775 = vrot.lane.b32.xlu0 %v5582_v1, %s6176_s22 }
 0x59d   : > { %v5588_v6 = vpop.permute.xlu0 %1706  ;;  %v5594_v7 = vpop.permute.xlu1 %1710 }
 0x59e   : > { %1700 = vrot.lane.b32.xlu1 %v5548_v2, %s5037_s19  ;;  %1967 = vrot.lane.b32.xlu0 %v5588_v6, %s6176_s22 }
 0x5a2   : > { %1704 = vrot.lane.b32.xlu1 %v5548_v2, %s5040_s18  ;;  %2063 = vrot.lane.b32.xlu0 %v5594_v7, %s6176_s22 }
 0x5a6   : > { %1459 = vrot.lane.b32.xlu1 %v1451_v17, %s5042_s10  ;;  %1708 = vrot.lane.b32.xlu0 %v5548_v2, %s5041_s12  ;;  %v4683_v17 = vld [vmem:[#allocation9 + $0x58] sm:$0xff]  }
 0x5a7   : > { %4330 = vmatpush3.bf16.msra.mxu0 %v4683_v17 }
 0x5a8   : > { %4331 = vmatprep.subr.bf16.mxu0 %v5032_v20 }
 0x5aa   : > { %1465 = vrot.lane.b32.xlu1 %v1453_v23, %s6180_s16 }
 0x5ab   : > { %4332 = vmatpush3.bf16.msra.mxu0 %v4684_v21 }
 0x5ac   : > { %4333 = vmatprep.subr.bf16.mxu0 %v5032_v20 }
 0x5ae   : > { %1471 = vrot.lane.b32.xlu1 %v1455_v29, %s6174_s13  ;;  %v4685_v29 = vld [vmem:[#allocation9 + $0x48] sm:$0xff]   ;;  %s6178_s13 = smov 48  }
 0x5af   : > { %4334 = vmatpush3.bf16.msra.mxu0 %v4685_v29 }
 0x5b0   : > { %4335 = vmatprep.subr.bf16.mxu0 %v5032_v20 }
 0x5b2   : > { %1477 = vrot.lane.b32.xlu1 %v1457_v46, %s6172_s11  ;;  %s6181_s11 = smov 32  }
 0x5b3   : > { %4336 = vmatpush3.bf16.msra.mxu0 %v4686_v43 }
 0x5b4   : > { %4341 = vmatprep.subr.bf16.mxu0 %v5032_v20 }
 0x5e4   : > { %v5618_v11 = vpop.f32.mrf.mxu0 }
 0x5e6   : > { %v4285_v16 = vpop.f32.mrf.mxu0 }
 0x5e7   : > { %v5693_v16 = vpack.c.bf16 %v5550_v44, %v5550_v44 }
 0x5e8   : > { %v5620_v45 = vpop.f32.mrf.mxu0 }
 0x5e9   : > { %v1450_v22 = vpack.c.bf16 %v5620_v45, %v5618_v11  ;;  %v2220_v17 = vsel %vm2218_vm9, %v5693_v16, 0 }
 0x5ea   : > { %v4286_v23 = vpop.f32.mrf.mxu0 }
 0x5ec   : > { %v1223_v25 = vpop.f32.mrf.mxu0 }
 0x5ee   : > { %v4297_v27 = vpop.f32.mrf.mxu0 }
 0x5f0   : > { %v1226_v30 = vpop.f32.mrf.mxu0 }
 0x5f1   : > { %v1452_v4 = vpack.c.bf16 %v1226_v30, %v1223_v25 }
 0x5f2   : > { %v4298_v35 = vpop.f32.mrf.mxu0 }
 0x5f3   : > { %1462 = vrot.lane.b32.xlu0 %v1452_v4, %s5046_s1 }
 0x5f4   : > { %v1311_v46 = vpop.f32.mrf.mxu0 }
 0x5f6   : > { %v4309_v10 = vpop.f32.mrf.mxu0 }
 0x5f8   : > { %v1314_v37 = vpop.f32.mrf.mxu0 }
 0x5f9   : > { %v1454_v39 = vpack.c.bf16 %v1314_v37, %v1311_v46 }
 0x5fa   : > { %v4310_v47 = vpop.f32.mrf.mxu0 }
 0x5fb   : > { %1468 = vrot.lane.b32.xlu0 %v1454_v39, %s6181_s11 }
 0x5fc   : > { %v1399_v48 = vpop.f32.mrf.mxu0 }
 0x5fe   : > { %v4321_v50 = vpop.f32.mrf.mxu0 }
 0x600   : > { %v1402_v51 = vpop.f32.mrf.mxu0 }
 0x601   : > { %v1456_v41 = vpack.c.bf16 %v1402_v51, %v1399_v48 }
 0x602   : > { %v4322_v32 = vpop.f32.mrf.mxu0 }
 0x603   : > { %1474 = vrot.lane.b32.xlu0 %v1456_v41, %s6178_s13  ;;  %s6200_s13 = smov 48  }
 0x607   : > { %1727 = vrot.lane.b32.xlu0 %v5548_v2, %s6176_s22 }
 0x60c   : > { %v1872_v52 = vpop.permute.xlu1 %1871  ;;  %v1776_v53 = vpop.permute.xlu0 %1775 }
 0x60d   : > { %v1781_v55 = vsel %vm506_vm2, %v1776_v53, 0  ;;  %v1877_v60 = vsel %vm506_vm2, %v1872_v52, 0 }
 0x60e   : > { %4348 = vmatpush3.bf16.xpose.msra.mxu1 %v1781_v55  ;;  %v4044_v55 = vld [vmem:[%s6161_s4 + $0x2] ss:$0 sm:$0xff] }
 0x60f   : > { %4359 = vmatprep.subr.bf16.mxu1 %v5032_v20 }
 0x610   : > { %v1701_v33 = vpop.permute.xlu1 %1700  ;;  %v1968_v34 = vpop.permute.xlu0 %1967 }
 0x611   : > { %1823 = vrot.lane.b32.xlu1 %v1701_v33, %s6176_s22  ;;  %v1973_v58 = vsel %vm506_vm2, %v1968_v34, 0 }
 0x614   : > { %v1705_v57 = vpop.permute.xlu1 %1704  ;;  %v2064_v59 = vpop.permute.xlu0 %2063 }
 0x615   : > { %1919 = vrot.lane.b32.xlu0 %v1705_v57, %s6176_s22  ;;  %4350 = vmatmul.mubr.msk.bf16.vlgmr.msra.gmra.mxu1 %vm506_vm2, %v5582_v1  ;;  %v2069_v38 = vsel %vm506_vm2, %v2064_v59, 0  ;;  %v4839_v59 = vld [vmem:[%s5238_s21] sm:$0xff] }
 0x616   : > { %4360 = vmatpush3.bf16.xpose.msra.mxu1 %v1877_v60  ;;  %4361 = vmatprep.mubr.msk.bf16.mxu1 %vm5035_vm1, %v5032_v20 }
 0x617   : > { %4371 = vmatprep.subr.bf16.mxu1 %v5032_v20 }
 0x618   : > { %v1709_v40 = vpop.permute.xlu0 %1708  ;;  %v1460_v62 = vpop.permute.xlu1 %1459 }
 0x619   : > { %2015 = vrot.lane.b32.xlu1 %v1709_v40, %s6176_s22  ;;  %v1481_v5 = vsel %vm506_vm2, %v1450_v22, %v1460_v62  ;;  %v4840_v62 = vld [vmem:[%s5238_s21 + $0x8] sm:$0xff]  ;;  %s6198_s21 = smov 40   ;;  %s6199_s22 = smov 56  }
 0x61c   : > { %v1466_v54 = vpop.permute.xlu1 %1465 }
 0x61d   : > { %4362 = vmatmul.mubr.msk.bf16.vlgmr.msra.gmra.mxu1 %vm506_vm2, %v5580_v61 }
 0x61e   : > { %4372 = vmatpush3.bf16.xpose.msra.mxu1 %v1973_v58  ;;  %4373 = vmatprep.mubr.msk.bf16.mxu1 %vm5035_vm1, %v5032_v20 }
 0x61f   : > { %4383 = vmatprep.subr.bf16.mxu1 %v5032_v20 }
 0x620   : > { %v1472_v15 = vpop.permute.xlu1 %1471 }
 0x624   : > { %v1478_v24 = vpop.permute.xlu1 %1477 }
 0x625   : > { %4374 = vmatmul.mubr.msk.bf16.vlgmr.msra.gmra.mxu1 %vm506_vm2, %v5588_v6 }
 0x626   : > { %4384 = vmatpush3.bf16.xpose.msra.mxu1 %v2069_v38  ;;  %4385 = vmatprep.mubr.msk.bf16.mxu1 %vm5035_vm1, %v5032_v20 }
 0x627   : > { %4395 = vmatprep.subr.bf16.mxu1 %v5032_v20 }
 0x62d   : > { %4386 = vmatmul.mubr.msk.bf16.vlgmr.msra.gmra.mxu1 %vm506_vm2, %v5594_v7 }
 0x62e   : > { %4397 = vmatprep.mubr.msk.bf16.mxu1 %vm5035_vm1, %v5032_v20 }
 0x665   : > { %v1463_v3 = vpop.permute.xlu0 %1462 }
 0x666   : > { %v1483_v8 = vsel %vm913_vm3, %v1481_v5, %v1463_v3 }
 0x667   : > { %v1486_v42 = vsel %vm1484_vm4, %v1483_v8, %v1466_v54 }
 0x66d   : > { %v1469_v9 = vpop.permute.xlu0 %1468 }
 0x66e   : > { %v1489_v63 = vsel %vm1487_vm5, %v1486_v42, %v1469_v9 }
 0x66f   : > { %v1492_v18 = vsel %vm1490_vm6, %v1489_v63, %v1472_v15 }
 0x675   : > { %v1475_v19 = vpop.permute.xlu0 %1474 }
 0x676   : > { %v1495_v56 = vsel %vm1493_vm7, %v1492_v18, %v1475_v19 }
 0x677   : > { %v1498_v26 = vsel %vm1496_vm8, %v1495_v56, %v1478_v24 }
 0x678   : > { %4338 = vmatmul.mubr.msk.bf16.vlgmr.msra.gmra.mxu0 %vm418_vm0, %v1498_v26 }
 0x679   : > { %v1728_v31 = vpop.permute.xlu0 %1727  ;;  %4343 = vmatprep.mubr.msk.bf16.mxu0 %vm5035_vm1, %v5032_v20 }
 0x67a   : > { %v1733_v36 = vsel %vm506_vm2, %v1728_v31, 0 }
 0x67b   : > { %4342 = vmatpush3.bf16.xpose.msra.mxu0 %v1733_v36 }
 0x67c   : > { %4353 = vmatprep.subr.bf16.mxu0 %v5032_v20 }
 0x682   : > { %4344 = vmatmul.mubr.msk.bf16.vlgmr.msra.gmra.mxu0 %vm506_vm2, %v5548_v2 }
 0x683   : > { %v1824_v61 = vpop.permute.xlu1 %1823  ;;  %4355 = vmatprep.mubr.msk.bf16.mxu0 %vm5035_vm1, %v5032_v20 }
 0x684   : > { %v1829_v1 = vsel %vm506_vm2, %v1824_v61, 0 }
 0x685   : > { %4354 = vmatpush3.bf16.xpose.msra.mxu0 %v1829_v1 }
 0x686   : > { %4365 = vmatprep.subr.bf16.mxu0 %v5032_v20 }
 0x687   : > { %v1920_v6 = vpop.permute.xlu0 %1919 }
 0x688   : > { %v1925_v7 = vsel %vm506_vm2, %v1920_v6, 0 }
 0x68b   : > { %v2016_v2 = vpop.permute.xlu1 %2015 }
 0x68c   : > { %4356 = vmatmul.mubr.msk.bf16.vlgmr.msra.gmra.mxu0 %vm506_vm2, %v1701_v33  ;;  %v2021_v11 = vsel %vm506_vm2, %v2016_v2, 0 }
 0x68d   : > { %4366 = vmatpush3.bf16.xpose.msra.mxu0 %v1925_v7  ;;  %4367 = vmatprep.mubr.msk.bf16.mxu0 %vm5035_vm1, %v5032_v20 }
 0x68e   : > { %4377 = vmatprep.subr.bf16.mxu0 %v5032_v20 }
 0x694   : > { %4368 = vmatmul.mubr.msk.bf16.vlgmr.msra.gmra.mxu0 %vm506_vm2, %v1705_v57 }
 0x695   : > { %4378 = vmatpush3.bf16.xpose.msra.mxu0 %v2021_v11  ;;  %4379 = vmatprep.mubr.msk.bf16.mxu0 %vm5035_vm1, %v5032_v20 }
 0x696   : > { %4389 = vmatprep.subr.bf16.mxu0 %v5032_v20 }
 0x69c   : > { %4380 = vmatmul.mubr.msk.bf16.vlgmr.msra.gmra.mxu0 %vm506_vm2, %v1709_v40 }
 0x69d   : > { %4390 = vmatpush3.bf16.msra.mxu0 %v2220_v17  ;;  %4391 = vmatprep.mubr.msk.bf16.mxu0 %vm5035_vm1, %v5032_v20 }
 0x69e   : > { %4401 = vmatprep.subr.bf16.mxu0 %v5032_v20 }
 0x6d5   : > { %v1817_v45 = vpop.f32.mrf.mxu1 }
 0x6d6   : > { %v5701_v21 = vmul.f32 0.35355338, %v1817_v45 }
 0x6d7   : > { %v4351_v22 = vpop.f32.mrf.mxu1 }
 0x6d8   : > { %v2122_v44 = vsel %vm506_vm2, %v5701_v21, -inf }
 0x6d9   : > { %2123 = vmax.xlane.f32.xlu0 %v2122_v44  ;;  %v1820_v23 = vpop.f32.mrf.mxu1 }
 0x6db   : > { %v4352_v25 = vpop.f32.mrf.mxu1 }
 0x6dd   : > { %v1913_v27 = vpop.f32.mrf.mxu1 }
 0x6de   : > { %v5705_v29 = vmul.f32 0.35355338, %v1913_v27 }
 0x6df   : > { %v4363_v30 = vpop.f32.mrf.mxu1 }
 0x6e0   : > { %v2128_v43 = vsel %vm506_vm2, %v5705_v29, -inf }
 0x6e1   : > { %v1916_v4 = vpop.f32.mrf.mxu1  ;;  %2129 = vmax.xlane.f32.xlu1 %v2128_v43 }
 0x6e3   : > { %v4364_v35 = vpop.f32.mrf.mxu1 }
 0x6e5   : > { %v2009_v46 = vpop.f32.mrf.mxu1 }
 0x6e6   : > { %v5709_v10 = vmul.f32 0.35355338, %v2009_v46 }
 0x6e7   : > { %v4375_v37 = vpop.f32.mrf.mxu1 }
 0x6e8   : > { %v2134_v39 = vsel %vm506_vm2, %v5709_v10, -inf }
 0x6e9   : > { %2135 = vmax.xlane.f32.xlu0 %v2134_v39  ;;  %v2012_v47 = vpop.f32.mrf.mxu1 }
 0x6eb   : > { %v4376_v48 = vpop.f32.mrf.mxu1 }
 0x6ed   : > { %v2105_v50 = vpop.f32.mrf.mxu1 }
 0x6ee   : > { %v5713_v51 = vmul.f32 0.35355338, %v2105_v50 }
 0x6ef   : > { %v4387_v41 = vpop.f32.mrf.mxu1 }
 0x6f0   : > { %v2140_v32 = vsel %vm506_vm2, %v5713_v51, -inf }
 0x6f1   : > { %2141 = vmax.xlane.f32.xlu0 %v2140_v32  ;;  %v2108_v52 = vpop.f32.mrf.mxu1 }
 0x6f3   : > { %v4388_v53 = vpop.f32.mrf.mxu1 }
 0x738   : > { %v1565_v33 = vpop.f32.mrf.mxu0 }
 0x739   : > { %v1566_v34 = vadd.f32 %v4044_v55, %v1565_v33 }
 0x73a   : > { %v4339_v57 = vpop.f32.mrf.mxu0 }
 0x73b   : > { %v1572_v60 = vadd.f32 %v4839_v59, %v1566_v34 }
 0x73c   : > { %v1568_v40 = vpop.f32.mrf.mxu0 }
 0x73d   : > { %1574 = vst.msk [vmem:[#allocation2] sm:$0xff] %vm418_vm0, %v1572_v60  ;;  %v1569_v58 = vadd.f32 %v4044_v55, %v1568_v40 }
 0x73e   : > { %v4340_v38 = vpop.f32.mrf.mxu0 }
 0x73f   : > { %v1573_v54 = vadd.f32 %v4840_v62, %v1569_v58 }
 0x741   : > { %1575 = vst.msk [vmem:[#allocation2 + $0x8] sm:$0xff] %vm418_vm0, %v1573_v54 }
 0x742   : > { %v1769_v3 = vpop.f32.mrf.mxu0 }
 0x743   : > { %v2111_v5 = vmul.f32 0.35355338, %v1769_v3 }
 0x744   : > { %v4345_v8 = vpop.f32.mrf.mxu0 }
 0x745   : > { %v2119_v9 = vsel %vm506_vm2, %v2111_v5, -inf }
 0x746   : > { %2120 = vmax.xlane.f32.xlu1 %v2119_v9  ;;  %v1772_v15 = vpop.f32.mrf.mxu0 }
 0x748   : > { %v4346_v42 = vpop.f32.mrf.mxu0 }
 0x74c   : > { %v1865_v63 = vpop.f32.mrf.mxu0 }
 0x74d   : > { %v2113_v18 = vmul.f32 0.35355338, %v1865_v63 }
 0x74e   : > { %v4357_v19 = vpop.f32.mrf.mxu0 }
 0x74f   : > { %v2125_v24 = vsel %vm506_vm2, %v2113_v18, -inf }
 0x750   : > { %2126 = vmax.xlane.f32.xlu0 %v2125_v24  ;;  %v1868_v56 = vpop.f32.mrf.mxu0 }
 0x752   : > { %v4358_v26 = vpop.f32.mrf.mxu0 }
 0x754   : > { %v1961_v31 = vpop.f32.mrf.mxu0 }
 0x755   : > { %v2115_v36 = vmul.f32 0.35355338, %v1961_v31 }
 0x756   : > { %v4369_v61 = vpop.f32.mrf.mxu0 }
 0x757   : > { %v2131_v1 = vsel %vm506_vm2, %v2115_v36, -inf }
 0x758   : > { %2132 = vmax.xlane.f32.xlu1 %v2131_v1  ;;  %v1964_v6 = vpop.f32.mrf.mxu0 }
 0x75a   : > { %v4370_v7 = vpop.f32.mrf.mxu0 }
 0x75c   : > { %v2057_v2 = vpop.f32.mrf.mxu0 }
 0x75d   : > { %v2117_v11 = vmul.f32 0.35355338, %v2057_v2 }
 0x75e   : > { %v4381_v17 = vpop.f32.mrf.mxu0 }
 0x75f   : > { %v2137_v45 = vsel %vm506_vm2, %v2117_v11, -inf }
 0x760   : > { %2138 = vmax.xlane.f32.xlu1 %v2137_v45  ;;  %v2060_v22 = vpop.f32.mrf.mxu0 }
 0x762   : > { %v4382_v44 = vpop.f32.mrf.mxu0  ;;  %v2124_v23 = vpop.xlane.xlu0 %2123 }
 0x763   : > { %v2144_v25 = vsub.f32 %v5701_v21, %v2124_v23 }
 0x765   : > { %v2153_v27 = vmul.f32 1.442695, %v2144_v25 }
 0x767   : > { %4771 = vpow2.f32 %v2153_v27 }
 0x76a   : > { %v2130_v30 = vpop.xlane.xlu1 %2129 }
 0x76b   : > { %v2146_v43 = vsub.f32 %v5705_v29, %v2130_v30  ;;  %v4689_v30 = vld [vmem:[#allocation6 + $0x34] ss:$8 sps:$4 sm:$0xff]  }
 0x76d   : > { %v2157_v4 = vmul.f32 1.442695, %v2146_v43 }
 0x76f   : > { %4773 = vpow2.f32 %v2157_v4 }
 0x771   : > { %1713 = vrot.lane.b32.xlu1 %v5693_v16, %s5034_s9 }
 0x772   : > { %v2136_v37 = vpop.xlane.xlu0 %2135 }
 0x773   : > { %v2148_v21 = vsub.f32 %v5709_v10, %v2136_v37 }
 0x774   : > { %v4772_v35 = vpop.eup %4771 }
 0x775   : > { %v2170_v46 = vsel %vm506_vm2, %v4772_v35, 0.0  ;;  %v2161_v41 = vmul.f32 1.442695, %v2148_v21  ;;  %v4693_v21 = vld [vmem:[#allocation6 + $0x10] ss:$8 sps:$4 sm:$0xff]  }
 0x776   : > { %2171 = vadd.xlane.f32.xlu0 %v2170_v46  ;;  %v4687_v46 = vld [vmem:[#allocation6 + $0x30] ss:$8 sps:$4 sm:$0xff]  }
 0x77a   : > { %v2142_v39 = vpop.xlane.xlu0 %2141 }
 0x77b   : > { %v2150_v47 = vsub.f32 %v5713_v51, %v2142_v39  ;;  %v4692_v39 = vld [vmem:[#allocation6 + $0x24] ss:$8 sps:$4 sm:$0xff]  }
 0x77c   : > { %v5734_v48 = vpop.eup %4773 }
 0x77d   : > { %v2165_v50 = vmul.f32 1.442695, %v2150_v47  ;;  %v2176_v29 = vsel %vm506_vm2, %v5734_v48, 0.0  ;;  %v4690_v47 = vld [vmem:[#allocation6 + $0x20] ss:$8 sps:$4 sm:$0xff]  }
 0x77e   : > { %2177 = vadd.xlane.f32.xlu0 %v2176_v29  ;;  %v4696_v29 = vld [vmem:[#allocation6] ss:$8 sps:$4 sm:$0xff]  }
 0x77f   : > { %4775 = vpow2.f32 %v2165_v50  ;;  %v4698_v50 = vld [vmem:[#allocation6 + $0x4] ss:$8 sps:$4 sm:$0xff]  }
 0x780   : > { %4777 = vpow2.f32 %v2161_v41 }
 0x78c   : > { %v5739_v32 = vpop.eup %4775 }
 0x78d   : > { %v2188_v52 = vsel %vm506_vm2, %v5739_v32, 0.0  ;;  %v5743_v53 = vpop.eup %4777 }
 0x78e   : > { %2189 = vadd.xlane.f32.xlu0 %v2188_v52  ;;  %v2182_v51 = vsel %vm506_vm2, %v5743_v53, 0.0 }
 0x795   : > { %2183 = vadd.xlane.f32.xlu1 %v2182_v51 }
 0x7a4   : > { %1717 = vrot.lane.b32.xlu0 %v5693_v16, %s5033_s30 }
 0x7a6   : > { %1721 = vrot.lane.b32.xlu1 %v5693_v16, %s5036_s14 }
 0x7aa   : > { %1725 = vrot.lane.b32.xlu1 %v5693_v16, %s5039_s15 }
 0x7cf   : > { %v2121_v10 = vpop.xlane.xlu1 %2120 }
 0x7d0   : > { %v2143_v55 = vsub.f32 %v2111_v5, %v2121_v10 }
 0x7d2   : > { %v2151_v33 = vmul.f32 1.442695, %v2143_v55 }
 0x7d4   : > { %4779 = vpow2.f32 %v2151_v33 }
 0x7d9   : > { %v2127_v34 = vpop.xlane.xlu0 %2126 }
 0x7da   : > { %v2145_v57 = vsub.f32 %v2113_v18, %v2127_v34 }
 0x7dc   : > { %v2155_v59 = vmul.f32 1.442695, %v2145_v57 }
 0x7de   : > { %4781 = vpow2.f32 %v2155_v59 }
 0x7e1   : > { %v5753_v60 = vpop.eup %4779  ;;  %v2133_v40 = vpop.xlane.xlu1 %2132 }
 0x7e2   : > { %v2147_v58 = vsub.f32 %v2115_v36, %v2133_v40  ;;  %v2167_v38 = vsel %vm506_vm2, %v5753_v60, 0.0 }
 0x7e3   : > { %2168 = vadd.xlane.f32.xlu0 %v2167_v38 }
 0x7e4   : > { %v2159_v62 = vmul.f32 1.442695, %v2147_v58 }
 0x7e6   : > { %4783 = vpow2.f32 %v2159_v62 }
 0x7e9   : > { %v2139_v54 = vpop.xlane.xlu1 %2138 }
 0x7ea   : > { %v2149_v3 = vsub.f32 %v2117_v11, %v2139_v54 }
 0x7eb   : > { %v5757_v8 = vpop.eup %4781 }
 0x7ec   : > { %v2163_v5 = vmul.f32 1.442695, %v2149_v3  ;;  %v2173_v9 = vsel %vm506_vm2, %v5757_v8, 0.0 }
 0x7ed   : > { %v1714_v15 = vpop.permute.xlu1 %1713  ;;  %2174 = vadd.xlane.f32.xlu1 %v2173_v9 }
 0x7ee   : > { %4785 = vpow2.f32 %v2163_v5  ;;  %v2266_v42 = vsel %vm2218_vm9, %v1714_v15, 0 }
 0x7ef   : > { %4396 = vmatpush3.bf16.msra.mxu1 %v2266_v42 }
 0x7f0   : > { %4407 = vmatprep.subr.bf16.mxu1 %v5032_v20 }
 0x7f3   : > { %v5763_v63 = vpop.eup %4783 }
 0x7f4   : > { %v2179_v18 = vsel %vm506_vm2, %v5763_v63, 0.0 }
 0x7f5   : > { %2180 = vadd.xlane.f32.xlu0 %v2179_v18 }
 0x7fb   : > { %v5767_v19 = vpop.eup %4785 }
 0x7fc   : > { %v2185_v24 = vsel %vm506_vm2, %v5767_v19, 0.0 }
 0x7fd   : > { %2186 = vadd.xlane.f32.xlu0 %v2185_v24 }
 0x7fe   : > { %1715 = vrot.lane.b32.xlu1 %v5693_v16, %s5037_s19 }
 0x7ff   : > { %v2172_v56 = vpop.xlane.xlu0 %2171 }
 0x800   : > { %4787 = vrcp.f32 %v2172_v56 }
 0x802   : > { %1723 = vrot.lane.b32.xlu1 %v5693_v16, %s5041_s12 }
 0x807   : > { %v2178_v26 = vpop.xlane.xlu0 %2177 }
 0x808   : > { %4789 = vrcp.f32 %v2178_v26 }
 0x80d   : > { %v4788_v31 = vpop.eup %4787 }
 0x80e   : > { %v2200_v36 = vmul.f32 %v4788_v31, %v4772_v35 }
 0x810   : > { %v2208_v61 = vpack.c.bf16 %v2200_v36, %v2200_v36 }
 0x812   : > { %4398 = vmatmul.mubr.msk.bf16.vlgmr.msra.gmra.mxu1 %vm506_vm2, %v2208_v61 }
 0x813   : > { %1719 = vrot.lane.b32.xlu0 %v5693_v16, %s5040_s18  ;;  %4409 = vmatprep.mubr.msk.bf16.mxu1 %vm5035_vm1, %v5032_v20 }
 0x815   : > { %v4790_v1 = vpop.eup %4789 }
 0x816   : > { %v2202_v7 = vmul.f32 %v4790_v1, %v5734_v48  ;;  %v4695_v48 = vld [vmem:[#allocation6 + $0x14] ss:$8 sps:$4 sm:$0xff]  }
 0x817   : > { %v2190_v6 = vpop.xlane.xlu0 %2189 }
 0x818   : > { %v2210_v45 = vpack.c.bf16 %v2202_v7, %v2202_v7 }
 0x81b   : > { %v1718_v2 = vpop.permute.xlu0 %1717 }
 0x81c   : > { %v2358_v11 = vsel %vm2218_vm9, %v1718_v2, 0 }
 0x81d   : > { %4408 = vmatpush3.bf16.msra.mxu1 %v2358_v11  ;;  %v2711_v11 = vld [vmem:[#allocation8] sm:$0x3] }
 0x81e   : > { %v2184_v17 = vpop.xlane.xlu1 %2183  ;;  %4419 = vmatprep.subr.bf16.mxu1 %v5032_v20 }
 0x81f   : > { %4791 = vrcp.f32 %v2184_v17  ;;  %v2725_v17 = vrot.slane %v2711_v11, %v5263_v14 }
 0x820   : > { %4410 = vmatmul.mubr.msk.bf16.vlgmr.msra.gmra.mxu1 %vm506_vm2, %v2210_v45  ;;  %4793 = vrcp.f32 %v2190_v6  ;;  %v2729_v45 = vrot.slane %v2711_v11, %v5329_v49 }
 0x821   : > { %4421 = vmatprep.mubr.msk.bf16.mxu1 %vm5035_vm1, %v5032_v20 }
 0x822   : > { %v1722_v16 = vpop.permute.xlu1 %1721 }
 0x823   : > { %v2450_v22 = vsel %vm2218_vm9, %v1722_v16, 0 }
 0x824   : > { %4420 = vmatpush3.bf16.msra.mxu1 %v2450_v22 }
 0x825   : > { %4431 = vmatprep.subr.bf16.mxu1 %v5032_v20 }
 0x826   : > { %v1726_v25 = vpop.permute.xlu1 %1725 }
 0x827   : > { %v2542_v4 = vsel %vm2218_vm9, %v1726_v25, 0 }
 0x82c   : > { %v4792_v44 = vpop.eup %4791 }
 0x82d   : > { %v2204_v23 = vmul.f32 %v4792_v44, %v5743_v53  ;;  %v4794_v43 = vpop.eup %4793 }
 0x82e   : > { %v2206_v35 = vmul.f32 %v4794_v43, %v5739_v32 }
 0x82f   : > { %v2212_v27 = vpack.c.bf16 %v2204_v23, %v2204_v23 }
 0x830   : > { %v2214_v37 = vpack.c.bf16 %v2206_v35, %v2206_v35 }
 0x831   : > { %4422 = vmatmul.mubr.msk.bf16.vlgmr.msra.gmra.mxu1 %vm506_vm2, %v2212_v27 }
 0x832   : > { %4432 = vmatpush3.bf16.msra.mxu1 %v2542_v4  ;;  %4433 = vmatprep.mubr.msk.bf16.mxu1 %vm5035_vm1, %v5032_v20 }
 0x833   : > { %2780 = vmatprep.subr.bf16.mxu1 %v4689_v30 }
 0x839   : > { %4434 = vmatmul.mubr.msk.bf16.vlgmr.msra.gmra.mxu1 %vm506_vm2, %v2214_v37 }
 0x83a   : > { %2781 = vmatpush1.bf16.msra.mxu1 %v4687_v46  ;;  %2804 = vmatprep.mubr.bf16.mxu1 %v5031_v0  ;;  %v4699_v46 = vld [vmem:[#allocation9 + $0x38] sm:$0xff]  }
 0x83b   : > { %2782 = vmatprep.subr.bf16.mxu1 %v4692_v39  ;;  %v4700_v39 = vld [vmem:[#allocation9 + $0x30] sm:$0xff]  }
 0x83e   : > { %2783 = vmatpush1.bf16.msra.mxu1 %v4690_v47 }
 0x83f   : > { %2784 = vmatprep.subr.bf16.mxu1 %v4695_v48 }
 0x842   : > { %2785 = vmatpush1.bf16.msra.mxu1 %v4693_v21  ;;  %v4701_v21 = vld [vmem:[#allocation9 + $0x28] sm:$0xff]  }
 0x843   : > { %2786 = vmatprep.subr.bf16.mxu1 %v4698_v50 }
 0x846   : > { %2787 = vmatpush1.bf16.msra.mxu1 %v4696_v29  ;;  %v4702_v29 = vld [vmem:[#allocation9 + $0x20] sm:$0xff]  }
 0x847   : > { %4455 = vmatprep.subr.bf16.mxu1 %v5032_v20 }
 0x849   : > { %4090 = vmatmul.mubr.msk.bf16.vlgmr.msra.gmra.mxu1 %vm418_vm0, %v5470_v28 }
 0x84a   : > { %4457 = vmatprep.mubr.msk.bf16.mxu1 %vm5035_vm1, %v5032_v20 }
 0x86c   : > { %v2169_v41 = vpop.xlane.xlu0 %2168 }
 0x86d   : > { %4795 = vrcp.f32 %v2169_v41 }
 0x876   : > { %v2175_v0 = vpop.xlane.xlu1 %2174 }
 0x877   : > { %4797 = vrcp.f32 %v2175_v0 }
 0x87a   : > { %v4796_v32 = vpop.eup %4795  ;;  %v1716_v53 = vpop.permute.xlu1 %1715 }
 0x87b   : > { %v2199_v52 = vmul.f32 %v4796_v32, %v5753_v60  ;;  %v2312_v55 = vsel %vm2218_vm9, %v1716_v53, 0 }
 0x87d   : > { %v2207_v51 = vpack.c.bf16 %v2199_v52, %v2199_v52 }
 0x87e   : > { %v2181_v10 = vpop.xlane.xlu0 %2180  ;;  %v1724_v38 = vpop.permute.xlu1 %1723 }
 0x87f   : > { %4799 = vrcp.f32 %v2181_v10  ;;  %4392 = vmatmul.mubr.msk.bf16.vlgmr.msra.gmra.mxu0 %vm506_vm2, %v2207_v51  ;;  %v2496_v54 = vsel %vm2218_vm9, %v1724_v38, 0 }
 0x880   : > { %4402 = vmatpush3.bf16.msra.mxu0 %v2312_v55  ;;  %4403 = vmatprep.mubr.msk.bf16.mxu0 %vm5035_vm1, %v5032_v20 }
 0x881   : > { %4413 = vmatprep.subr.bf16.mxu0 %v5032_v20 }
 0x884   : > { %v4798_v28 = vpop.eup %4797 }
 0x885   : > { %v2201_v33 = vmul.f32 %v4798_v28, %v5757_v8 }
 0x886   : > { %v2187_v34 = vpop.xlane.xlu0 %2186 }
 0x887   : > { %4801 = vrcp.f32 %v2187_v34  ;;  %v2209_v57 = vpack.c.bf16 %v2201_v33, %v2201_v33 }
 0x889   : > { %4404 = vmatmul.mubr.msk.bf16.vlgmr.msra.gmra.mxu0 %vm506_vm2, %v2209_v57 }
 0x88a   : > { %v1720_v59 = vpop.permute.xlu0 %1719  ;;  %4415 = vmatprep.mubr.msk.bf16.mxu0 %vm5035_vm1, %v5032_v20 }
 0x88b   : > { %v2404_v60 = vsel %vm2218_vm9, %v1720_v59, 0 }
 0x88c   : > { %v4800_v40 = vpop.eup %4799  ;;  %4414 = vmatpush3.bf16.msra.mxu0 %v2404_v60 }
 0x88d   : > { %4425 = vmatprep.subr.bf16.mxu0 %v5032_v20  ;;  %v2203_v58 = vmul.f32 %v4800_v40, %v5763_v63 }
 0x88f   : > { %v2211_v62 = vpack.c.bf16 %v2203_v58, %v2203_v58 }
 0x891   : > { %4416 = vmatmul.mubr.msk.bf16.vlgmr.msra.gmra.mxu0 %vm506_vm2, %v2211_v62 }
 0x892   : > { %4426 = vmatpush3.bf16.msra.mxu0 %v2496_v54  ;;  %4427 = vmatprep.mubr.msk.bf16.mxu0 %vm5035_vm1, %v5032_v20 }
 0x893   : > { %4437 = vmatprep.subr.bf16.mxu0 %v5032_v20 }
 0x894   : > { %v4802_v3 = vpop.eup %4801 }
 0x895   : > { %v2205_v8 = vmul.f32 %v4802_v3, %v5767_v19 }
 0x897   : > { %v2213_v5 = vpack.c.bf16 %v2205_v8, %v2205_v8 }
 0x899   : > { %4428 = vmatmul.mubr.msk.bf16.vlgmr.msra.gmra.mxu0 %vm506_vm2, %v2213_v5 }
 0x89a   : > { %4445 = vmatprep.mubr.msk.bf16.mxu0 %vm5035_vm1, %v5032_v20  ;;  %4438 = vmatpush3.bf16.msra.mxu0 %v4699_v46 }
 0x89b   : > { %4439 = vmatprep.subr.bf16.mxu0 %v5032_v20 }
 0x89e   : > { %4440 = vmatpush3.bf16.msra.mxu0 %v4700_v39 }
 0x89f   : > { %4441 = vmatprep.subr.bf16.mxu0 %v5032_v20 }
 0x8a2   : > { %4442 = vmatpush3.bf16.msra.mxu0 %v4701_v21 }
 0x8a3   : > { %4443 = vmatprep.subr.bf16.mxu0 %v5032_v20 }
 0x8a6   : > { %4444 = vmatpush3.bf16.msra.mxu0 %v4702_v29 }
 0x8a7   : > { %4449 = vmatprep.subr.bf16.mxu0 %v5032_v20 }
 0x8d2   : > { %v2302_v9 = vpop.f32.mrf.mxu1 }
 0x8d3   : > { %v2585_v14 = vpack.c.bf16 %v2302_v9, %v2302_v9 }
 0x8d4   : > { %v4399_v15 = vpop.f32.mrf.mxu1 }
 0x8d6   : > { %v2305_v42 = vpop.f32.mrf.mxu1 }
 0x8d8   : > { %v4400_v63 = vpop.f32.mrf.mxu1 }
 0x8e0   : > { %v2394_v18 = vpop.f32.mrf.mxu1 }
 0x8e1   : > { %v2587_v49 = vpack.c.bf16 %v2394_v18, %v2394_v18 }
 0x8e2   : > { %v4411_v24 = vpop.f32.mrf.mxu1 }
 0x8e4   : > { %v2397_v56 = vpop.f32.mrf.mxu1 }
 0x8e6   : > { %v4412_v26 = vpop.f32.mrf.mxu1 }
 0x8f1   : > { %v2486_v31 = vpop.f32.mrf.mxu1 }
 0x8f2   : > { %v2589_v43 = vpack.c.bf16 %v2486_v31, %v2486_v31 }
 0x8f3   : > { %v4423_v36 = vpop.f32.mrf.mxu1 }
 0x8f5   : > { %v2489_v61 = vpop.f32.mrf.mxu1 }
 0x8f7   : > { %v4424_v1 = vpop.f32.mrf.mxu1 }
 0x8f9   : > { %v2578_v6 = vpop.f32.mrf.mxu1 }
 0x8fa   : > { %v2591_v4 = vpack.c.bf16 %v2578_v6, %v2578_v6 }
 0x8fb   : > { %v4435_v19 = vpop.f32.mrf.mxu1 }
 0x8fd   : > { %v2581_v7 = vpop.f32.mrf.mxu1 }
 0x8ff   : > { %v4436_v2 = vpop.f32.mrf.mxu1 }
 0x909   : > { %v2806_v16 = vpop.f32.mrf.mxu1 }
 0x90a   : > { %v2807_v22 = vadd.f32 %v2806_v16, %v2725_v17 }
 0x90b   : > { %v2808_v44 = vpop.f32.mrf.mxu1 }
 0x90c   : > { %v5825_v23 = vpack.c.bf16 %v2807_v22, %v2807_v22  ;;  %v5827_v25 = vadd.f32 %v2808_v44, %v2729_v45 }
 0x90d   : > { %v2810_v27 = vpop.f32.mrf.mxu1 }
 0x90e   : > { %2818 = vrot.lane.b32.xlu0 %v5825_v23, %s5037_s19  ;;  %2816 = vrot.lane.b32.xlu1 %v5825_v23, %s5034_s9 }
 0x90f   : > { %v2811_v30 = vpop.f32.mrf.mxu1 }
 0x912   : > { %2822 = vrot.lane.b32.xlu0 %v5825_v23, %s5040_s18  ;;  %2820 = vrot.lane.b32.xlu1 %v5825_v23, %s5033_s30 }
 0x916   : > { %2826 = vrot.lane.b32.xlu0 %v5825_v23, %s5041_s12  ;;  %2824 = vrot.lane.b32.xlu1 %v5825_v23, %s5036_s14 }
 0x91a   : > { %2593 = vrot.lane.b32.xlu0 %v2585_v14, %s5042_s10  ;;  %2828 = vrot.lane.b32.xlu1 %v5825_v23, %s5039_s15 }
 0x91e   : > { %2599 = vrot.lane.b32.xlu0 %v2587_v49, %s6180_s16  ;;  %s6201_s16 = smov 64  }
 0x922   : > { %2605 = vrot.lane.b32.xlu0 %v2589_v43, %s6198_s21 }
 0x926   : > { %2611 = vrot.lane.b32.xlu0 %v2591_v4, %s6199_s22  ;;  %v5914_v4 = vpack.c.bf16 %v5827_v25, %v5827_v25  ;;  %v4076_v25 = vld [vmem:[%s6161_s4 + $0x1] ss:$0 sm:$0xff] }
 0x93f   : > { %v2256_v35 = vpop.f32.mrf.mxu0 }
 0x940   : > { %v2584_v15 = vpack.c.bf16 %v2256_v35, %v2256_v35 }
 0x941   : > { %v4393_v37 = vpop.f32.mrf.mxu0 }
 0x942   : > { %v3350_v37 = vsel %vm2218_vm9, %v5914_v4, 0 }
 0x943   : > { %v2259_v47 = vpop.f32.mrf.mxu0 }
 0x945   : > { %v4394_v48 = vpop.f32.mrf.mxu0 }
 0x946   : > { %v1576_v48 = vld [vmem:[#allocation2 + $0x8] sm:$0xff] }
 0x949   : > { %v2348_v50 = vpop.f32.mrf.mxu0 }
 0x94a   : > { %v2586_v41 = vpack.c.bf16 %v2348_v50, %v2348_v50 }
 0x94b   : > { %v4405_v0 = vpop.f32.mrf.mxu0 }
 0x94c   : > { %2596 = vrot.lane.b32.xlu1 %v2586_v41, %s5046_s1  ;;  %v5938_v41 = vand.u32 127, %v368_v12 }
 0x94d   : > { %v2351_v32 = vpop.f32.mrf.mxu0 }
 0x94e   : > { %vm3239_vm10 = vcmp.ge.s32.totalorder %v5938_v41, 4 }
 0x94f   : > { %v4406_v52 = vpop.f32.mrf.mxu0 }
 0x951   : > { %v2440_v53 = vpop.f32.mrf.mxu0 }
 0x952   : > { %v2588_v51 = vpack.c.bf16 %v2440_v53, %v2440_v53 }
 0x953   : > { %v4417_v10 = vpop.f32.mrf.mxu0 }
 0x954   : > { %2602 = vrot.lane.b32.xlu1 %v2588_v51, %s6181_s11  ;;  %s6204_s11 = sshll.u32 %s5232_s17, 4 }
 0x955   : > { %v2443_v55 = vpop.f32.mrf.mxu0 }
 0x957   : > { %v4418_v28 = vpop.f32.mrf.mxu0 }
 0x959   : > { %v2532_v33 = vpop.f32.mrf.mxu0 }
 0x95a   : > { %v2590_v34 = vpack.c.bf16 %v2532_v33, %v2532_v33 }
 0x95b   : > { %v4429_v57 = vpop.f32.mrf.mxu0 }
 0x95c   : > { %2608 = vrot.lane.b32.xlu1 %v2590_v34, %s6200_s13 }
 0x95d   : > { %v2535_v59 = vpop.f32.mrf.mxu0 }
 0x95f   : > { %v4430_v60 = vpop.f32.mrf.mxu0 }
 0x960   : > { %2845 = vrot.lane.b32.xlu1 %v5825_v23, %s6201_s16 }
 0x980   : > { %v2817_v40 = vpop.permute.xlu1 %2816  ;;  %v2819_v58 = vpop.permute.xlu0 %2818 }
 0x981   : > { %2893 = vrot.lane.b32.xlu0 %v2817_v40, %s6201_s16  ;;  %2941 = vrot.lane.b32.xlu1 %v2819_v58, %s6201_s16 }
 0x984   : > { %v2821_v38 = vpop.permute.xlu1 %2820  ;;  %v2823_v62 = vpop.permute.xlu0 %2822 }
 0x985   : > { %2989 = vrot.lane.b32.xlu0 %v2821_v38, %s6201_s16  ;;  %3037 = vrot.lane.b32.xlu1 %v2823_v62, %s6201_s16 }
 0x988   : > { %v5860_v54 = vpop.permute.xlu1 %2824  ;;  %v5862_v3 = vpop.permute.xlu0 %2826 }
 0x989   : > { %3085 = vrot.lane.b32.xlu0 %v5860_v54, %s6201_s16  ;;  %3133 = vrot.lane.b32.xlu1 %v5862_v3, %s6201_s16 }
 0x98c   : > { %v5868_v8 = vpop.permute.xlu1 %2828  ;;  %v2594_v5 = vpop.permute.xlu0 %2593 }
 0x98d   : > { %3181 = vrot.lane.b32.xlu0 %v5868_v8, %s6201_s16  ;;  %v2615_v63 = vsel %vm506_vm2, %v2584_v15, %v2594_v5 }
 0x990   : > { %v2600_v9 = vpop.permute.xlu0 %2599 }
 0x994   : > { %v2606_v56 = vpop.permute.xlu0 %2605 }
 0x998   : > { %v2612_v1 = vpop.permute.xlu0 %2611 }
 0x9be   : > { %v2597_v42 = vpop.permute.xlu1 %2596 }
 0x9bf   : > { %v2617_v18 = vsel %vm913_vm3, %v2615_v63, %v2597_v42 }
 0x9c0   : > { %v2619_v26 = vsel %vm1484_vm4, %v2617_v18, %v2600_v9 }
 0x9c6   : > { %v2603_v24 = vpop.permute.xlu1 %2602 }
 0x9c7   : > { %v2621_v31 = vsel %vm1487_vm5, %v2619_v26, %v2603_v24 }
 0x9c8   : > { %v2623_v61 = vsel %vm1490_vm6, %v2621_v31, %v2606_v56 }
 0x9ce   : > { %v2609_v36 = vpop.permute.xlu1 %2608 }
 0x9cf   : > { %v2625_v6 = vsel %vm1493_vm7, %v2623_v61, %v2609_v36 }
 0x9d0   : > { %v2627_v19 = vsel %vm1496_vm8, %v2625_v6, %v2612_v1 }
 0x9d1   : > { %4446 = vmatmul.mubr.msk.bf16.vlgmr.msra.gmra.mxu0 %vm418_vm0, %v2627_v19 }
 0x9d2   : > { %v2846_v7 = vpop.permute.xlu1 %2845  ;;  %4451 = vmatprep.mubr.msk.bf16.mxu0 %vm5035_vm1, %v5032_v20 }
 0x9d3   : > { %v2851_v2 = vsel %vm506_vm2, %v2846_v7, 0 }
 0x9d4   : > { %4450 = vmatpush3.bf16.xpose.msra.mxu0 %v2851_v2 }
 0x9d5   : > { %4461 = vmatprep.subr.bf16.mxu0 %v5032_v20 }
 0x9db   : > { %4452 = vmatmul.mubr.msk.bf16.vlgmr.msra.gmra.mxu0 %vm506_vm2, %v5825_v23 }
 0x9dc   : > { %4463 = vmatprep.mubr.msk.bf16.mxu0 %vm5035_vm1, %v5032_v20 }
 0x9f3   : > { %v2942_v11 = vpop.permute.xlu1 %2941  ;;  %v2894_v17 = vpop.permute.xlu0 %2893 }
 0x9f4   : > { %v2947_v45 = vsel %vm506_vm2, %v2942_v11, 0  ;;  %v2899_v16 = vsel %vm506_vm2, %v2894_v17, 0 }
 0x9f5   : > { %4456 = vmatpush3.bf16.xpose.msra.mxu1 %v2899_v16  ;;  %4462 = vmatpush3.bf16.xpose.msra.mxu0 %v2947_v45 }
 0x9f6   : > { %4467 = vmatprep.subr.bf16.mxu1 %v5032_v20  ;;  %4473 = vmatprep.subr.bf16.mxu0 %v5032_v20 }
 0x9f7   : > { %v3038_v22 = vpop.permute.xlu1 %3037  ;;  %v2990_v44 = vpop.permute.xlu0 %2989 }
 0x9f8   : > { %v3043_v27 = vsel %vm506_vm2, %v3038_v22, 0  ;;  %v2995_v23 = vsel %vm506_vm2, %v2990_v44, 0 }
 0x9fb   : > { %v3134_v30 = vpop.permute.xlu1 %3133  ;;  %v3086_v14 = vpop.permute.xlu0 %3085 }
 0x9fc   : > { %4458 = vmatmul.mubr.msk.bf16.vlgmr.msra.gmra.mxu1 %vm506_vm2, %v2817_v40  ;;  %4464 = vmatmul.mubr.msk.bf16.vlgmr.msra.gmra.mxu0 %vm506_vm2, %v2819_v58  ;;  %v3139_v49 = vsel %vm506_vm2, %v3134_v30, 0  ;;  %v3091_v43 = vsel %vm506_vm2, %v3086_v14, 0 }
 0x9fd   : > { %4468 = vmatpush3.bf16.xpose.msra.mxu1 %v2995_v23  ;;  %4474 = vmatpush3.bf16.xpose.msra.mxu0 %v3043_v27 }
 0x9fe   : > { %4469 = vmatprep.mubr.msk.bf16.mxu1 %vm5035_vm1, %v5032_v20  ;;  %4475 = vmatprep.mubr.msk.bf16.mxu0 %vm5035_vm1, %v5032_v20 }
 0x9ff   : > { %4479 = vmatprep.subr.bf16.mxu1 %v5032_v20  ;;  %4485 = vmatprep.subr.bf16.mxu0 %v5032_v20  ;;  %v3182_v35 = vpop.permute.xlu0 %3181 }
 0xa00   : > { %v3187_v46 = vsel %vm506_vm2, %v3182_v35, 0 }
 0xa04   : > { %4470 = vmatmul.mubr.msk.bf16.vlgmr.msra.gmra.mxu1 %vm506_vm2, %v2821_v38  ;;  %4476 = vmatmul.mubr.msk.bf16.vlgmr.msra.gmra.mxu0 %vm506_vm2, %v2823_v62 }
 0xa05   : > { %4480 = vmatpush3.bf16.xpose.msra.mxu1 %v3091_v43  ;;  %4486 = vmatpush3.bf16.xpose.msra.mxu0 %v3139_v49 }
 0xa06   : > { %4481 = vmatprep.mubr.msk.bf16.mxu1 %vm5035_vm1, %v5032_v20  ;;  %4487 = vmatprep.mubr.msk.bf16.mxu0 %vm5035_vm1, %v5032_v20 }
 0xa07   : > { %4491 = vmatprep.subr.bf16.mxu1 %v5032_v20  ;;  %4497 = vmatprep.subr.bf16.mxu0 %v5032_v20 }
 0xa0c   : > { %4482 = vmatmul.mubr.msk.bf16.vlgmr.msra.gmra.mxu1 %vm506_vm2, %v5860_v54  ;;  %4488 = vmatmul.mubr.msk.bf16.vlgmr.msra.gmra.mxu0 %vm506_vm2, %v5862_v3 }
 0xa0d   : > { %4492 = vmatpush3.bf16.xpose.msra.mxu1 %v3187_v46  ;;  %4498 = vmatpush3.bf16.msra.mxu0 %v3350_v37 }
 0xa0e   : > { %4493 = vmatprep.mubr.msk.bf16.mxu1 %vm5035_vm1, %v5032_v20  ;;  %4503 = vmatprep.subr.bf16.mxu1 %v5032_v20 }
 0xa0f   : > { %4499 = vmatprep.mubr.msk.bf16.mxu0 %vm5035_vm1, %v5032_v20  ;;  %4509 = vmatprep.subr.bf16.mxu0 %v5032_v20 }
 0xa14   : > { %4494 = vmatmul.mubr.msk.bf16.vlgmr.msra.gmra.mxu1 %vm506_vm2, %v5868_v8 }
 0xa15   : > { %4505 = vmatprep.mubr.msk.bf16.mxu1 %vm5035_vm1, %v5032_v20 }
 0xa91   : > { %v2694_v39 = vpop.f32.mrf.mxu0 }
 0xa92   : > { %v2695_v47 = vadd.f32 %v4076_v25, %v2694_v39 }
 0xa93   : > { %v4447_v21 = vpop.f32.mrf.mxu0 }
 0xa94   : > { %v2700_v50 = vadd.f32 %v2695_v47, %v1576_v48 }
 0xa95   : > { %v2697_v29 = vpop.f32.mrf.mxu0 }
 0xa96   : > { %2701 = vst.msk [vmem:[#allocation2 + $0x8] sm:$0xff] %vm418_vm0, %v2700_v50 }
 0xa97   : > { %v4448_v0 = vpop.f32.mrf.mxu0 }
 0xa9b   : > { %v2887_v32 = vpop.f32.mrf.mxu0 }
 0xa9c   : > { %v3229_v52 = vmul.f32 0.35355338, %v2887_v32 }
 0xa9d   : > { %v4453_v53 = vpop.f32.mrf.mxu0 }
 0xa9e   : > { %v5943_v51 = vsel %vm3239_vm10, %v3229_v52, -1e+30 }
 0xa9f   : > { %v2890_v10 = vpop.f32.mrf.mxu0  ;;  %v3250_v55 = vsel %vm506_vm2, %v5943_v51, -inf }
 0xaa0   : > { %3251 = vmax.xlane.f32.xlu1 %v3250_v55 }
 0xaa1   : > { %v4454_v28 = vpop.f32.mrf.mxu0 }
 0xabc   : > { %v2935_v33 = vpop.f32.mrf.mxu1  ;;  %v2983_v34 = vpop.f32.mrf.mxu0 }
 0xabd   : > { %v3230_v12 = vmul.f32 0.35355338, %v2935_v33  ;;  %v3231_v57 = vmul.f32 0.35355338, %v2983_v34 }
 0xabe   : > { %v4459_v59 = vpop.f32.mrf.mxu1  ;;  %v4465_v60 = vpop.f32.mrf.mxu0 }
 0xabf   : > { %v3243_v40 = vsel %vm3239_vm10, %v3230_v12, -1e+30  ;;  %v3244_v54 = vsel %vm3239_vm10, %v3231_v57, -1e+30 }
 0xac0   : > { %v2938_v58 = vpop.f32.mrf.mxu1  ;;  %v2986_v38 = vpop.f32.mrf.mxu0  ;;  %v3253_v62 = vsel %vm506_vm2, %v3243_v40, -inf  ;;  %v3256_v15 = vsel %vm506_vm2, %v3244_v54, -inf }
 0xac1   : > { %3254 = vmax.xlane.f32.xlu0 %v3253_v62 }
 0xac2   : > { %v4460_v3 = vpop.f32.mrf.mxu1  ;;  %v4466_v8 = vpop.f32.mrf.mxu0 }
 0xac4   : > { %v3031_v5 = vpop.f32.mrf.mxu1  ;;  %v3079_v9 = vpop.f32.mrf.mxu0 }
 0xac5   : > { %v3232_v42 = vmul.f32 0.35355338, %v3031_v5  ;;  %v3233_v63 = vmul.f32 0.35355338, %v3079_v9  ;;  %3257 = vmax.xlane.f32.xlu0 %v3256_v15 }
 0xac6   : > { %v4471_v18 = vpop.f32.mrf.mxu1  ;;  %v4477_v24 = vpop.f32.mrf.mxu0 }
 0xac7   : > { %v5955_v56 = vsel %vm3239_vm10, %v3232_v42, -1e+30  ;;  %v5959_v26 = vsel %vm3239_vm10, %v3233_v63, -1e+30 }
 0xac8   : > { %v3034_v31 = vpop.f32.mrf.mxu1  ;;  %v3082_v36 = vpop.f32.mrf.mxu0  ;;  %v3262_v61 = vsel %vm506_vm2, %v5959_v26, -inf  ;;  %v3259_v1 = vsel %vm506_vm2, %v5955_v56, -inf }
 0xac9   : > { %3263 = vmax.xlane.f32.xlu0 %v3262_v61  ;;  %3260 = vmax.xlane.f32.xlu1 %v3259_v1 }
 0xaca   : > { %v4472_v6 = vpop.f32.mrf.mxu1  ;;  %v4478_v19 = vpop.f32.mrf.mxu0 }
 0xacc   : > { %v3127_v7 = vpop.f32.mrf.mxu1  ;;  %v3175_v2 = vpop.f32.mrf.mxu0 }
 0xacd   : > { %v3234_v11 = vmul.f32 0.35355338, %v3127_v7  ;;  %v3235_v17 = vmul.f32 0.35355338, %v3175_v2 }
 0xace   : > { %v4483_v45 = vpop.f32.mrf.mxu1  ;;  %v4489_v16 = vpop.f32.mrf.mxu0 }
 0xacf   : > { %v3247_v22 = vsel %vm3239_vm10, %v3234_v11, -1e+30  ;;  %v3248_v44 = vsel %vm3239_vm10, %v3235_v17, -1e+30 }
 0xad0   : > { %v3130_v27 = vpop.f32.mrf.mxu1  ;;  %v3178_v23 = vpop.f32.mrf.mxu0  ;;  %v3268_v30 = vsel %vm506_vm2, %v3248_v44, -inf  ;;  %v3265_v14 = vsel %vm506_vm2, %v3247_v22, -inf }
 0xad1   : > { %3269 = vmax.xlane.f32.xlu0 %v3268_v30  ;;  %3266 = vmax.xlane.f32.xlu1 %v3265_v14 }
 0xad2   : > { %v4484_v49 = vpop.f32.mrf.mxu1  ;;  %v4490_v43 = vpop.f32.mrf.mxu0 }
 0xad4   : > { %v3223_v35 = vpop.f32.mrf.mxu1 }
 0xad5   : > { %v3236_v39 = vmul.f32 0.35355338, %v3223_v35 }
 0xad6   : > { %v4495_v46 = vpop.f32.mrf.mxu1 }
 0xad7   : > { %v3249_v47 = vsel %vm3239_vm10, %v3236_v39, -1e+30 }
 0xad8   : > { %v3226_v37 = vpop.f32.mrf.mxu1  ;;  %v3271_v48 = vsel %vm506_vm2, %v3249_v47, -inf }
 0xada   : > { %v4496_v25 = vpop.f32.mrf.mxu1 }
 0xae2   : > { %2833 = vrot.lane.b32.xlu1 %v5914_v4, %s5037_s19 }
 0xae7   : > { %2831 = vrot.lane.b32.xlu0 %v5914_v4, %s5034_s9  ;;  %s3888_s9 = scalar_lea.sflag [#allocation5], %s5232_s17 }
 0xb06   : > { %3272 = vmax.xlane.f32.xlu1 %v3271_v48 }
 0xb17   : > { %2835 = vrot.lane.b32.xlu1 %v5914_v4, %s5033_s30  ;;  %s6202_s30 = smov 24  }
 0xb29   : > { %v3252_v21 = vpop.xlane.xlu1 %3251 }
 0xb2a   : > { %v3274_v50 = vsub.f32 %v5943_v51, %v3252_v21 }
 0xb2c   : > { %v3282_v29 = vmul.f32 1.442695, %v3274_v50 }
 0xb2e   : > { %4803 = vpow2.f32 %v3282_v29 }
 0xb3b   : > { %v5981_v0 = vpop.eup %4803 }
 0xb3c   : > { %v3298_v32 = vsel %vm506_vm2, %v5981_v0, 0.0 }
 0xb3d   : > { %3299 = vadd.xlane.f32.xlu0 %v3298_v32 }
 0xb4a   : > { %v3255_v52 = vpop.xlane.xlu0 %3254 }
 0xb4b   : > { %v3275_v41 = vsub.f32 %v3243_v40, %v3255_v52 }
 0xb4d   : > { %v3284_v53 = vmul.f32 1.442695, %v3275_v41 }
 0xb4e   : > { %v3258_v10 = vpop.xlane.xlu0 %3257 }
 0xb4f   : > { %4805 = vpow2.f32 %v3284_v53  ;;  %v3276_v55 = vsub.f32 %v3244_v54, %v3258_v10 }
 0xb51   : > { %v3286_v28 = vmul.f32 1.442695, %v3276_v55 }
 0xb52   : > { %v3264_v33 = vpop.xlane.xlu0 %3263  ;;  %v3261_v58 = vpop.xlane.xlu1 %3260 }
 0xb53   : > { %4807 = vpow2.f32 %v3286_v28  ;;  %v3277_v38 = vsub.f32 %v5955_v56, %v3261_v58  ;;  %v3278_v54 = vsub.f32 %v5959_v26, %v3264_v33 }
 0xb55   : > { %v3288_v3 = vmul.f32 1.442695, %v3277_v38  ;;  %v3290_v5 = vmul.f32 1.442695, %v3278_v54 }
 0xb57   : > { %4809 = vpow2.f32 %v3288_v3 }
 0xb58   : > { %4811 = vpow2.f32 %v3290_v5 }
 0xb5a   : > { %v3270_v34 = vpop.xlane.xlu0 %3269  ;;  %v3267_v62 = vpop.xlane.xlu1 %3266 }
 0xb5b   : > { %v3279_v8 = vsub.f32 %v3247_v22, %v3267_v62  ;;  %v3280_v15 = vsub.f32 %v3248_v44, %v3270_v34 }
 0xb5c   : > { %v5985_v12 = vpop.eup %4805 }
 0xb5d   : > { %v3301_v51 = vsel %vm506_vm2, %v5985_v12, 0.0  ;;  %v3292_v9 = vmul.f32 1.442695, %v3279_v8  ;;  %v3294_v42 = vmul.f32 1.442695, %v3280_v15 }
 0xb5e   : > { %3302 = vadd.xlane.f32.xlu1 %v3301_v51  ;;  %v2832_v57 = vpop.permute.xlu0 %2831  ;;  %v2834_v63 = vpop.permute.xlu1 %2833 }
 0xb5f   : > { %v3396_v59 = vsel %vm2218_vm9, %v2832_v57, 0  ;;  %4813 = vpow2.f32 %v3292_v9  ;;  %v3442_v44 = vsel %vm2218_vm9, %v2834_v63, 0 }
 0xb60   : > { %v5990_v60 = vpop.eup %4807  ;;  %4504 = vmatpush3.bf16.msra.mxu1 %v3396_v59  ;;  %4815 = vpow2.f32 %v3294_v42 }
 0xb61   : > { %v3304_v40 = vsel %vm506_vm2, %v5990_v60, 0.0  ;;  %4515 = vmatprep.subr.bf16.mxu1 %v5032_v20 }
 0xb62   : > { %3305 = vadd.xlane.f32.xlu0 %v3304_v40 }
 0xb64   : > { %v6001_v18 = vpop.eup %4809 }
 0xb65   : > { %v6003_v36 = vpop.eup %4811  ;;  %v3307_v26 = vsel %vm506_vm2, %v6001_v18, 0.0 }
 0xb66   : > { %v3310_v6 = vsel %vm506_vm2, %v6003_v36, 0.0 }
 0xb6c   : > { %v6007_v61 = vpop.eup %4813 }
 0xb6d   : > { %v3313_v1 = vsel %vm506_vm2, %v6007_v61, 0.0  ;;  %v6013_v19 = vpop.eup %4815 }
 0xb6e   : > { %v3316_v7 = vsel %vm506_vm2, %v6013_v19, 0.0 }
 0xb6f   : > { %2839 = vrot.lane.b32.xlu1 %v5914_v4, %s5036_s14 }
 0xb78   : > { %2837 = vrot.lane.b32.xlu0 %v5914_v4, %s5040_s18 }
 0xb8f   : > { %v3273_v24 = vpop.xlane.xlu1 %3272 }
 0xb90   : > { %v3281_v31 = vsub.f32 %v3249_v47, %v3273_v24 }
 0xb92   : > { %v3296_v56 = vmul.f32 1.442695, %v3281_v31 }
 0xb93   : > { %3308 = vadd.xlane.f32.xlu1 %v3307_v26  ;;  %v2836_v27 = vpop.permute.xlu1 %2835 }
 0xb94   : > { %4817 = vpow2.f32 %v3296_v56  ;;  %v3488_v35 = vsel %vm2218_vm9, %v2836_v27, 0 }
 0xb97   : > { %3314 = vadd.xlane.f32.xlu1 %v3313_v1  ;;  %3311 = vadd.xlane.f32.xlu0 %v3310_v6  ;;  %v4703_v6 = vld [vmem:[#allocation9 + $0x18] sm:$0xff]  }
 0xb9b   : > { %3317 = vadd.xlane.f32.xlu0 %v3316_v7  ;;  %v4705_v7 = vld [vmem:[#allocation9 + $0x8] sm:$0xff]  }
 0xba1   : > { %v6017_v2 = vpop.eup %4817 }
 0xba2   : > { %v3319_v11 = vsel %vm506_vm2, %v6017_v2, 0.0 }
 0xba3   : > { %3320 = vadd.xlane.f32.xlu1 %v3319_v11 }
 0xbb1   : > { %2841 = vrot.lane.b32.xlu0 %v5914_v4, %s5041_s12 }
 0xbb4   : > { %2843 = vrot.lane.b32.xlu1 %v5914_v4, %s5039_s15 }
 0xbc6   : > { %v3300_v17 = vpop.xlane.xlu0 %3299 }
 0xbc7   : > { %4819 = vrcp.f32 %v3300_v17 }
 0xbd4   : > { %v4820_v45 = vpop.eup %4819 }
 0xbd5   : > { %v3330_v16 = vmul.f32 %v4820_v45, %v5981_v0  ;;  %v4706_v45 = vld [vmem:[#allocation9] sm:$0xff]  }
 0xbd7   : > { %v3338_v22 = vpack.c.bf16 %v3330_v16, %v3330_v16 }
 0xbd9   : > { %4500 = vmatmul.mubr.msk.bf16.vlgmr.msra.gmra.mxu0 %vm506_vm2, %v3338_v22 }
 0xbda   : > { %4510 = vmatpush3.bf16.msra.mxu0 %v3442_v44  ;;  %4511 = vmatprep.mubr.msk.bf16.mxu0 %vm5035_vm1, %v5032_v20 }
 0xbdb   : > { %4521 = vmatprep.subr.bf16.mxu0 %v5032_v20 }
 0xbe7   : > { %v3303_v23 = vpop.xlane.xlu1 %3302 }
 0xbe8   : > { %4821 = vrcp.f32 %v3303_v23 }
 0xbeb   : > { %v3306_v4 = vpop.xlane.xlu0 %3305  ;;  %v2840_v47 = vpop.permute.xlu1 %2839 }
 0xbec   : > { %4823 = vrcp.f32 %v3306_v4  ;;  %v3580_v55 = vsel %vm2218_vm9, %v2840_v47, 0 }
 0xbef   : > { %v2838_v37 = vpop.permute.xlu0 %2837 }
 0xbf0   : > { %v3534_v39 = vsel %vm2218_vm9, %v2838_v37, 0 }
 0xbf5   : > { %v4822_v30 = vpop.eup %4821 }
 0xbf6   : > { %v3331_v14 = vmul.f32 %v4822_v30, %v5985_v12 }
 0xbf8   : > { %v3339_v49 = vpack.c.bf16 %v3331_v14, %v3331_v14 }
 0xbf9   : > { %v4824_v43 = vpop.eup %4823 }
 0xbfa   : > { %4506 = vmatmul.mubr.msk.bf16.vlgmr.msra.gmra.mxu1 %vm506_vm2, %v3339_v49  ;;  %v3332_v46 = vmul.f32 %v4824_v43, %v5990_v60 }
 0xbfb   : > { %4516 = vmatpush3.bf16.msra.mxu1 %v3488_v35  ;;  %4517 = vmatprep.mubr.msk.bf16.mxu1 %vm5035_vm1, %v5032_v20 }
 0xbfc   : > { %v3340_v25 = vpack.c.bf16 %v3332_v46, %v3332_v46  ;;  %4527 = vmatprep.subr.bf16.mxu1 %v5032_v20 }
 0xbfe   : > { %4512 = vmatmul.mubr.msk.bf16.vlgmr.msra.gmra.mxu0 %vm506_vm2, %v3340_v25 }
 0xbff   : > { %4522 = vmatpush3.bf16.msra.mxu0 %v3534_v39  ;;  %4523 = vmatprep.mubr.msk.bf16.mxu0 %vm5035_vm1, %v5032_v20 }
 0xc00   : > { %4533 = vmatprep.subr.bf16.mxu0 %v5032_v20 }
 0xc1c   : > { %v3309_v48 = vpop.xlane.xlu1 %3308 }
 0xc1d   : > { %4825 = vrcp.f32 %v3309_v48 }
 0xc20   : > { %v3315_v21 = vpop.xlane.xlu1 %3314  ;;  %v3312_v50 = vpop.xlane.xlu0 %3311 }
 0xc21   : > { %4827 = vrcp.f32 %v3315_v21 }
 0xc22   : > { %4829 = vrcp.f32 %v3312_v50 }
 0xc24   : > { %v3318_v29 = vpop.xlane.xlu0 %3317 }
 0xc25   : > { %4831 = vrcp.f32 %v3318_v29 }
 0xc28   : > { %v2842_v33 = vpop.permute.xlu0 %2841 }
 0xc29   : > { %v3626_v57 = vsel %vm2218_vm9, %v2842_v33, 0 }
 0xc2a   : > { %v4826_v0 = vpop.eup %4825 }
 0xc2b   : > { %v3333_v32 = vmul.f32 %v4826_v0, %v6001_v18 }
 0xc2c   : > { %v3321_v52 = vpop.xlane.xlu1 %3320 }
 0xc2d   : > { %4833 = vrcp.f32 %v3321_v52  ;;  %v3341_v41 = vpack.c.bf16 %v3333_v32, %v3333_v32  ;;  %v3838_v32 = vld [vmem:[#allocation2] sm:$0xff] }
 0xc2e   : > { %v4828_v53 = vpop.eup %4827  ;;  %v3840_v52 = vsel %vm418_vm0, %v3838_v32, 0.0 }
 0xc2f   : > { %v4830_v10 = vpop.eup %4829  ;;  %4518 = vmatmul.mubr.msk.bf16.vlgmr.msra.gmra.mxu1 %vm506_vm2, %v3341_v41  ;;  %v3335_v34 = vmul.f32 %v4828_v53, %v6007_v61 }
 0xc30   : > { %4528 = vmatpush3.bf16.msra.mxu1 %v3580_v55  ;;  %v3334_v28 = vmul.f32 %v4830_v10, %v6003_v36  ;;  %4529 = vmatprep.mubr.msk.bf16.mxu1 %vm5035_vm1, %v5032_v20  ;;  %v2844_v59 = vpop.permute.xlu1 %2843 }
 0xc31   : > { %4539 = vmatprep.subr.bf16.mxu1 %v5032_v20  ;;  %v3343_v60 = vpack.c.bf16 %v3335_v34, %v3335_v34  ;;  %v3672_v58 = vsel %vm2218_vm9, %v2844_v59, 0 }
 0xc32   : > { %v3342_v12 = vpack.c.bf16 %v3334_v28, %v3334_v28  ;;  %v4832_v51 = vpop.eup %4831 }
 0xc33   : > { %v3336_v40 = vmul.f32 %v4832_v51, %v6013_v19  ;;  %v4704_v19 = vld [vmem:[#allocation9 + $0x10] sm:$0xff]  }
 0xc34   : > { %4524 = vmatmul.mubr.msk.bf16.vlgmr.msra.gmra.mxu0 %vm506_vm2, %v3342_v12 }
 0xc35   : > { %4534 = vmatpush3.bf16.msra.mxu0 %v3626_v57  ;;  %4535 = vmatprep.mubr.msk.bf16.mxu0 %vm5035_vm1, %v5032_v20  ;;  %v3344_v62 = vpack.c.bf16 %v3336_v40, %v3336_v40 }
 0xc36   : > { %4545 = vmatprep.subr.bf16.mxu0 %v5032_v20 }
 0xc37   : > { %4530 = vmatmul.mubr.msk.bf16.vlgmr.msra.gmra.mxu1 %vm506_vm2, %v3343_v60 }
 0xc38   : > { %4540 = vmatpush3.bf16.msra.mxu1 %v3672_v58  ;;  %4541 = vmatprep.mubr.msk.bf16.mxu1 %vm5035_vm1, %v5032_v20 }
 0xc3a   : > { %v4834_v38 = vpop.eup %4833 }
 0xc3b   : > { %v3337_v54 = vmul.f32 %v4834_v38, %v6017_v2 }
 0xc3c   : > { %4536 = vmatmul.mubr.msk.bf16.vlgmr.msra.gmra.mxu0 %vm506_vm2, %v3344_v62  ;;  %v4107_v62 = vld [vmem:[%s6161_s4] ss:$0 sm:$0xff] }
 0xc3d   : > { %v3345_v3 = vpack.c.bf16 %v3337_v54, %v3337_v54  ;;  %4553 = vmatprep.mubr.msk.bf16.mxu0 %vm5035_vm1, %v5032_v20  ;;  %4546 = vmatpush3.bf16.msra.mxu0 %v4703_v6 }
 0xc3e   : > { %4547 = vmatprep.subr.bf16.mxu0 %v5032_v20 }
 0xc3f   : > { %4542 = vmatmul.mubr.msk.bf16.vlgmr.msra.gmra.mxu1 %vm506_vm2, %v3345_v3 }
 0xc41   : > { %4548 = vmatpush3.bf16.msra.mxu0 %v4704_v19 }
 0xc42   : > { %4549 = vmatprep.subr.bf16.mxu0 %v5032_v20 }
 0xc45   : > { %4550 = vmatpush3.bf16.msra.mxu0 %v4705_v7 }
 0xc46   : > { %4551 = vmatprep.subr.bf16.mxu0 %v5032_v20 }
 0xc49   : > { %4552 = vmatpush3.bf16.msra.mxu0 %v4706_v45 }
 0xc99   : > { %v6066_v8 = vpop.f32.mrf.mxu0 }
 0xc9a   : > { %v3714_v55 = vpack.c.bf16 %v6066_v8, %v6066_v8 }
 0xc9b   : > { %v4501_v5 = vpop.f32.mrf.mxu0 }
 0xc9d   : > { %v3389_v9 = vpop.f32.mrf.mxu0 }
 0xc9e   : > { %v2702_v9 = vld [vmem:[#allocation2 + $0x8] sm:$0xff] }
 0xc9f   : > { %v4502_v15 = vpop.f32.mrf.mxu0 }
 0xcba   : > { %v3432_v42 = vpop.f32.mrf.mxu1 }
 0xcbb   : > { %v3715_v63 = vpack.c.bf16 %v3432_v42, %v3432_v42 }
 0xcbc   : > { %v4507_v18 = vpop.f32.mrf.mxu1 }
 0xcbd   : > { %3723 = vrot.lane.b32.xlu0 %v3715_v63, %s5042_s10 }
 0xcbe   : > { %v3435_v24 = vpop.f32.mrf.mxu1  ;;  %v3478_v31 = vpop.f32.mrf.mxu0 }
 0xcbf   : > { %v3716_v36 = vpack.c.bf16 %v3478_v31, %v3478_v31 }
 0xcc0   : > { %v4508_v56 = vpop.f32.mrf.mxu1  ;;  %v4513_v26 = vpop.f32.mrf.mxu0 }
 0xcc1   : > { %3726 = vrot.lane.b32.xlu1 %v3716_v36, %s5046_s1  ;;  %s6203_s1 = smov 32  }
 0xcc2   : > { %v3481_v61 = vpop.f32.mrf.mxu0 }
 0xcc4   : > { %v4514_v1 = vpop.f32.mrf.mxu0 }
 0xcef   : > { %v3524_v2 = vpop.f32.mrf.mxu1 }
 0xcf0   : > { %v3717_v11 = vpack.c.bf16 %v3524_v2, %v3524_v2 }
 0xcf1   : > { %v4519_v17 = vpop.f32.mrf.mxu1 }
 0xcf2   : > { %3729 = vrot.lane.b32.xlu0 %v3717_v11, %s6202_s30 }
 0xcf3   : > { %v3527_v16 = vpop.f32.mrf.mxu1 }
 0xcf4   : > { %v3570_v22 = vpop.f32.mrf.mxu0  ;;  %v4113_v16 = vld [vmem:[%s6162_s5] ss:$0 sm:$0xff] }
 0xcf5   : > { %v3718_v44 = vpack.c.bf16 %v3570_v22, %v3570_v22  ;;  %v4520_v27 = vpop.f32.mrf.mxu1 }
 0xcf6   : > { %v4525_v23 = vpop.f32.mrf.mxu0 }
 0xcf7   : > { %3732 = vrot.lane.b32.xlu1 %v3718_v44, %s6203_s1  ;;  %v3616_v4 = vpop.f32.mrf.mxu1  ;;  %v4114_v44 = vld [vmem:[%s6163_s6] ss:$0 sm:$0xff] }
 0xcf8   : > { %v3573_v30 = vpop.f32.mrf.mxu0  ;;  %v3719_v14 = vpack.c.bf16 %v3616_v4, %v3616_v4 }
 0xcf9   : > { %v4531_v49 = vpop.f32.mrf.mxu1 }
 0xcfa   : > { %v4526_v43 = vpop.f32.mrf.mxu0  ;;  %3735 = vrot.lane.b32.xlu0 %v3719_v14, %s6198_s21  ;;  %s340_s21 = scalar_lea.vmem [#allocation11], %s6204_s11 }
 0xcfb   : > { %v3619_v35 = vpop.f32.mrf.mxu1 }
 0xcfc   : > { %v3662_v20 = vpop.f32.mrf.mxu0 }
 0xcfd   : > { %v3720_v46 = vpack.c.bf16 %v3662_v20, %v3662_v20  ;;  %v4532_v37 = vpop.f32.mrf.mxu1 }
 0xcfe   : > { %v4537_v25 = vpop.f32.mrf.mxu0 }
 0xcff   : > { %3738 = vrot.lane.b32.xlu1 %v3720_v46, %s6200_s13  ;;  %v3708_v39 = vpop.f32.mrf.mxu1  ;;  %s3901_s13 = sshll.u32 %s340_s21, 4  ;;  %s6112_s13 = int_to_ptr.vmem [resolvable:$true] %s3901_s13 }
 0xd00   : > { %v3665_v47 = vpop.f32.mrf.mxu0  ;;  %v3721_v48 = vpack.c.bf16 %v3708_v39, %v3708_v39  ;;  %s4947_s14 = scalar_lea.vmem %s6112_s13, 256 }
 0xd01   : > { %v4543_v21 = vpop.f32.mrf.mxu1  ;;  %p4948_p7 = scmp.ne.s32.totalorder %s6112_s13, %s4947_s14 }
 0xd02   : > { %v4538_v50 = vpop.f32.mrf.mxu0  ;;  %3741 = vrot.lane.b32.xlu0 %v3721_v48, %s6199_s22  ;;  %s4121_s22 = sshll.u32 %s5112_s28, 8  ;;  %s5049_s28 = smov [#allocation11]  }
 0xd03   : > { %v3711_v29 = vpop.f32.mrf.mxu1  ;;  %s6110_s1 = scalar_lea.hbm %s6164_s7, %s4121_s22  ;;  %p4949_p13 = pnand %p4948_p7, %p6205_p12 }
 0xd04   : > { %s4951_s19 = sshll.u32 %s5049_s28, 4  ;;  %s4952_s19 = int_to_ptr.vmem [resolvable:$false] %s4951_s19 }
 0xd05   : > { %v4544_v0 = vpop.f32.mrf.mxu1  ;;  %p4950_p0 = pneg %p4949_p13  ;;  %s4953_s15 = scalar_lea.vmem %s4952_s19, 512 }
 0xd06   : > { %p4954_p10 = scmp.lt.s32.totalorder %s6112_s13, %s4952_s19  ;;  %p4955_p5 = scmp.lt.s32.totalorder %s4953_s15, %s4947_s14 }
 0xd08   : > { %p4956_p2 = por %p4955_p5, %p4954_p10 }
 0xd0a   : > { %p4957_p9 = pnand %p4956_p2, %p4950_p0 }
 0xd23   : > { %3841 = vadd.xlane.f32.xlu1 %v3840_v52 }
 0xd2f   : > { %v3724_v41 = vpop.permute.xlu0 %3723 }
 0xd30   : > { %v3745_v33 = vsel %vm506_vm2, %v3714_v55, %v3724_v41 }
 0xd33   : > { %v3727_v53 = vpop.permute.xlu1 %3726 }
 0xd34   : > { %v3747_v34 = vsel %vm913_vm3, %v3745_v33, %v3727_v53 }
 0xd64   : > { %v3730_v10 = vpop.permute.xlu0 %3729 }
 0xd65   : > { %v3749_v51 = vsel %vm1484_vm4, %v3747_v34, %v3730_v10 }
 0xd69   : > { %v3733_v28 = vpop.permute.xlu1 %3732 }
 0xd6a   : > { %v3751_v59 = vsel %vm1487_vm5, %v3749_v51, %v3733_v28 }
 0xd6c   : > { %v3736_v12 = vpop.permute.xlu0 %3735 }
 0xd6d   : > { %v3753_v60 = vsel %vm1490_vm6, %v3751_v59, %v3736_v12 }
 0xd71   : > { %v3739_v57 = vpop.permute.xlu1 %3738 }
 0xd72   : > { %v3755_v40 = vsel %vm1493_vm7, %v3753_v60, %v3739_v57 }
 0xd74   : > { %v3742_v58 = vpop.permute.xlu0 %3741 }
 0xd75   : > { %v3757_v38 = vsel %vm1496_vm8, %v3755_v40, %v3742_v58 }
 0xd76   : > { %4554 = vmatmul.mubr.msk.bf16.vlgmr.msra.gmra.mxu0 %vm418_vm0, %v3757_v38 }
 0xdac   : > { %v3842_v5 = vpop.xlane.xlu1 %3841 }
 0xdad   : > { %v3847_v18 = vmul.f32 0.015625, %v3842_v5 }
 0xdaf   : > { %v3849_v31 = vsub.f32 %v3838_v32, %v3847_v18 }
 0xdb1   : > { %v3851_v26 = vmul.f32 %v3849_v31, %v3849_v31 }
 0xdb3   : > { %v3853_v61 = vsel %vm418_vm0, %v3851_v26, 0.0 }
 0xe36   : > { %v3824_v54 = vpop.f32.mrf.mxu0 }
 0xe37   : > { %v3825_v3 = vadd.f32 %v4107_v62, %v3824_v54 }
 0xe38   : > { %v4555_v8 = vpop.f32.mrf.mxu0 }
 0xe39   : > { %v3835_v15 = vsel %vm3832_vm11, %v3825_v3, 0.0 }
 0xe3a   : > { %v3836_v42 = vadd.f32 %v3835_v15, %v2702_v9  ;;  %v3827_v63 = vpop.f32.mrf.mxu0 }
 0xe3c   : > { %3837 = vst.msk [vmem:[#allocation2 + $0x8] sm:$0xff] %vm418_vm0, %v3836_v42  ;;  %v4556_v24 = vpop.f32.mrf.mxu0 }
 0xe43   : > { %v3839_v36 = vld [vmem:[#allocation2 + $0x8] sm:$0xff] }
 0xe44   : > { %v3843_v56 = vsel %vm418_vm0, %v3839_v36, 0.0 }
 0xe45   : > { %3844 = vadd.xlane.f32.xlu0 %v3843_v56 }
 0xe49   : > { %3854 = vadd.xlane.f32.xlu0 %v3853_v61 }
 0xece   : > { %v3845_v13 = vpop.xlane.xlu0 %3844 }
 0xecf   : > { %v3848_v1 = vmul.f32 0.015625, %v3845_v13 }
 0xed1   : > { %v3850_v6 = vsub.f32 %v3839_v36, %v3848_v1 }
 0xed2   : > { %v3855_v19 = vpop.xlane.xlu0 %3854 }
 0xed3   : > { %v3859_v7 = vmul.f32 0.015625, %v3855_v19  ;;  %v3852_v2 = vmul.f32 %v3850_v6, %v3850_v6 }
 0xed5   : > { %v3861_v11 = vadd.f32 1e-05, %v3859_v7  ;;  %v3856_v17 = vsel %vm418_vm0, %v3852_v2, 0.0 }
 0xed6   : > { %3857 = vadd.xlane.f32.xlu1 %v3856_v17 }
 0xed7   : > { %4835 = vrsqrt.f32 %v3861_v11 }
 0xee4   : > { %v4836_v45 = vpop.eup %4835 }
 0xee5   : > { %v3865_v22 = vmul.f32 %v4836_v45, %v3849_v31 }
 0xee7   : > { %v3874_v27 = vmul.f32 %v4113_v16, %v3865_v22 }
 0xee9   : > { %v3883_v23 = vadd.f32 %v4114_v44, %v3874_v27 }
 0xeeb   : > { %3885 = vst.msk [vmem:[%s340_s21] sm:$0xff] %vm418_vm0, %v3883_v23 }
 0xf5f   : > { %v3858_v4 = vpop.xlane.xlu1 %3857 }
 0xf60   : > { %v3860_v30 = vmul.f32 0.015625, %v3858_v4 }
 0xf62   : > { %v3862_v14 = vadd.f32 1e-05, %v3860_v30 }
 0xf64   : > { %4837 = vrsqrt.f32 %v3862_v14 }
 0xf71   : > { %v4838_v49 = vpop.eup %4837 }
 0xf72   : > { %v3866_v43 = vmul.f32 %v4838_v49, %v3850_v6 }
 0xf74   : > { %v3875_v35 = vmul.f32 %v4113_v16, %v3866_v43 }
 0xf76   : > { %v3884_v20 = vadd.f32 %v4114_v44, %v3875_v35 }
 0xf78   : > { %3886 = vst.msk [vmem:[%s340_s21 + $0x8] sm:$0xff] %vm418_vm0, %v3884_v20 }
 0xf79   : > { %4960 = shalt.err (!%p4957_p9)
}
 0xf7a   : > { %s4961_s18 = scalar_lea.hbm %s6110_s1, 256  ;;  %s4965_s21 = scalar_lea.hbm %s6164_s7, 512 }
 0xf7b   : > { %p4962_p1 = scmp.ne.s32.totalorder %s6110_s1, %s4961_s18  ;;  %p4966_p8 = scmp.lt.s32.totalorder %s6110_s1, %s6164_s7 }
 0xf7c   : > { %p4967_p3 = scmp.lt.s32.totalorder %s4965_s21, %s4961_s18 }
 0xf7d   : > { %p4963_p4 = pnand %p4962_p1, %p6205_p12 }
 0xf7e   : > { %p4968_p11 = por %p4967_p3, %p4966_p8 }
 0xf7f   : > { %p4964_p6 = pneg %p4963_p4 }
 0xf81   : > { %p4969_p7 = pnand %p4968_p11, %p4964_p6 }
 0xf83   : > { %4972 = shalt.err (!%p4969_p7)
}
 0xf84   : > { %s5050_s30 = smov 128  }
 0xf85   : > { %4571 = dma.vmem_to_hbm [thread:$0]  (%p6205_p12), %s6112_s13, 256, %s6110_s1, %s3888_s9, %s5050_s30, %s5050_s30, %s5042_s10  }
 0xf86 PF: > { %s3916_s14 = sand.u32 1, %s5007_s24   ;;  %p6206_p13 = scmp.ne.s32.totalorder %s6184_s8, 0 }
 0xf87   : > { %p6207_p0 = scmp.ge.s32.totalorder %s5019_s27, 2  ;;  %s3917_s28 = scalar_lea.sflag [#allocation5], %s3916_s14 }
 0xf89   : > { %p4588_p10 = pnand %p6207_p0, %p6206_p13 }
 0xf8b   : > { %p4589_p5 = pneg %p4588_p10 }
 0xf8d   : > { %5002 = dma.done.wait (%p4589_p5), %s3917_s28, 256  }
 0xf8e   : > { %5004 = vsyncadd (%p4589_p5), %s3917_s28, 4294967040  ;;  %p22_p2 = scmp.ge.s32.totalorder %s5174_s20, 4   ;;  %s6208_s24 = smov %s5011_s25 }
 0xf8f   : > { %s6209_s25 = smov %s5015_s26  ;;  %s6210_s26 = smov %s5184_s23 }
 0xf90   : > { %s6211_s27 = smov %s5174_s20  ;;  %24 = sbr.rel (!%p22_p2) target bundleno = 9 (0x9), region = 113 }
 0xf95   :  { %3922 = vsyncpa [#allocation4], 1 }
 0xf96   :  { %3924 = vsyncpa [#allocation4 + $0x1], 1 }
 0xf97   :  { %3925 = vsyncpa [#allocation7], 1 }
 0xf98   :  { %3926 = vsyncpa [#allocation10], 1 }
 0xf99   :  { %3927 = vsyncpa [#allocation5], 1 }
 0xf9a   :  { %3929 = vsyncpa [#allocation5 + $0x1], 1 }

</bundles_post_ra>
